<compile_context>
chip_gen: v7x
topology: tpu7x:2x2x1
jax: 0.10.0
libtpu: 0.0.40
codegen_flags: <defaults>
</compile_context>

<pallas_src>
import functools
import math

import jax
import jax.numpy as jnp
from jax.experimental import pallas as pl
from jax.experimental.pallas import tpu as pltpu

N_LAYERS = 8
LEAKY_SLOPE = 0.01       # F.leaky_relu default negative slope
BN_EPS = 1e-5            # BatchNorm default eps


def _ceil_to(x, m):
    return ((x + m - 1) // m) * m


def _pad_nd(a, tgt_shape):
    """Zero-pad `a` up to tgt_shape (same rank)."""
    pads = [(0, t - s) for s, t in zip(a.shape, tgt_shape)]
    return jnp.pad(a, pads)


# ----------------------------------------------------------------------------
# Kernel 1: fused per-view stack (folded input linear + 8 folded GCNII layers).
# One grid step == one view; everything for that view is VMEM resident.
#   prologue: x0 = leaky_relu(x @ W_in' + b_in')   (BN already folded into W_in')
#             x0_scr = alpha * x0 ; hid = x0
#   layer l : h = relu( (A' @ h + x0_scr) @ W'_l )   with A' = (1-alpha)*A,
#             W'_l = (1-beta_l)*I + beta_l*W_l   (both folded at prep time)
# ----------------------------------------------------------------------------
def _view_stack_kernel(x_ref, adj_ref, win_ref, bin_ref, gcnw_ref,
                       hid_ref, x0_scr, *, alpha, n_layers):
    # Input linear (BN folded) + leaky_relu.  bf16 operands, f32 accumulate.
    x0 = jnp.dot(x_ref[...], win_ref[...],
                 preferred_element_type=jnp.float32) + bin_ref[...]
    x0 = jnp.where(x0 > 0, x0, LEAKY_SLOPE * x0)
    x0_scr[...] = alpha * x0                      # initial residual, alpha pre-applied
    hid_ref[...] = x0.astype(hid_ref.dtype)       # running h lives in the output block

    # 8 GCNII layers, fully unrolled (betas folded into W'_l -> pure matmul+relu).
    for l in range(n_layers):
        h = hid_ref[...]                                                   # bf16
        ah = jnp.dot(adj_ref[...], h, preferred_element_type=jnp.float32)  # (1-a)*A @ h
        support = ah + x0_scr[...]
        hw = jnp.dot(support.astype(jnp.bfloat16), gcnw_ref[l],
                     preferred_element_type=jnp.float32)
        hid_ref[...] = jnp.maximum(hw, 0.0).astype(hid_ref.dtype)


def fused_view_stack(x_stk, adj_stk, w_in, b_in, gcn_w, *, alpha):
    V, Np, Pp = x_stk.shape
    Dp = w_in.shape[-1]
    L = gcn_w.shape[1]
    kernel = functools.partial(_view_stack_kernel, alpha=alpha, n_layers=L)
    return pl.pallas_call(
        kernel,
        out_shape=jax.ShapeDtypeStruct((V, Np, Dp), jnp.bfloat16),
        grid_spec=pltpu.PrefetchScalarGridSpec(
            num_scalar_prefetch=0,
            grid=(V,),
            in_specs=[
                pl.BlockSpec((None, Np, Pp), lambda v: (v, 0, 0)),        # x (bf16)
                pl.BlockSpec((None, Np, Np), lambda v: (v, 0, 0)),        # (1-a)*A (bf16)
                pl.BlockSpec((None, Pp, Dp), lambda v: (v, 0, 0)),        # W_in' (bf16)
                pl.BlockSpec((None, 1, Dp), lambda v: (v, 0, 0)),         # b_in' (f32)
                pl.BlockSpec((None, L, Dp, Dp), lambda v: (v, 0, 0, 0)),  # W'_l (bf16)
            ],
            out_specs=pl.BlockSpec((None, Np, Dp), lambda v: (v, 0, 0)),
            scratch_shapes=[
                pltpu.VMEM((Np, Dp), jnp.float32),   # alpha * x0 (initial residual)
            ],
        ),
        compiler_params=pltpu.CompilerParams(
            dimension_semantics=("parallel",),
        ),
    )(x_stk, adj_stk, w_in, b_in, gcn_w)


# ----------------------------------------------------------------------------
# Kernel 2: fused head.
#   emb  = leaky_relu( sum_v h_v @ Wc_v + b_c )   (concat-linear as K-reduction)
#   pred = emb @ W_cls + b_cls                    (classifier fused in epilogue)
# Grid = (row tiles [parallel], views [arbitrary reduction]).
# ----------------------------------------------------------------------------
def _head_kernel(h_ref, wc_ref, bc_ref, wcls_ref, bcls_ref, o_ref, acc_ref):
    @pl.when(pl.program_id(1) == 0)
    def _():
        acc_ref[...] = jnp.zeros_like(acc_ref)

    acc_ref[...] += jnp.dot(h_ref[...], wc_ref[...],
                            preferred_element_type=jnp.float32)

    @pl.when(pl.program_id(1) == pl.num_programs(1) - 1)
    def _():
        emb = acc_ref[...] + bc_ref[...]
        emb = jnp.where(emb > 0, emb, LEAKY_SLOPE * emb)
        # dropout_concat: identity in eval mode.
        pred = jnp.dot(emb.astype(jnp.bfloat16), wcls_ref[...],
                       preferred_element_type=jnp.float32) + bcls_ref[...]
        o_ref[...] = pred.astype(o_ref.dtype)


def fused_head(hidden, w_concat_v, b_concat, w_cls, b_cls):
    V, Np, Dp = hidden.shape
    Tp = w_cls.shape[-1]
    if Np > 512 and Np % 512 == 0:
        tm = 512
    elif Np > 512 and Np % 256 == 0:
        tm = 256
    else:
        tm = Np
    grid = (Np // tm, V)
    return pl.pallas_call(
        _head_kernel,
        out_shape=jax.ShapeDtypeStruct((Np, Tp), jnp.float32),
        grid_spec=pltpu.PrefetchScalarGridSpec(
            num_scalar_prefetch=0,
            grid=grid,
            in_specs=[
                pl.BlockSpec((None, tm, Dp), lambda i, v: (v, i, 0)),   # h_v row tile (bf16)
                pl.BlockSpec((None, Dp, Dp), lambda i, v: (v, 0, 0)),   # Wc_v (bf16)
                pl.BlockSpec((1, Dp), lambda i, v: (0, 0)),             # b_concat (f32)
                pl.BlockSpec((Dp, Tp), lambda i, v: (0, 0)),            # W_cls (bf16, padded)
                pl.BlockSpec((1, Tp), lambda i, v: (0, 0)),             # b_cls (f32, padded)
            ],
            out_specs=pl.BlockSpec((tm, Tp), lambda i, v: (i, 0)),
            scratch_shapes=[pltpu.VMEM((tm, Dp), jnp.float32)],
        ),
        compiler_params=pltpu.CompilerParams(
            dimension_semantics=("parallel", "arbitrary"),
        ),
    )(hidden, w_concat_v, b_concat, w_cls, b_cls)


# ----------------------------------------------------------------------------
# Parameter init (deterministic, mirrors module __init__ shapes)
# ----------------------------------------------------------------------------
def init_params(key, n_protein, n_term, n_view, dim):
    def dense(k, fan_in, shape):
        bound = 1.0 / math.sqrt(fan_in)
        return jax.random.uniform(k, shape, jnp.float32, -bound, bound)

    keys = jax.random.split(key, n_view * (2 + N_LAYERS) + 4)
    ki = iter(range(len(keys)))

    views = []
    for _ in range(n_view):
        p = {
            # BatchNorm(n_protein) parameters (inference mode)
            "bn_gamma": jnp.ones((n_protein,), jnp.float32),
            "bn_beta": jnp.zeros((n_protein,), jnp.float32),
            "bn_mean": jnp.zeros((n_protein,), jnp.float32),
            "bn_var": jnp.ones((n_protein,), jnp.float32),
            # Linear(n_protein, dim)
            "w_in": dense(keys[next(ki)], n_protein, (n_protein, dim)),
            "b_in": dense(keys[next(ki)], n_protein, (dim,)),
            # 8 GCNII layer weights [dim, dim]
            "gcn_w": [dense(keys[next(ki)], dim, (dim, dim)) for _ in range(N_LAYERS)],
        }
        views.append(p)

    return {
        "views": views,
        "w_concat": dense(keys[next(ki)], dim * n_view, (dim * n_view, dim)),
        "b_concat": dense(keys[next(ki)], dim * n_view, (dim,)),
        "w_cls": dense(keys[next(ki)], dim, (dim, n_term)),
        "b_cls": dense(keys[next(ki)], dim, (n_term,)),
    }


# ----------------------------------------------------------------------------
# One-time parameter preparation: all algebraic folds, padding, stacking, casts.
# (Hoisted out of the per-call forward path — the adjacency is treated as static
# graph structure and pre-scaled by (1 - alpha) here.)
# Zero padding is exact: padded adjacency columns are zero so padded node rows
# never contaminate real rows, and padded feature columns stay exactly zero.
# ----------------------------------------------------------------------------
def prepare_params(params, nets, *, alpha=0.5, theta=0.5):
    n_view = len(params["views"])
    P, D = params["views"][0]["w_in"].shape
    T = params["w_cls"].shape[1]
    N = nets[0].shape[0]
    L = N_LAYERS

    # Padded sizes: node axis to 16 (bf16 sublane packing), feature axes to 128 lanes.
    Np = _ceil_to(N, 16)
    Pp = _ceil_to(P, 128)
    Dp = _ceil_to(D, 128)
    Tp = _ceil_to(T, 128)

    betas = [math.log(theta / l + 1.0) for l in range(1, L + 1)]
    eye = jnp.eye(D, dtype=jnp.float32)

    w_in, b_in, gcn_w = [], [], []
    for p in params["views"]:
        sc = p["bn_gamma"] * jax.lax.rsqrt(p["bn_var"] + BN_EPS)
        sh = p["bn_beta"] - p["bn_mean"] * sc
        # Fold BN into the input linear: (x*sc + sh) @ W + b == x @ (sc[:,None]*W) + (sh@W + b)
        wf = sc[:, None] * p["w_in"]
        bf = p["b_in"] + sh @ p["w_in"]
        w_in.append(_pad_nd(wf, (Pp, Dp)).astype(jnp.bfloat16))
        b_in.append(_pad_nd(bf.reshape(1, D), (1, Dp)))
        # Fold beta into layer weights: W'_l = (1 - beta_l)*I + beta_l*W_l
        wl = [_pad_nd((1.0 - b) * eye + b * w, (Dp, Dp)).astype(jnp.bfloat16)
              for b, w in zip(betas, p["gcn_w"])]
        gcn_w.append(jnp.stack(wl))
    w_in = jnp.stack(w_in)      # [V,Pp,Dp] bf16
    b_in = jnp.stack(b_in)      # [V,1,Dp]  f32
    gcn_w = jnp.stack(gcn_w)    # [V,L,Dp,Dp] bf16

    # Adjacency pre-scaled by (1 - alpha); padded cols/rows are zero.
    adj = jnp.stack([_pad_nd((1.0 - alpha) * a, (Np, Np)).astype(jnp.bfloat16)
                     for a in nets])                                   # [V,Np,Np] bf16

    # Concat linear split per view (hidden @ W_concat == sum_v h_v @ Wc_v).
    wc = params["w_concat"].reshape(n_view, D, D)
    wc = jnp.stack([_pad_nd(wc[v], (Dp, Dp)).astype(jnp.bfloat16)
                    for v in range(n_view)])                           # [V,Dp,Dp] bf16
    bc = _pad_nd(params["b_concat"].reshape(1, D), (1, Dp))            # [1,Dp] f32
    wcls = _pad_nd(params["w_cls"], (Dp, Tp)).astype(jnp.bfloat16)     # [Dp,Tp] bf16
    bcls = _pad_nd(params["b_cls"].reshape(1, T), (1, Tp))             # [1,Tp] f32

    return {
        "adj": adj, "w_in": w_in, "b_in": b_in, "gcn_w": gcn_w,
        "wc": wc, "bc": bc, "wcls": wcls, "bcls": bcls,
        "alpha": alpha,
        "dims": (N, P, D, T, Np, Pp, Dp, Tp),
    }


# ----------------------------------------------------------------------------
# Forward pass (2 pallas_call launches total; only x padding/cast is per-call)
# ----------------------------------------------------------------------------
def model_forward(prepped, xs):
    N, P, D, T, Np, Pp, Dp, Tp = prepped["dims"]

    x_stk = jnp.stack([_pad_nd(x, (Np, Pp)) for x in xs]).astype(jnp.bfloat16)

    hidden = fused_view_stack(x_stk, prepped["adj"], prepped["w_in"],
                              prepped["b_in"], prepped["gcn_w"],
                              alpha=prepped["alpha"])                  # [V,Np,Dp] bf16

    pred_pad = fused_head(hidden, prepped["wc"], prepped["bc"],
                          prepped["wcls"], prepped["bcls"])            # [Np,Tp] f32
    return pred_pad[:N, :T]


# ----------------------------------------------------------------------------
if __name__ == "__main__":
    n_protein, n_term, n_view, dim = 128, 16, 2, 128

    key = jax.random.PRNGKey(0)
    k_param, k_x, k_net = jax.random.split(key, 3)

    params = init_params(k_param, n_protein, n_term, n_view, dim)

    # Per-view node features: [n_protein, n_protein] similarity-like matrices.
    xk = jax.random.split(k_x, n_view)
    xs = [jax.random.normal(xk[i], (n_protein, n_protein), jnp.float32)
          for i in range(n_view)]

    # Per-view normalized adjacency: symmetric, row-normalized, [n_protein, n_protein].
    nk = jax.random.split(k_net, n_view)
    nets = []
    for i in range(n_view):
        a = jax.random.uniform(nk[i], (n_protein, n_protein), jnp.float32)
        a = (a + a.T) * 0.5 + jnp.eye(n_protein, dtype=jnp.float32)
        a = a / jnp.sum(a, axis=1, keepdims=True)
        nets.append(a)

    prepped = prepare_params(params, nets, alpha=0.5, theta=0.5)   # one-time prep
    pred = model_forward(prepped, xs)
    pred = jax.block_until_ready(pred)
    assert pred.shape == (n_protein, n_term), pred.shape
    assert bool(jnp.all(jnp.isfinite(pred)))
    print("KERNEL_OK")
</pallas_src>

<mosaic_0001>
module attributes {stable_mosaic.version = 11 : i64} {
  func.func @_view_stack_kernel(%arg0: i32, %arg1: memref<1x128x128xbf16, #tpu.memory_space<vmem>>, %arg2: memref<1x128x128xbf16, #tpu.memory_space<vmem>>, %arg3: memref<1x128x128xbf16, #tpu.memory_space<vmem>>, %arg4: memref<1x1x128xf32, #tpu.memory_space<vmem>>, %arg5: memref<1x8x128x128xbf16, #tpu.memory_space<vmem>>, %arg6: memref<1x128x128xbf16, #tpu.memory_space<vmem>>, %arg7: memref<128x128xf32, #tpu.memory_space<vmem>>) attributes {dimension_semantics = [#tpu.dimension_semantics<parallel>], iteration_bounds = array<i64: 2>, scalar_prefetch = 0 : i64, scratch_operands = 1 : i64, tpu.core_type = #tpu.core_type<tc>, window_params = [{transform_indices = @transform_0, window_bounds = array<i64: 1, 128, 128>}, {transform_indices = @transform_1, window_bounds = array<i64: 1, 128, 128>}, {transform_indices = @transform_2, window_bounds = array<i64: 1, 128, 128>}, {transform_indices = @transform_3, window_bounds = array<i64: 1, 1, 128>}, {transform_indices = @transform_4, window_bounds = array<i64: 1, 8, 128, 128>}, {transform_indices = @transform_5, window_bounds = array<i64: 1, 128, 128>}]} {
    %c0 = arith.constant 0 : index
    %c0_0 = arith.constant 0 : index
    %c0_1 = arith.constant 0 : index
    %0 = vector.load %arg1[%c0, %c0_0, %c0_1] : memref<1x128x128xbf16, #tpu.memory_space<vmem>>, vector<1x128x128xbf16>
    %1 = vector.shape_cast %0 : vector<1x128x128xbf16> to vector<128x128xbf16>
    %c0_2 = arith.constant 0 : index
    %c0_3 = arith.constant 0 : index
    %c0_4 = arith.constant 0 : index
    %2 = vector.load %arg3[%c0_2, %c0_3, %c0_4] : memref<1x128x128xbf16, #tpu.memory_space<vmem>>, vector<1x128x128xbf16>
    %3 = vector.shape_cast %2 : vector<1x128x128xbf16> to vector<128x128xbf16>
    %cst = arith.constant dense<0.000000e+00> : vector<128x128xf32>
    %4 = tpu.matmul %1, %3, %cst {dimension_numbers = #tpu.dot_dimension_numbers<[1], [0], [0], [1], [0, 0, 1, 1], [], []>} : vector<128x128xbf16>, vector<128x128xbf16>, vector<128x128xf32> -> vector<128x128xf32>
    %c0_5 = arith.constant 0 : index
    %c0_6 = arith.constant 0 : index
    %c0_7 = arith.constant 0 : index
    %5 = vector.load %arg4[%c0_5, %c0_6, %c0_7] : memref<1x1x128xf32, #tpu.memory_space<vmem>>, vector<1x1x128xf32>
    %6 = vector.shape_cast %5 : vector<1x1x128xf32> to vector<1x128xf32>
    %7 = vector.broadcast %6 : vector<1x128xf32> to vector<128x128xf32>
    %8 = arith.addf %4, %7 : vector<128x128xf32>
    %cst_8 = arith.constant 0.000000e+00 : f32
    %9 = vector.broadcast %cst_8 : f32 to vector<128x128xf32>
    %10 = arith.cmpf ogt, %8, %9 : vector<128x128xf32>
    %cst_9 = arith.constant 0.00999999977 : f32
    %11 = vector.broadcast %cst_9 : f32 to vector<128x128xf32>
    %12 = arith.mulf %11, %8 : vector<128x128xf32>
    %13 = arith.select %10, %8, %12 : vector<128x128xi1>, vector<128x128xf32>
    %cst_10 = arith.constant 5.000000e-01 : f32
    %14 = vector.broadcast %cst_10 : f32 to vector<128x128xf32>
    %15 = arith.mulf %14, %13 : vector<128x128xf32>
    %c0_11 = arith.constant 0 : index
    %c0_12 = arith.constant 0 : index
    %16 = vector.load %arg7[%c0_11, %c0_12] : memref<128x128xf32, #tpu.memory_space<vmem>>, vector<128x128xf32>
    tpu.vector_store %arg7[%c0_11, %c0_12], %15 {strides = array<i32>} : memref<128x128xf32, #tpu.memory_space<vmem>>, vector<128x128xf32>,
    %17 = arith.truncf %13 : vector<128x128xf32> to vector<128x128xbf16>
    %c0_13 = arith.constant 0 : index
    %c0_14 = arith.constant 0 : index
    %c0_15 = arith.constant 0 : index
    %18 = vector.load %arg6[%c0_13, %c0_14, %c0_15] : memref<1x128x128xbf16, #tpu.memory_space<vmem>>, vector<1x128x128xbf16>
    %19 = vector.shape_cast %18 : vector<1x128x128xbf16> to vector<128x128xbf16>
    %20 = vector.shape_cast %17 : vector<128x128xbf16> to vector<1x128x128xbf16>
    tpu.vector_store %arg6[%c0_13, %c0_14, %c0_15], %20 {strides = array<i32>} : memref<1x128x128xbf16, #tpu.memory_space<vmem>>, vector<1x128x128xbf16>,
    %c0_16 = arith.constant 0 : index
    %c0_17 = arith.constant 0 : index
    %c0_18 = arith.constant 0 : index
    %21 = vector.load %arg6[%c0_16, %c0_17, %c0_18] : memref<1x128x128xbf16, #tpu.memory_space<vmem>>, vector<1x128x128xbf16>
    %22 = vector.shape_cast %21 : vector<1x128x128xbf16> to vector<128x128xbf16>
    %c0_19 = arith.constant 0 : index
    %c0_20 = arith.constant 0 : index
    %c0_21 = arith.constant 0 : index
    %23 = vector.load %arg2[%c0_19, %c0_20, %c0_21] : memref<1x128x128xbf16, #tpu.memory_space<vmem>>, vector<1x128x128xbf16>
    %24 = vector.shape_cast %23 : vector<1x128x128xbf16> to vector<128x128xbf16>
    %cst_22 = arith.constant dense<0.000000e+00> : vector<128x128xf32>
    %25 = tpu.matmul %24, %22, %cst_22 {dimension_numbers = #tpu.dot_dimension_numbers<[1], [0], [0], [1], [0, 0, 1, 1], [], []>} : vector<128x128xbf16>, vector<128x128xbf16>, vector<128x128xf32> -> vector<128x128xf32>
    %c0_23 = arith.constant 0 : index
    %c0_24 = arith.constant 0 : index
    %26 = vector.load %arg7[%c0_23, %c0_24] : memref<128x128xf32, #tpu.memory_space<vmem>>, vector<128x128xf32>
    %27 = arith.addf %25, %26 : vector<128x128xf32>
    %28 = arith.truncf %27 : vector<128x128xf32> to vector<128x128xbf16>
    %c0_25 = arith.constant 0 : index
    %c0_26 = arith.constant 0 : index
    %c0_27 = arith.constant 0 : index
    %c0_28 = arith.constant 0 : index
    %29 = vector.load %arg5[%c0_25, %c0_26, %c0_27, %c0_28] : memref<1x8x128x128xbf16, #tpu.memory_space<vmem>>, vector<1x1x128x128xbf16>
    %30 = vector.shape_cast %29 : vector<1x1x128x128xbf16> to vector<128x128xbf16>
    %cst_29 = arith.constant dense<0.000000e+00> : vector<128x128xf32>
    %31 = tpu.matmul %28, %30, %cst_29 {dimension_numbers = #tpu.dot_dimension_numbers<[1], [0], [0], [1], [0, 0, 1, 1], [], []>} : vector<128x128xbf16>, vector<128x128xbf16>, vector<128x128xf32> -> vector<128x128xf32>
    %cst_30 = arith.constant 0.000000e+00 : f32
    %32 = vector.broadcast %cst_30 : f32 to vector<128x128xf32>
    %33 = arith.maximumf %31, %32 : vector<128x128xf32>
    %34 = arith.truncf %33 : vector<128x128xf32> to vector<128x128xbf16>
    %c0_31 = arith.constant 0 : index
    %c0_32 = arith.constant 0 : index
    %c0_33 = arith.constant 0 : index
    %35 = vector.load %arg6[%c0_31, %c0_32, %c0_33] : memref<1x128x128xbf16, #tpu.memory_space<vmem>>, vector<1x128x128xbf16>
    %36 = vector.shape_cast %35 : vector<1x128x128xbf16> to vector<128x128xbf16>
    %37 = vector.shape_cast %34 : vector<128x128xbf16> to vector<1x128x128xbf16>
    tpu.vector_store %arg6[%c0_31, %c0_32, %c0_33], %37 {strides = array<i32>} : memref<1x128x128xbf16, #tpu.memory_space<vmem>>, vector<1x128x128xbf16>,
    %c0_34 = arith.constant 0 : index
    %c0_35 = arith.constant 0 : index
    %c0_36 = arith.constant 0 : index
    %38 = vector.load %arg6[%c0_34, %c0_35, %c0_36] : memref<1x128x128xbf16, #tpu.memory_space<vmem>>, vector<1x128x128xbf16>
    %39 = vector.shape_cast %38 : vector<1x128x128xbf16> to vector<128x128xbf16>
    %c0_37 = arith.constant 0 : index
    %c0_38 = arith.constant 0 : index
    %c0_39 = arith.constant 0 : index
    %40 = vector.load %arg2[%c0_37, %c0_38, %c0_39] : memref<1x128x128xbf16, #tpu.memory_space<vmem>>, vector<1x128x128xbf16>
    %41 = vector.shape_cast %40 : vector<1x128x128xbf16> to vector<128x128xbf16>
    %cst_40 = arith.constant dense<0.000000e+00> : vector<128x128xf32>
    %42 = tpu.matmul %41, %39, %cst_40 {dimension_numbers = #tpu.dot_dimension_numbers<[1], [0], [0], [1], [0, 0, 1, 1], [], []>} : vector<128x128xbf16>, vector<128x128xbf16>, vector<128x128xf32> -> vector<128x128xf32>
    %c0_41 = arith.constant 0 : index
    %c0_42 = arith.constant 0 : index
    %43 = vector.load %arg7[%c0_41, %c0_42] : memref<128x128xf32, #tpu.memory_space<vmem>>, vector<128x128xf32>
    %44 = arith.addf %42, %43 : vector<128x128xf32>
    %45 = arith.truncf %44 : vector<128x128xf32> to vector<128x128xbf16>
    %c0_43 = arith.constant 0 : index
    %c1 = arith.constant 1 : index
    %c0_44 = arith.constant 0 : index
    %c0_45 = arith.constant 0 : index
    %46 = vector.load %arg5[%c0_43, %c1, %c0_44, %c0_45] : memref<1x8x128x128xbf16, #tpu.memory_space<vmem>>, vector<1x1x128x128xbf16>
    %47 = vector.shape_cast %46 : vector<1x1x128x128xbf16> to vector<128x128xbf16>
    %cst_46 = arith.constant dense<0.000000e+00> : vector<128x128xf32>
    %48 = tpu.matmul %45, %47, %cst_46 {dimension_numbers = #tpu.dot_dimension_numbers<[1], [0], [0], [1], [0, 0, 1, 1], [], []>} : vector<128x128xbf16>, vector<128x128xbf16>, vector<128x128xf32> -> vector<128x128xf32>
    %cst_47 = arith.constant 0.000000e+00 : f32
    %49 = vector.broadcast %cst_47 : f32 to vector<128x128xf32>
    %50 = arith.maximumf %48, %49 : vector<128x128xf32>
    %51 = arith.truncf %50 : vector<128x128xf32> to vector<128x128xbf16>
    %c0_48 = arith.constant 0 : index
    %c0_49 = arith.constant 0 : index
    %c0_50 = arith.constant 0 : index
    %52 = vector.load %arg6[%c0_48, %c0_49, %c0_50] : memref<1x128x128xbf16, #tpu.memory_space<vmem>>, vector<1x128x128xbf16>
    %53 = vector.shape_cast %52 : vector<1x128x128xbf16> to vector<128x128xbf16>
    %54 = vector.shape_cast %51 : vector<128x128xbf16> to vector<1x128x128xbf16>
    tpu.vector_store %arg6[%c0_48, %c0_49, %c0_50], %54 {strides = array<i32>} : memref<1x128x128xbf16, #tpu.memory_space<vmem>>, vector<1x128x128xbf16>,
    %c0_51 = arith.constant 0 : index
    %c0_52 = arith.constant 0 : index
    %c0_53 = arith.constant 0 : index
    %55 = vector.load %arg6[%c0_51, %c0_52, %c0_53] : memref<1x128x128xbf16, #tpu.memory_space<vmem>>, vector<1x128x128xbf16>
    %56 = vector.shape_cast %55 : vector<1x128x128xbf16> to vector<128x128xbf16>
    %c0_54 = arith.constant 0 : index
    %c0_55 = arith.constant 0 : index
    %c0_56 = arith.constant 0 : index
    %57 = vector.load %arg2[%c0_54, %c0_55, %c0_56] : memref<1x128x128xbf16, #tpu.memory_space<vmem>>, vector<1x128x128xbf16>
    %58 = vector.shape_cast %57 : vector<1x128x128xbf16> to vector<128x128xbf16>
    %cst_57 = arith.constant dense<0.000000e+00> : vector<128x128xf32>
    %59 = tpu.matmul %58, %56, %cst_57 {dimension_numbers = #tpu.dot_dimension_numbers<[1], [0], [0], [1], [0, 0, 1, 1], [], []>} : vector<128x128xbf16>, vector<128x128xbf16>, vector<128x128xf32> -> vector<128x128xf32>
    %c0_58 = arith.constant 0 : index
    %c0_59 = arith.constant 0 : index
    %60 = vector.load %arg7[%c0_58, %c0_59] : memref<128x128xf32, #tpu.memory_space<vmem>>, vector<128x128xf32>
    %61 = arith.addf %59, %60 : vector<128x128xf32>
    %62 = arith.truncf %61 : vector<128x128xf32> to vector<128x128xbf16>
    %c0_60 = arith.constant 0 : index
    %c2 = arith.constant 2 : index
    %c0_61 = arith.constant 0 : index
    %c0_62 = arith.constant 0 : index
    %63 = vector.load %arg5[%c0_60, %c2, %c0_61, %c0_62] : memref<1x8x128x128xbf16, #tpu.memory_space<vmem>>, vector<1x1x128x128xbf16>
    %64 = vector.shape_cast %63 : vector<1x1x128x128xbf16> to vector<128x128xbf16>
    %cst_63 = arith.constant dense<0.000000e+00> : vector<128x128xf32>
    %65 = tpu.matmul %62, %64, %cst_63 {dimension_numbers = #tpu.dot_dimension_numbers<[1], [0], [0], [1], [0, 0, 1, 1], [], []>} : vector<128x128xbf16>, vector<128x128xbf16>, vector<128x128xf32> -> vector<128x128xf32>
    %cst_64 = arith.constant 0.000000e+00 : f32
    %66 = vector.broadcast %cst_64 : f32 to vector<128x128xf32>
    %67 = arith.maximumf %65, %66 : vector<128x128xf32>
    %68 = arith.truncf %67 : vector<128x128xf32> to vector<128x128xbf16>
    %c0_65 = arith.constant 0 : index
    %c0_66 = arith.constant 0 : index
    %c0_67 = arith.constant 0 : index
    %69 = vector.load %arg6[%c0_65, %c0_66, %c0_67] : memref<1x128x128xbf16, #tpu.memory_space<vmem>>, vector<1x128x128xbf16>
    %70 = vector.shape_cast %69 : vector<1x128x128xbf16> to vector<128x128xbf16>
    %71 = vector.shape_cast %68 : vector<128x128xbf16> to vector<1x128x128xbf16>
    tpu.vector_store %arg6[%c0_65, %c0_66, %c0_67], %71 {strides = array<i32>} : memref<1x128x128xbf16, #tpu.memory_space<vmem>>, vector<1x128x128xbf16>,
    %c0_68 = arith.constant 0 : index
    %c0_69 = arith.constant 0 : index
    %c0_70 = arith.constant 0 : index
    %72 = vector.load %arg6[%c0_68, %c0_69, %c0_70] : memref<1x128x128xbf16, #tpu.memory_space<vmem>>, vector<1x128x128xbf16>
    %73 = vector.shape_cast %72 : vector<1x128x128xbf16> to vector<128x128xbf16>
    %c0_71 = arith.constant 0 : index
    %c0_72 = arith.constant 0 : index
    %c0_73 = arith.constant 0 : index
    %74 = vector.load %arg2[%c0_71, %c0_72, %c0_73] : memref<1x128x128xbf16, #tpu.memory_space<vmem>>, vector<1x128x128xbf16>
    %75 = vector.shape_cast %74 : vector<1x128x128xbf16> to vector<128x128xbf16>
    %cst_74 = arith.constant dense<0.000000e+00> : vector<128x128xf32>
    %76 = tpu.matmul %75, %73, %cst_74 {dimension_numbers = #tpu.dot_dimension_numbers<[1], [0], [0], [1], [0, 0, 1, 1], [], []>} : vector<128x128xbf16>, vector<128x128xbf16>, vector<128x128xf32> -> vector<128x128xf32>
    %c0_75 = arith.constant 0 : index
    %c0_76 = arith.constant 0 : index
    %77 = vector.load %arg7[%c0_75, %c0_76] : memref<128x128xf32, #tpu.memory_space<vmem>>, vector<128x128xf32>
    %78 = arith.addf %76, %77 : vector<128x128xf32>
    %79 = arith.truncf %78 : vector<128x128xf32> to vector<128x128xbf16>
    %c0_77 = arith.constant 0 : index
    %c3 = arith.constant 3 : index
    %c0_78 = arith.constant 0 : index
    %c0_79 = arith.constant 0 : index
    %80 = vector.load %arg5[%c0_77, %c3, %c0_78, %c0_79] : memref<1x8x128x128xbf16, #tpu.memory_space<vmem>>, vector<1x1x128x128xbf16>
    %81 = vector.shape_cast %80 : vector<1x1x128x128xbf16> to vector<128x128xbf16>
    %cst_80 = arith.constant dense<0.000000e+00> : vector<128x128xf32>
    %82 = tpu.matmul %79, %81, %cst_80 {dimension_numbers = #tpu.dot_dimension_numbers<[1], [0], [0], [1], [0, 0, 1, 1], [], []>} : vector<128x128xbf16>, vector<128x128xbf16>, vector<128x128xf32> -> vector<128x128xf32>
    %cst_81 = arith.constant 0.000000e+00 : f32
    %83 = vector.broadcast %cst_81 : f32 to vector<128x128xf32>
    %84 = arith.maximumf %82, %83 : vector<128x128xf32>
    %85 = arith.truncf %84 : vector<128x128xf32> to vector<128x128xbf16>
    %c0_82 = arith.constant 0 : index
    %c0_83 = arith.constant 0 : index
    %c0_84 = arith.constant 0 : index
    %86 = vector.load %arg6[%c0_82, %c0_83, %c0_84] : memref<1x128x128xbf16, #tpu.memory_space<vmem>>, vector<1x128x128xbf16>
    %87 = vector.shape_cast %86 : vector<1x128x128xbf16> to vector<128x128xbf16>
    %88 = vector.shape_cast %85 : vector<128x128xbf16> to vector<1x128x128xbf16>
    tpu.vector_store %arg6[%c0_82, %c0_83, %c0_84], %88 {strides = array<i32>} : memref<1x128x128xbf16, #tpu.memory_space<vmem>>, vector<1x128x128xbf16>,
    %c0_85 = arith.constant 0 : index
    %c0_86 = arith.constant 0 : index
    %c0_87 = arith.constant 0 : index
    %89 = vector.load %arg6[%c0_85, %c0_86, %c0_87] : memref<1x128x128xbf16, #tpu.memory_space<vmem>>, vector<1x128x128xbf16>
    %90 = vector.shape_cast %89 : vector<1x128x128xbf16> to vector<128x128xbf16>
    %c0_88 = arith.constant 0 : index
    %c0_89 = arith.constant 0 : index
    %c0_90 = arith.constant 0 : index
    %91 = vector.load %arg2[%c0_88, %c0_89, %c0_90] : memref<1x128x128xbf16, #tpu.memory_space<vmem>>, vector<1x128x128xbf16>
    %92 = vector.shape_cast %91 : vector<1x128x128xbf16> to vector<128x128xbf16>
    %cst_91 = arith.constant dense<0.000000e+00> : vector<128x128xf32>
    %93 = tpu.matmul %92, %90, %cst_91 {dimension_numbers = #tpu.dot_dimension_numbers<[1], [0], [0], [1], [0, 0, 1, 1], [], []>} : vector<128x128xbf16>, vector<128x128xbf16>, vector<128x128xf32> -> vector<128x128xf32>
    %c0_92 = arith.constant 0 : index
    %c0_93 = arith.constant 0 : index
    %94 = vector.load %arg7[%c0_92, %c0_93] : memref<128x128xf32, #tpu.memory_space<vmem>>, vector<128x128xf32>
    %95 = arith.addf %93, %94 : vector<128x128xf32>
    %96 = arith.truncf %95 : vector<128x128xf32> to vector<128x128xbf16>
    %c0_94 = arith.constant 0 : index
    %c4 = arith.constant 4 : index
    %c0_95 = arith.constant 0 : index
    %c0_96 = arith.constant 0 : index
    %97 = vector.load %arg5[%c0_94, %c4, %c0_95, %c0_96] : memref<1x8x128x128xbf16, #tpu.memory_space<vmem>>, vector<1x1x128x128xbf16>
    %98 = vector.shape_cast %97 : vector<1x1x128x128xbf16> to vector<128x128xbf16>
    %cst_97 = arith.constant dense<0.000000e+00> : vector<128x128xf32>
    %99 = tpu.matmul %96, %98, %cst_97 {dimension_numbers = #tpu.dot_dimension_numbers<[1], [0], [0], [1], [0, 0, 1, 1], [], []>} : vector<128x128xbf16>, vector<128x128xbf16>, vector<128x128xf32> -> vector<128x128xf32>
    %cst_98 = arith.constant 0.000000e+00 : f32
    %100 = vector.broadcast %cst_98 : f32 to vector<128x128xf32>
    %101 = arith.maximumf %99, %100 : vector<128x128xf32>
    %102 = arith.truncf %101 : vector<128x128xf32> to vector<128x128xbf16>
    %c0_99 = arith.constant 0 : index
    %c0_100 = arith.constant 0 : index
    %c0_101 = arith.constant 0 : index
    %103 = vector.load %arg6[%c0_99, %c0_100, %c0_101] : memref<1x128x128xbf16, #tpu.memory_space<vmem>>, vector<1x128x128xbf16>
    %104 = vector.shape_cast %103 : vector<1x128x128xbf16> to vector<128x128xbf16>
    %105 = vector.shape_cast %102 : vector<128x128xbf16> to vector<1x128x128xbf16>
    tpu.vector_store %arg6[%c0_99, %c0_100, %c0_101], %105 {strides = array<i32>} : memref<1x128x128xbf16, #tpu.memory_space<vmem>>, vector<1x128x128xbf16>,
    %c0_102 = arith.constant 0 : index
    %c0_103 = arith.constant 0 : index
    %c0_104 = arith.constant 0 : index
    %106 = vector.load %arg6[%c0_102, %c0_103, %c0_104] : memref<1x128x128xbf16, #tpu.memory_space<vmem>>, vector<1x128x128xbf16>
    %107 = vector.shape_cast %106 : vector<1x128x128xbf16> to vector<128x128xbf16>
    %c0_105 = arith.constant 0 : index
    %c0_106 = arith.constant 0 : index
    %c0_107 = arith.constant 0 : index
    %108 = vector.load %arg2[%c0_105, %c0_106, %c0_107] : memref<1x128x128xbf16, #tpu.memory_space<vmem>>, vector<1x128x128xbf16>
    %109 = vector.shape_cast %108 : vector<1x128x128xbf16> to vector<128x128xbf16>
    %cst_108 = arith.constant dense<0.000000e+00> : vector<128x128xf32>
    %110 = tpu.matmul %109, %107, %cst_108 {dimension_numbers = #tpu.dot_dimension_numbers<[1], [0], [0], [1], [0, 0, 1, 1], [], []>} : vector<128x128xbf16>, vector<128x128xbf16>, vector<128x128xf32> -> vector<128x128xf32>
    %c0_109 = arith.constant 0 : index
    %c0_110 = arith.constant 0 : index
    %111 = vector.load %arg7[%c0_109, %c0_110] : memref<128x128xf32, #tpu.memory_space<vmem>>, vector<128x128xf32>
    %112 = arith.addf %110, %111 : vector<128x128xf32>
    %113 = arith.truncf %112 : vector<128x128xf32> to vector<128x128xbf16>
    %c0_111 = arith.constant 0 : index
    %c5 = arith.constant 5 : index
    %c0_112 = arith.constant 0 : index
    %c0_113 = arith.constant 0 : index
    %114 = vector.load %arg5[%c0_111, %c5, %c0_112, %c0_113] : memref<1x8x128x128xbf16, #tpu.memory_space<vmem>>, vector<1x1x128x128xbf16>
    %115 = vector.shape_cast %114 : vector<1x1x128x128xbf16> to vector<128x128xbf16>
    %cst_114 = arith.constant dense<0.000000e+00> : vector<128x128xf32>
    %116 = tpu.matmul %113, %115, %cst_114 {dimension_numbers = #tpu.dot_dimension_numbers<[1], [0], [0], [1], [0, 0, 1, 1], [], []>} : vector<128x128xbf16>, vector<128x128xbf16>, vector<128x128xf32> -> vector<128x128xf32>
    %cst_115 = arith.constant 0.000000e+00 : f32
    %117 = vector.broadcast %cst_115 : f32 to vector<128x128xf32>
    %118 = arith.maximumf %116, %117 : vector<128x128xf32>
    %119 = arith.truncf %118 : vector<128x128xf32> to vector<128x128xbf16>
    %c0_116 = arith.constant 0 : index
    %c0_117 = arith.constant 0 : index
    %c0_118 = arith.constant 0 : index
    %120 = vector.load %arg6[%c0_116, %c0_117, %c0_118] : memref<1x128x128xbf16, #tpu.memory_space<vmem>>, vector<1x128x128xbf16>
    %121 = vector.shape_cast %120 : vector<1x128x128xbf16> to vector<128x128xbf16>
    %122 = vector.shape_cast %119 : vector<128x128xbf16> to vector<1x128x128xbf16>
    tpu.vector_store %arg6[%c0_116, %c0_117, %c0_118], %122 {strides = array<i32>} : memref<1x128x128xbf16, #tpu.memory_space<vmem>>, vector<1x128x128xbf16>,
    %c0_119 = arith.constant 0 : index
    %c0_120 = arith.constant 0 : index
    %c0_121 = arith.constant 0 : index
    %123 = vector.load %arg6[%c0_119, %c0_120, %c0_121] : memref<1x128x128xbf16, #tpu.memory_space<vmem>>, vector<1x128x128xbf16>
    %124 = vector.shape_cast %123 : vector<1x128x128xbf16> to vector<128x128xbf16>
    %c0_122 = arith.constant 0 : index
    %c0_123 = arith.constant 0 : index
    %c0_124 = arith.constant 0 : index
    %125 = vector.load %arg2[%c0_122, %c0_123, %c0_124] : memref<1x128x128xbf16, #tpu.memory_space<vmem>>, vector<1x128x128xbf16>
    %126 = vector.shape_cast %125 : vector<1x128x128xbf16> to vector<128x128xbf16>
    %cst_125 = arith.constant dense<0.000000e+00> : vector<128x128xf32>
    %127 = tpu.matmul %126, %124, %cst_125 {dimension_numbers = #tpu.dot_dimension_numbers<[1], [0], [0], [1], [0, 0, 1, 1], [], []>} : vector<128x128xbf16>, vector<128x128xbf16>, vector<128x128xf32> -> vector<128x128xf32>
    %c0_126 = arith.constant 0 : index
    %c0_127 = arith.constant 0 : index
    %128 = vector.load %arg7[%c0_126, %c0_127] : memref<128x128xf32, #tpu.memory_space<vmem>>, vector<128x128xf32>
    %129 = arith.addf %127, %128 : vector<128x128xf32>
    %130 = arith.truncf %129 : vector<128x128xf32> to vector<128x128xbf16>
    %c0_128 = arith.constant 0 : index
    %c6 = arith.constant 6 : index
    %c0_129 = arith.constant 0 : index
    %c0_130 = arith.constant 0 : index
    %131 = vector.load %arg5[%c0_128, %c6, %c0_129, %c0_130] : memref<1x8x128x128xbf16, #tpu.memory_space<vmem>>, vector<1x1x128x128xbf16>
    %132 = vector.shape_cast %131 : vector<1x1x128x128xbf16> to vector<128x128xbf16>
    %cst_131 = arith.constant dense<0.000000e+00> : vector<128x128xf32>
    %133 = tpu.matmul %130, %132, %cst_131 {dimension_numbers = #tpu.dot_dimension_numbers<[1], [0], [0], [1], [0, 0, 1, 1], [], []>} : vector<128x128xbf16>, vector<128x128xbf16>, vector<128x128xf32> -> vector<128x128xf32>
    %cst_132 = arith.constant 0.000000e+00 : f32
    %134 = vector.broadcast %cst_132 : f32 to vector<128x128xf32>
    %135 = arith.maximumf %133, %134 : vector<128x128xf32>
    %136 = arith.truncf %135 : vector<128x128xf32> to vector<128x128xbf16>
    %c0_133 = arith.constant 0 : index
    %c0_134 = arith.constant 0 : index
    %c0_135 = arith.constant 0 : index
    %137 = vector.load %arg6[%c0_133, %c0_134, %c0_135] : memref<1x128x128xbf16, #tpu.memory_space<vmem>>, vector<1x128x128xbf16>
    %138 = vector.shape_cast %137 : vector<1x128x128xbf16> to vector<128x128xbf16>
    %139 = vector.shape_cast %136 : vector<128x128xbf16> to vector<1x128x128xbf16>
    tpu.vector_store %arg6[%c0_133, %c0_134, %c0_135], %139 {strides = array<i32>} : memref<1x128x128xbf16, #tpu.memory_space<vmem>>, vector<1x128x128xbf16>,
    %c0_136 = arith.constant 0 : index
    %c0_137 = arith.constant 0 : index
    %c0_138 = arith.constant 0 : index
    %140 = vector.load %arg6[%c0_136, %c0_137, %c0_138] : memref<1x128x128xbf16, #tpu.memory_space<vmem>>, vector<1x128x128xbf16>
    %141 = vector.shape_cast %140 : vector<1x128x128xbf16> to vector<128x128xbf16>
    %c0_139 = arith.constant 0 : index
    %c0_140 = arith.constant 0 : index
    %c0_141 = arith.constant 0 : index
    %142 = vector.load %arg2[%c0_139, %c0_140, %c0_141] : memref<1x128x128xbf16, #tpu.memory_space<vmem>>, vector<1x128x128xbf16>
    %143 = vector.shape_cast %142 : vector<1x128x128xbf16> to vector<128x128xbf16>
    %cst_142 = arith.constant dense<0.000000e+00> : vector<128x128xf32>
    %144 = tpu.matmul %143, %141, %cst_142 {dimension_numbers = #tpu.dot_dimension_numbers<[1], [0], [0], [1], [0, 0, 1, 1], [], []>} : vector<128x128xbf16>, vector<128x128xbf16>, vector<128x128xf32> -> vector<128x128xf32>
    %c0_143 = arith.constant 0 : index
    %c0_144 = arith.constant 0 : index
    %145 = vector.load %arg7[%c0_143, %c0_144] : memref<128x128xf32, #tpu.memory_space<vmem>>, vector<128x128xf32>
    %146 = arith.addf %144, %145 : vector<128x128xf32>
    %147 = arith.truncf %146 : vector<128x128xf32> to vector<128x128xbf16>
    %c0_145 = arith.constant 0 : index
    %c7 = arith.constant 7 : index
    %c0_146 = arith.constant 0 : index
    %c0_147 = arith.constant 0 : index
    %148 = vector.load %arg5[%c0_145, %c7, %c0_146, %c0_147] : memref<1x8x128x128xbf16, #tpu.memory_space<vmem>>, vector<1x1x128x128xbf16>
    %149 = vector.shape_cast %148 : vector<1x1x128x128xbf16> to vector<128x128xbf16>
    %cst_148 = arith.constant dense<0.000000e+00> : vector<128x128xf32>
    %150 = tpu.matmul %147, %149, %cst_148 {dimension_numbers = #tpu.dot_dimension_numbers<[1], [0], [0], [1], [0, 0, 1, 1], [], []>} : vector<128x128xbf16>, vector<128x128xbf16>, vector<128x128xf32> -> vector<128x128xf32>
    %cst_149 = arith.constant 0.000000e+00 : f32
    %151 = vector.broadcast %cst_149 : f32 to vector<128x128xf32>
    %152 = arith.maximumf %150, %151 : vector<128x128xf32>
    %153 = arith.truncf %152 : vector<128x128xf32> to vector<128x128xbf16>
    %c0_150 = arith.constant 0 : index
    %c0_151 = arith.constant 0 : index
    %c0_152 = arith.constant 0 : index
    %154 = vector.load %arg6[%c0_150, %c0_151, %c0_152] : memref<1x128x128xbf16, #tpu.memory_space<vmem>>, vector<1x128x128xbf16>
    %155 = vector.shape_cast %154 : vector<1x128x128xbf16> to vector<128x128xbf16>
    %156 = vector.shape_cast %153 : vector<128x128xbf16> to vector<1x128x128xbf16>
    tpu.vector_store %arg6[%c0_150, %c0_151, %c0_152], %156 {strides = array<i32>} : memref<1x128x128xbf16, #tpu.memory_space<vmem>>, vector<1x128x128xbf16>,
    return
  }
  func.func @transform_0(%arg0: i32) -> (i32, i32, i32) {
    %c0_i32 = arith.constant 0 : i32
    %c0_i32_0 = arith.constant 0 : i32
    %c0_i32_1 = arith.constant 0 : i32
    return %arg0, %c0_i32, %c0_i32_0 : i32, i32, i32
  }
  func.func @transform_1(%arg0: i32) -> (i32, i32, i32) {
    %c0_i32 = arith.constant 0 : i32
    %c0_i32_0 = arith.constant 0 : i32
    %c0_i32_1 = arith.constant 0 : i32
    return %arg0, %c0_i32, %c0_i32_0 : i32, i32, i32
  }
  func.func @transform_2(%arg0: i32) -> (i32, i32, i32) {
    %c0_i32 = arith.constant 0 : i32
    %c0_i32_0 = arith.constant 0 : i32
    %c0_i32_1 = arith.constant 0 : i32
    return %arg0, %c0_i32, %c0_i32_0 : i32, i32, i32
  }
  func.func @transform_3(%arg0: i32) -> (i32, i32, i32) {
    %c0_i32 = arith.constant 0 : i32
    %c0_i32_0 = arith.constant 0 : i32
    %c0_i32_1 = arith.constant 0 : i32
    return %arg0, %c0_i32, %c0_i32_0 : i32, i32, i32
  }
  func.func @transform_4(%arg0: i32) -> (i32, i32, i32, i32) {
    %c0_i32 = arith.constant 0 : i32
    %c0_i32_0 = arith.constant 0 : i32
    %c0_i32_1 = arith.constant 0 : i32
    %c0_i32_2 = arith.constant 0 : i32
    return %arg0, %c0_i32, %c0_i32_0, %c0_i32_1 : i32, i32, i32, i32
  }
  func.func @transform_5(%arg0: i32) -> (i32, i32, i32) {
    %c0_i32 = arith.constant 0 : i32
    %c0_i32_0 = arith.constant 0 : i32
    %c0_i32_1 = arith.constant 0 : i32
    return %arg0, %c0_i32, %c0_i32_0 : i32, i32, i32
  }
}

</mosaic_0001>

<bundles_post_ra>
// kernel: tpu_custom_call.1
= control target key start
LH: loop header
LB: loop body
LE: loop exit
PB: predicated region body
PF: predicated region fallthrough
CT: control target
= control target key end

     0   :  { %s8253_s0 = inlined_call_operand.hbm [shape: bf16[2,128,128], index: 0, kind: input, shape index: {}]   ;;  %s8254_s1 = inlined_call_operand.hbm [shape: bf16[2,128,128], index: 1, kind: input, shape index: {}]   ;;  %s8255_s2 = inlined_call_operand.hbm [shape: bf16[2,128,128], index: 2, kind: input, shape index: {}]   ;;  %s8256_s3 = inlined_call_operand.vmem [shape: f32[2,1,128], index: 3, kind: input, shape index: {}]   ;;  %s8257_s4 = inlined_call_operand.hbm [shape: bf16[2,8,128,128], index: 4, kind: input, shape index: {}]   ;;  %s8258_s5 = inlined_call_operand.hbm [shape: bf16[2,128,128], index: 5, kind: output, shape index: {}]  }
   0x1   :  { %8266 = sst [smem:[#allocation18_spill]] %s8253_s0 }
   0x2   :  { %8267 = sst [smem:[#allocation19_spill]] %s8254_s1 }
   0x3   :  { %10 = vsyncpa [#allocation4], 0 }
   0x4   :  { %12 = vsyncpa [#allocation4 + $0x1], 0 }
   0x5   :  { %13 = vsyncpa [#allocation7], 0 }
   0x6   :  { %15 = vsyncpa [#allocation7 + $0x1], 0 }
   0x7   :  { %16 = vsyncpa [#allocation10], 0 }
   0x8   :  { %18 = vsyncpa [#allocation10 + $0x1], 0 }
   0x9   :  { %19 = vsyncpa [#allocation5], 0 }
   0xa   :  { %21 = vsyncpa [#allocation5 + $0x1], 0  ;;  %s7387_s18 = smov 0   ;;  %s7389_s19 = smov 0  }
   0xb   :  { %s7391_s20 = smov 0   ;;  %s7393_s21 = smov 0  }
   0xc LB: > { %8268 = sst [smem:[#allocation16_spill]] %s7342_s20  ;;  %s7408_s22 = sadd.s32 4294967295, %s7346_s21   ;;  %s7346_s21 = sphi %s7393_s21, %s8290_s21   ;;  %s7342_s20 = sphi %s7391_s20, %s8287_s20   ;;  %s7338_s19 = sphi %s7389_s19, %s8289_s19   ;;  %s7334_s18 = sphi %s7387_s18, %s8288_s18  }
   0xd   : > { %s4984_s23 = sadd.s32 4294967294, %s7346_s21   ;;  %s7412_s24 = sadd.s32 1, %s7346_s21  }
   0xe   : > { %s34_s25 = sadd.s32 1, %s7342_s20  ;;  %s31_s26 = ssub.s32 %s7346_s21, %s7412_s24 }
   0xf   : > { %p41_p0 = scmp.ne.s32.totalorder %s7342_s20, %s7338_s19  ;;  %p32_p1 = scmp.eq.s32.totalorder %s31_s26, 0 }
  0x10   : > { %p42_p2 = scmp.eq.s32.totalorder %s7346_s21, 0  ;;  %p47_p3 = scmp.ne.s32.totalorder %s7338_s19, %s7334_s18 }
  0x11   : > { %p48_p4 = scmp.eq.s32.totalorder %s7408_s22, 0  ;;  %p175_p7 = scmp.eq.s32.totalorder %s7408_s22, 1 }
  0x12   : > { %s7424_s27 = scalar_select %p32_p1, %s7342_s20, %s34_s25  }
  0x13   : > { %p43_p5 = por %p42_p2, %p41_p0  ;;  %p7426_p6 = por %p48_p4, %p47_p3 }
  0x14   : > { %8269 = sst [smem:[#allocation17_spill]] %s7424_s27  ;;  %p181_p8 = scmp.eq.s32.totalorder %s4984_s23, 1 }
  0x15   : > { %s8270_s28 = scalar_select %p7426_p6, 1, 0 }
  0x16   : > { %p6906_p10 = scmp.lt.s32.totalorder %s7346_s21, 2  ;;  %p7433_p11 = por %p175_p7, %p41_p0 }
  0x17   : > { %p7437_p12 = por %p181_p8, %p47_p3  ;;  %s7442_s6 = sand.u32 1, %s7342_s20  }
  0x18   : > { %s8271_s29 = scalar_select %p7433_p11, 1, 0 }
  0x19   : > { %s8272_s30 = scalar_select %p7437_p12, 1, 0 }
  0x1a   : > { %s7445_s7 = sshll.u32 %s7346_s21, 10  ;;  %s7448_s8 = sshll.u32 %s7442_s6, 6 }
  0x1b   : > { %p7450_p13 = pnand %p6906_p10, %p43_p5  ;;  %s222_s10 = sand.u32 1, %s7346_s21  }
  0x1c   : > { %s8274_s1 = sld [smem:[#allocation19_spill]]  ;;  %s226_s14 = scalar_lea.vmem [#allocation6], %s7448_s8 }
  0x1d   : > { %s233_s15 = sshll.u32 %s226_s14, 4  ;;  %s7465_s16 = scalar_lea.sflag [#allocation7], %s222_s10  ;;  %s7462_s15 = int_to_ptr.vmem [resolvable:$true] %s233_s15 }
  0x1e   : > { %p7471_p2 = pneg %p7450_p13 }
  0x22   : > { %s7459_s13 = scalar_lea.hbm %s8274_s1, %s7445_s7  ;;  %s7157_s11 = scalar_lea.hbm %s8274_s1, 2048 }
  0x23   : > { %s7152_s17 = scalar_lea.hbm %s7459_s13, 1024  ;;  %p7158_p5 = scmp.lt.u32.totalorder %s7459_s13, %s8274_s1 }
  0x24   : > { %p7153_p1 = scmp.ne.s32.totalorder %s7459_s13, %s7152_s17  ;;  %p7159_p7 = scmp.lt.u32.totalorder %s7157_s11, %s7152_s17 }
  0x25   : > { %p7161_p10 = scmp.lt.u32.totalorder %s7152_s17, %s7459_s13 }
  0x26   : > { %p7155_p3 = pnand %p7471_p2, %p7153_p1  ;;  %p7160_p8 = por %p7159_p7, %p7158_p5 }
  0x28   : > { %p7156_p4 = pneg %p7155_p3  ;;  %p7162_p9 = por %p7161_p10, %p7160_p8 }
  0x2a   : > { %p7163_p0 = pnand %p7162_p9, %p7156_p4 }
  0x2c   : > { %7166 = shalt.err (!%p7163_p0)
}
  0x2d   : > { %s7167_s10 = scalar_lea.vmem %s7462_s15, 1024  ;;  %s7348_s25 = smov [#allocation6]  }
  0x2e   : > { %p7168_p1 = scmp.ne.s32.totalorder %s7462_s15, %s7167_s10  ;;  %s7172_s26 = sshll.u32 %s7348_s25, 4  ;;  %s7173_s26 = int_to_ptr.vmem [resolvable:$false] %s7172_s26 }
  0x2f   : > { %s7174_s12 = scalar_lea.vmem %s7173_s26, 2048  ;;  %p7175_p11 = scmp.lt.s32.totalorder %s7462_s15, %s7173_s26 }
  0x30   : > { %p7170_p3 = pnand %p7168_p1, %p7471_p2  ;;  %p7176_p6 = scmp.lt.s32.totalorder %s7174_s12, %s7167_s10 }
  0x32   : > { %p7171_p12 = pneg %p7170_p3  ;;  %p7177_p5 = por %p7176_p6, %p7175_p11 }
  0x34   : > { %p7178_p7 = pnand %p7177_p5, %p7171_p12 }
  0x36   : > { %7181 = shalt.err (!%p7178_p7)
}
  0x37   : > { %s8261_s17 = smov 64   ;;  %s8263_s11 = smov 4  }
  0x38   : > { %6895 = dma.hbm_to_vmem [thread:$0]  (!%p7450_p13), %s7459_s13, 1024, %s7462_s15, %s7465_s16, %s8261_s17, %s8261_s17, %s8263_s11  }
  0x39   : > { %p289_p6 = scmp.lt.s32.totalorder %s7346_s21, 3  ;;  %s8276_s0 = sld [smem:[#allocation18_spill]] }
  0x3a   : > { %p8277_p9 = scmp.ge.s32.totalorder %s7346_s21, 1  ;;  %s205_s12 = scalar_lea.vmem [#allocation3], %s7448_s8 }
  0x3b   : > { %s212_s1 = sshll.u32 %s205_s12, 4  ;;  %s202_s13 = scalar_lea.sflag [#allocation4], %s7442_s6  ;;  %s7512_s1 = int_to_ptr.vmem [resolvable:$true] %s212_s1 }
  0x3c   : > { %p7507_p11 = pnand %p8277_p9, %p289_p6 }
  0x3e   : > { %s8278_s26 = scalar_select %p7507_p11, 1, 0 }
  0x3f   : > { %s7503_s25 = scalar_lea.hbm %s8276_s0, %s7445_s7  ;;  %s7187_s17 = scalar_lea.hbm %s8276_s0, 2048 }
  0x40   : > { %s7182_s15 = scalar_lea.hbm %s7503_s25, 1024  ;;  %p7188_p8 = scmp.lt.u32.totalorder %s7503_s25, %s8276_s0 }
  0x41   : > { %p7183_p12 = scmp.ne.s32.totalorder %s7503_s25, %s7182_s15  ;;  %p7189_p10 = scmp.lt.u32.totalorder %s7187_s17, %s7182_s15 }
  0x42   : > { %p7191_p3 = scmp.lt.u32.totalorder %s7182_s15, %s7503_s25 }
  0x43   : > { %p7185_p0 = pnand %p7183_p12, %p7471_p2  ;;  %p7190_p1 = por %p7189_p10, %p7188_p8 }
  0x45   : > { %p7186_p4 = pneg %p7185_p0  ;;  %p7192_p5 = por %p7191_p3, %p7190_p1 }
  0x47   : > { %p7193_p7 = pnand %p7192_p5, %p7186_p4 }
  0x49   : > { %7196 = shalt.err (!%p7193_p7)
}
  0x4a   : > { %s7197_s12 = scalar_lea.vmem %s7512_s1, 1024  ;;  %s7351_s14 = smov [#allocation3]  }
  0x4b   : > { %p7198_p6 = scmp.ne.s32.totalorder %s7512_s1, %s7197_s12  ;;  %s7202_s10 = sshll.u32 %s7351_s14, 4  ;;  %s7203_s10 = int_to_ptr.vmem [resolvable:$false] %s7202_s10 }
  0x4c   : > { %s7204_s27 = scalar_lea.vmem %s7203_s10, 2048  ;;  %p7205_p0 = scmp.lt.s32.totalorder %s7512_s1, %s7203_s10 }
  0x4d   : > { %p7200_p9 = pnand %p7198_p6, %p7471_p2  ;;  %p7206_p11 = scmp.lt.s32.totalorder %s7204_s27, %s7197_s12 }
  0x4f   : > { %p7201_p12 = pneg %p7200_p9  ;;  %p7207_p8 = por %p7206_p11, %p7205_p0 }
  0x51   : > { %p7208_p10 = pnand %p7207_p8, %p7201_p12 }
  0x53   : > { %7211 = shalt.err (!%p7208_p10)
}
  0x54   : > { %s8279_s17 = smov 4   ;;  %s8280_s11 = smov 64  }
  0x55   : > { %6892 = dma.hbm_to_vmem [thread:$0]  (!%p7450_p13), %s7503_s25, 1024, %s7512_s1, %s202_s13, %s8280_s11, %s8280_s11, %s8279_s17  }
  0x56   : > { %s7545_s12 = scalar_lea.hbm %s8255_s2, %s7445_s7  ;;  %s247_s10 = scalar_lea.vmem [#allocation8], %s7448_s8 }
  0x57   : > { %s254_s27 = sshll.u32 %s247_s10, 4  ;;  %s7212_s0 = scalar_lea.hbm %s7545_s12, 1024  ;;  %s7548_s27 = int_to_ptr.vmem [resolvable:$true] %s254_s27 }
  0x58   : > { %p7213_p11 = scmp.ne.s32.totalorder %s7545_s12, %s7212_s0  ;;  %s7217_s25 = scalar_lea.hbm %s8255_s2, 2048 }
  0x59   : > { %p7218_p3 = scmp.lt.u32.totalorder %s7545_s12, %s8255_s2  ;;  %p7219_p5 = scmp.lt.u32.totalorder %s7217_s25, %s7212_s0 }
  0x5a   : > { %p7215_p4 = pnand %p7213_p11, %p7471_p2  ;;  %p7221_p6 = scmp.lt.u32.totalorder %s7212_s0, %s7545_s12 }
  0x5b   : > { %p7220_p7 = por %p7219_p5, %p7218_p3 }
  0x5c   : > { %p7216_p1 = pneg %p7215_p4 }
  0x5d   : > { %p7222_p9 = por %p7221_p6, %p7220_p7 }
  0x5f   : > { %p7223_p12 = pnand %p7222_p9, %p7216_p1 }
  0x61   : > { %7226 = shalt.err (!%p7223_p12)
}
  0x62   : > { %s7227_s8 = scalar_lea.vmem %s7548_s27, 1024  ;;  %s7352_s20 = smov [#allocation8]  }
  0x63   : > { %p7228_p0 = scmp.ne.s32.totalorder %s7548_s27, %s7227_s8  ;;  %s7232_s15 = sshll.u32 %s7352_s20, 4  ;;  %s7233_s15 = int_to_ptr.vmem [resolvable:$false] %s7232_s15 }
  0x64   : > { %s7234_s14 = scalar_lea.vmem %s7233_s15, 2048  ;;  %p7235_p11 = scmp.lt.s32.totalorder %s7548_s27, %s7233_s15 }
  0x65   : > { %p7230_p8 = pnand %p7228_p0, %p7471_p2  ;;  %p7236_p4 = scmp.lt.s32.totalorder %s7234_s14, %s7227_s8 }
  0x67   : > { %p7231_p10 = pneg %p7230_p8  ;;  %p7237_p3 = por %p7236_p4, %p7235_p11 }
  0x69   : > { %p7238_p5 = pnand %p7237_p3, %p7231_p10 }
  0x6b   : > { %7241 = shalt.err (!%p7238_p5)
}
  0x6c   : > { %6898 = dma.hbm_to_vmem [thread:$0]  (!%p7450_p13), %s7545_s12, 1024, %s7548_s27, %s7465_s16, %s8280_s11, %s8280_s11, %s8279_s17  }
  0x6d   : > { %s4996_s0 = sshll.u32 %s7442_s6, 9  ;;  %s5478_s10 = sshll.u32 %s7346_s21, 13 }
  0x6e   : > { %s7580_s13 = scalar_lea.hbm %s8257_s4, %s5478_s10  ;;  %s274_s7 = scalar_lea.vmem [#allocation9], %s4996_s0 }
  0x6f   : > { %s281_s8 = sshll.u32 %s274_s7, 4  ;;  %s271_s20 = scalar_lea.sflag [#allocation10], %s7442_s6  ;;  %s7582_s8 = int_to_ptr.vmem [resolvable:$true] %s281_s8 }
  0x70   : > { %s7242_s15 = scalar_lea.hbm %s7580_s13, 8192  ;;  %s7247_s27 = scalar_lea.hbm %s8257_s4, 16384 }
  0x71   : > { %p7243_p1 = scmp.ne.s32.totalorder %s7580_s13, %s7242_s15  ;;  %p7248_p9 = scmp.lt.u32.totalorder %s7580_s13, %s8257_s4 }
  0x72   : > { %p7249_p12 = scmp.lt.u32.totalorder %s7247_s27, %s7242_s15  ;;  %p7251_p8 = scmp.lt.u32.totalorder %s7242_s15, %s7580_s13 }
  0x73   : > { %p7245_p7 = pnand %p7243_p1, %p7471_p2 }
  0x74   : > { %p7250_p0 = por %p7249_p12, %p7248_p9 }
  0x75   : > { %p7246_p6 = pneg %p7245_p7 }
  0x76   : > { %p7252_p10 = por %p7251_p8, %p7250_p0 }
  0x78   : > { %p7253_p11 = pnand %p7252_p10, %p7246_p6 }
  0x7a   : > { %7256 = shalt.err (!%p7253_p11)
}
  0x7b   : > { %s7257_s0 = scalar_lea.vmem %s7582_s8, 8192  ;;  %s7353_s1 = smov [#allocation9]  }
  0x7c   : > { %p7258_p4 = scmp.ne.s32.totalorder %s7582_s8, %s7257_s0  ;;  %s7262_s25 = sshll.u32 %s7353_s1, 4  ;;  %s7263_s25 = int_to_ptr.vmem [resolvable:$false] %s7262_s25 }
  0x7d   : > { %s7264_s7 = scalar_lea.vmem %s7263_s25, 16384  ;;  %p7265_p1 = scmp.lt.s32.totalorder %s7582_s8, %s7263_s25 }
  0x7e   : > { %p7260_p3 = pnand %p7258_p4, %p7471_p2  ;;  %p7266_p7 = scmp.lt.s32.totalorder %s7264_s7, %s7257_s0 }
  0x80   : > { %p7261_p5 = pneg %p7260_p3  ;;  %p7267_p9 = por %p7266_p7, %p7265_p1 }
  0x82   : > { %p7268_p12 = pnand %p7267_p9, %p7261_p5 }
  0x84   : > { %7271 = shalt.err (!%p7268_p12)
}
  0x85   : > { %6901 = dma.hbm_to_vmem [thread:$0]  (!%p7450_p13), %s7580_s13, 8192, %s7582_s8, %s271_s20, %s8280_s11, %s8280_s11, %s8279_s17  }
  0x86   : > { %p8281_p2 = scmp.ne.s32.totalorder %s8278_s26, 0 }
  0x87   : > { %s7614_s23 = sand.u32 (!%p8281_p2), 1, %s7338_s19   ;;  %p8282_p6 = scmp.ne.s32.totalorder (!%p8281_p2), %s8270_s28, 0 }
  0x88   : > { %293 = sbr.rel (%p8281_p2) target bundleno = 4276 (0x10b4), region = 40  ;;  %s7617_s15 = sshll.u32 (!%p8281_p2), %s7614_s23, 6 }
  0x89   : > { %s296_s9 = scalar_lea.sflag (!%p8281_p2), [#allocation4], %s7614_s23  ;;  %s7621_s16 = scalar_lea.vmem (!%p8281_p2), [#allocation3], %s7617_s15 }
  0x8f   : > { %7317 = dma.done.wait (%p8282_p6), %s296_s9, 1024  }
  0x90   : > { %7319 = vsyncadd (%p8282_p6), %s296_s9, 4294966272  ;;  %s304_s6 = sand.u32 1, %s7408_s22   ;;  %s7629_s17 = scalar_lea.vmem [#allocation6], %s7617_s15 }
  0x91   : > { %s305_s26 = scalar_lea.sflag [#allocation7], %s304_s6 }
  0x92   : > { %7321 = dma.done.wait (%p8282_p6), %s305_s26, 2048  }
  0x93   : > { %7323 = vsyncadd (%p8282_p6), %s305_s26, 4294965248  ;;  %s5003_s11 = sshll.u32 %s7614_s23, 9  ;;  %s317_s13 = scalar_lea.vmem [#allocation8], %s7617_s15 }
  0x94   : > { %s323_s8 = scalar_lea.sflag [#allocation10], %s7614_s23  ;;  %s7638_s20 = scalar_lea.vmem [#allocation9], %s5003_s11 }
  0x95   : > { %7325 = dma.done.wait (%p8282_p6), %s323_s8, 8192  }
  0x96   : > { %7327 = vsyncadd (%p8282_p6), %s323_s8, 4294959104  ;;  %v6944_v0 = vld [vmem:[%s317_s13] sm:$0xff]   ;;  %v6945_v1 = vld [vmem:[%s317_s13 + $0x8] sm:$0xff]   ;;  %p371_p13 = scmp.lt.s32.totalorder %s7408_s22, 1  ;;  %s7684_s10 = scalar_lea.vmem [#allocation11], %s7617_s15 }
  0x97   : > { %6319 = vmatprep.subr.bf16.mxu0 %v6944_v0  ;;  %v6946_v2 = vld [vmem:[%s317_s13 + $0x10] sm:$0xff]   ;;  %v6947_v3 = vld [vmem:[%s317_s13 + $0x18] sm:$0xff]   ;;  %v6952_v4 = vld [vmem:[%s7621_s16] sm:$0xff]   ;;  %s5623_s0 = sshll.u32 %s7408_s22, 10  ;;  %s4836_s1 = sshll.u32 %s7684_s10, 4  ;;  %s8207_s1 = int_to_ptr.vmem [resolvable:$true] %s4836_s1 }
  0x98   : > { %6320 = vmatpush3.bf16.msra.mxu0 %v6944_v0  ;;  %6335 = vmatprep.mubr.bf16.mxu0 %v6952_v4  ;;  %v6948_v5 = vld [vmem:[%s317_s13 + $0x20] sm:$0xff]   ;;  %v6949_v6 = vld [vmem:[%s317_s13 + $0x28] sm:$0xff]   ;;  %v6950_v7 = vld [vmem:[%s317_s13 + $0x30] sm:$0xff]   ;;  %s372_s28 = scalar_select %p371_p13, %s7408_s22, 1 }
  0x99   : > { %6321 = vmatprep.subr.bf16.mxu0 %v6945_v1  ;;  %v6951_v8 = vld [vmem:[%s317_s13 + $0x38] sm:$0xff]   ;;  %v6953_v9 = vld [vmem:[%s7621_s16 + $0x8] sm:$0xff]   ;;  %v6954_v10 = vld [vmem:[%s7621_s16 + $0x10] sm:$0xff]   ;;  %s8205_s15 = scalar_lea.hbm %s8258_s5, %s5623_s0  ;;  %s4823_s22 = scalar_lea.sflag [#allocation5], %s7614_s23 }
  0x9a   : > { %v6955_v11 = vld [vmem:[%s7621_s16 + $0x18] sm:$0xff]   ;;  %v6956_v12 = vld [vmem:[%s7621_s16 + $0x20] sm:$0xff]   ;;  %v6957_v13 = vld [vmem:[%s7621_s16 + $0x28] sm:$0xff]   ;;  %s373_s14 = scalar_lea.vmem %s8256_s3, %s372_s28  ;;  %s7272_s9 = scalar_lea.vmem %s8207_s1, 1024 }
  0x9b   : > { %v6958_v14 = vld [vmem:[%s7621_s16 + $0x30] sm:$0xff]   ;;  %v6959_v15 = vld [vmem:[%s7621_s16 + $0x38] sm:$0xff]   ;;  %v6968_v16 = vld [vmem:[%s7629_s17] sm:$0xff]   ;;  %p7273_p0 = scmp.ne.s32.totalorder %s8207_s1, %s7272_s9  ;;  %p8283_p8 = scmp.ne.s32.totalorder %s8271_s29, 0 }
  0x9c   : > { %6322 = vmatpush3.bf16.msra.mxu0 %v6945_v1  ;;  %6367 = vmatprep.mubr.bf16.mxu1 %v6968_v16  ;;  %v6976_v17 = vld [vmem:[%s7638_s20] sm:$0xff]   ;;  %v6977_v18 = vld [vmem:[%s7638_s20 + $0x8] sm:$0xff]   ;;  %v6978_v19 = vld [vmem:[%s7638_s20 + $0x10] sm:$0xff]   ;;  %s7354_s16 = smov [#allocation11]  }
  0x9d   : > { %6323 = vmatprep.subr.bf16.mxu0 %v6946_v2  ;;  %v6979_v20 = vld [vmem:[%s7638_s20 + $0x18] sm:$0xff]   ;;  %v6980_v21 = vld [vmem:[%s7638_s20 + $0x20] sm:$0xff]   ;;  %v6981_v22 = vld [vmem:[%s7638_s20 + $0x28] sm:$0xff]   ;;  %p7274_p10 = pnand %p7273_p0, %p8283_p8  ;;  %s7276_s6 = sshll.u32 %s7354_s16, 4  ;;  %s7277_s6 = int_to_ptr.vmem [resolvable:$false] %s7276_s6 }
  0x9e   : > { %v7664_v23 = vld [vmem:[%s373_s14] ss:$0 sm:$0xff]  ;;  %s7278_s26 = scalar_lea.vmem %s7277_s6, 2048  ;;  %p7279_p4 = scmp.lt.s32.totalorder %s8207_s1, %s7277_s6 }
  0x9f   : > { %p7275_p11 = pneg %p7274_p10  ;;  %p7280_p3 = scmp.lt.s32.totalorder %s7278_s26, %s7272_s9 }
  0xa0   : > { %6324 = vmatpush3.bf16.msra.mxu0 %v6946_v2 }
  0xa1   : > { %6325 = vmatprep.subr.bf16.mxu0 %v6947_v3  ;;  %p7281_p5 = por %p7280_p3, %p7279_p4 }
  0xa3   : > { %p7282_p1 = pnand %p7281_p5, %p7275_p11 }
  0xa4   : > { %6326 = vmatpush3.bf16.msra.mxu0 %v6947_v3 }
  0xa5   : > { %6327 = vmatprep.subr.bf16.mxu0 %v6948_v5 }
  0xa8   : > { %6328 = vmatpush3.bf16.msra.mxu0 %v6948_v5 }
  0xa9   : > { %6329 = vmatprep.subr.bf16.mxu0 %v6949_v6 }
  0xac   : > { %6330 = vmatpush3.bf16.msra.mxu0 %v6949_v6 }
  0xad   : > { %6331 = vmatprep.subr.bf16.mxu0 %v6950_v7 }
  0xb0   : > { %6332 = vmatpush3.bf16.msra.mxu0 %v6950_v7 }
  0xb1   : > { %6333 = vmatprep.subr.bf16.mxu0 %v6951_v8 }
  0xb4   : > { %6334 = vmatpush3.bf16.msra.mxu0 %v6951_v8 }
  0xb5   : > { %6383 = vmatprep.subr.bf16.mxu0 %v6976_v17 }
  0xb7   : > { %6336 = vmatmul.mubr.bf16.vlgmr.msra.gmra.mrb[0].mxu0 %v6953_v9 }
  0xb8   : > { %6339 = vmatprep.mubr.bf16.mxu0 %v6954_v10  ;;  %6384 = vmatpush3.bf16.msra.mxu0 %v6976_v17 }
  0xb9   : > { %6385 = vmatprep.subr.bf16.mxu0 %v6977_v18 }
  0xbc   : > { %6386 = vmatpush3.bf16.msra.mxu0 %v6977_v18 }
  0xbd   : > { %6387 = vmatprep.subr.bf16.mxu0 %v6978_v19 }
  0xbf   : > { %6340 = vmatmul.mubr.bf16.gmra.mrb[4].mxu0 %v6955_v11 }
  0xc0   : > { %6343 = vmatprep.mubr.bf16.mxu0 %v6956_v12  ;;  %6388 = vmatpush3.bf16.msra.mxu0 %v6978_v19 }
  0xc1   : > { %6389 = vmatprep.subr.bf16.mxu0 %v6979_v20 }
  0xc4   : > { %6390 = vmatpush3.bf16.msra.mxu0 %v6979_v20 }
  0xc5   : > { %6391 = vmatprep.subr.bf16.mxu0 %v6980_v21 }
  0xc7   : > { %6344 = vmatmul.mubr.bf16.gmra.mrb[8].mxu0 %v6957_v13 }
  0xc8   : > { %6347 = vmatprep.mubr.bf16.mxu0 %v6958_v14  ;;  %6392 = vmatpush3.bf16.msra.mxu0 %v6980_v21 }
  0xc9   : > { %6393 = vmatprep.subr.bf16.mxu0 %v6981_v22 }
  0xcc   : > { %6394 = vmatpush3.bf16.msra.mxu0 %v6981_v22 }
  0xcf   : > { %6348 = vmatmul.mubr.bf16.gmra.mrb[12].mxu0 %v6959_v15 }
 0x18a   : > { %v6337_v24 = vpop.f32.mrb[0].mxu0 }
 0x18b   : > { %v553_v25 = vadd.f32 %v6337_v24, %v7664_v23  ;;  %v544_v26 = vpop.f32.mrb[1].mxu0 }
 0x18c   : > { %v545_v27 = vadd.f32 %v7664_v23, %v544_v26  ;;  %v6338_v28 = vpop.f32.mrb[2].mxu0 }
 0x18d   : > { %v625_v29 = vmul.f32 0.01, %v553_v25  ;;  %v556_v30 = vadd.f32 %v6338_v28, %v7664_v23  ;;  %v547_v31 = vpop.f32.mrb[3].mxu0  ;;  %vm609_vm0 = vcmp.gt.f32.partialorder %v553_v25, 0.0 }
 0x18e   : > { %v623_v32 = vmul.f32 0.01, %v545_v27  ;;  %v548_v33 = vadd.f32 %v7664_v23, %v547_v31  ;;  %vm607_vm1 = vcmp.gt.f32.partialorder %v545_v27, 0.0 }
 0x18f   : > { %vm610_vm2 = vcmp.gt.f32.partialorder %v556_v30, 0.0  ;;  %v626_v34 = vmul.f32 0.01, %v556_v30  ;;  %v7670_v36 = vsel %vm609_vm0, %v553_v25, %v625_v29 }
 0x190   : > { %vm608_vm3 = vcmp.gt.f32.partialorder %v548_v33, 0.0  ;;  %v624_v35 = vmul.f32 0.01, %v548_v33  ;;  %v7674_v38 = vsel %vm607_vm1, %v545_v27, %v623_v32 }
 0x191   : > { %v7672_v37 = vsel %vm610_vm2, %v556_v30, %v626_v34 }
 0x192   : > { %v5632_v39 = vpack.c.bf16 %v7672_v37, %v7670_v36  ;;  %v7678_v40 = vsel %vm608_vm3, %v548_v33, %v624_v35  ;;  %v6341_v41 = vpop.f32.mrb[4].mxu0 }
 0x193   : > { %v5627_v42 = vpack.c.bf16 %v7678_v40, %v7674_v38  ;;  %v569_v43 = vadd.f32 %v6341_v41, %v7664_v23  ;;  %v560_v44 = vpop.f32.mrb[5].mxu0 }
 0x194   : > { %5984 = vst [vmem:[%s7684_s10 + $0x8] sm:$0xff] %v5632_v39   ;;  %v561_v45 = vadd.f32 %v7664_v23, %v560_v44  ;;  %v6342_v46 = vpop.f32.mrb[6].mxu0  ;;  %v6969_v44 = vld [vmem:[%s7629_s17 + $0x8] sm:$0xff]  }
 0x195   : > { %5628 = vst [vmem:[%s7684_s10] sm:$0xff] %v5627_v42   ;;  %v629_v47 = vmul.f32 0.01, %v569_v43  ;;  %v572_v48 = vadd.f32 %v6342_v46, %v7664_v23  ;;  %v563_v49 = vpop.f32.mrb[7].mxu0  ;;  %vm613_vm4 = vcmp.gt.f32.partialorder %v569_v43, 0.0  ;;  %v6971_v46 = vld [vmem:[%s7629_s17 + $0x18] sm:$0xff]  }
 0x196   : > { %v627_v50 = vmul.f32 0.01, %v561_v45  ;;  %v564_v51 = vadd.f32 %v7664_v23, %v563_v49  ;;  %vm611_vm5 = vcmp.gt.f32.partialorder %v561_v45, 0.0  ;;  %v6974_v49 = vld [vmem:[%s7629_s17 + $0x30] sm:$0xff]  }
 0x197   : > { %vm614_vm6 = vcmp.gt.f32.partialorder %v572_v48, 0.0  ;;  %v630_v52 = vmul.f32 0.01, %v572_v48  ;;  %v7691_v54 = vsel %vm613_vm4, %v569_v43, %v629_v47  ;;  %v6972_v47 = vld [vmem:[%s7629_s17 + $0x20] sm:$0xff]  }
 0x198   : > { %vm612_vm7 = vcmp.gt.f32.partialorder %v564_v51, 0.0  ;;  %v628_v53 = vmul.f32 0.01, %v564_v51  ;;  %v7695_v56 = vsel %vm611_vm5, %v561_v45, %v627_v50  ;;  %v6970_v45 = vld [vmem:[%s7629_s17 + $0x10] sm:$0xff]   ;;  %v6975_v50 = vld [vmem:[%s7629_s17 + $0x38] sm:$0xff]  }
 0x199   : > { %v7693_v55 = vsel %vm614_vm6, %v572_v48, %v630_v52  ;;  %v6973_v48 = vld [vmem:[%s7629_s17 + $0x28] sm:$0xff]   ;;  %v6983_v52 = vld [vmem:[%s7638_s20 + $0x38] sm:$0xff]  }
 0x19a   : > { %v5642_v57 = vpack.c.bf16 %v7693_v55, %v7691_v54  ;;  %v7699_v58 = vsel %vm612_vm7, %v564_v51, %v628_v53  ;;  %v6345_v59 = vpop.f32.mrb[8].mxu0  ;;  %v6982_v51 = vld [vmem:[%s7638_s20 + $0x30] sm:$0xff]  }
 0x19b   : > { %v5637_v60 = vpack.c.bf16 %v7699_v58, %v7695_v56  ;;  %v585_v61 = vadd.f32 %v6345_v59, %v7664_v23  ;;  %v576_v62 = vpop.f32.mrb[9].mxu0  ;;  %v6961_v7 = vld [vmem:[%s7684_s10 + $0x8] sm:$0xff]   ;;  %6395 = vmatprep.subr.bf16.mxu0 %v6982_v51  ;;  %v7762_v59 = vmul.f32 0.5, %v7672_v37 }
 0x19c   : > { %5986 = vst [vmem:[%s7684_s10 + $0x18] sm:$0xff] %v5642_v57   ;;  %v577_v63 = vadd.f32 %v7664_v23, %v576_v62  ;;  %v6346_v0 = vpop.f32.mrb[10].mxu0  ;;  %v6960_v1 = vld [vmem:[%s7684_s10] sm:$0xff]   ;;  %6396 = vmatpush3.bf16.msra.mxu0 %v6982_v51  ;;  %v7759_v57 = vmul.f32 0.5, %v7670_v36  ;;  %v7768_v62 = vmul.f32 0.5, %v7678_v40  ;;  %v7778_v40 = vmul.f32 0.5, %v7693_v55 }
 0x19d   : > { %5985 = vst [vmem:[%s7684_s10 + $0x10] sm:$0xff] %v5637_v60   ;;  %v633_v2 = vmul.f32 0.01, %v585_v61  ;;  %v588_v3 = vadd.f32 %v6346_v0, %v7664_v23  ;;  %v579_v4 = vpop.f32.mrb[11].mxu0  ;;  %vm617_vm8 = vcmp.gt.f32.partialorder %v585_v61, 0.0  ;;  %6351 = vmatprep.subr.bf16.mxu1 %v6960_v1  ;;  %6397 = vmatprep.subr.bf16.mxu0 %v6983_v52  ;;  %v7005_v51 = vld [vmem:[%s7638_s20 + $0x68] sm:$0xff]  }
 0x19e   : > { %v631_v5 = vmul.f32 0.01, %v577_v63  ;;  %v580_v6 = vadd.f32 %v7664_v23, %v579_v4  ;;  %vm615_vm9 = vcmp.gt.f32.partialorder %v577_v63, 0.0  ;;  %6352 = vmatpush3.bf16.msra.mxu1 %v6960_v1 }
 0x19f   : > { %vm618_vm10 = vcmp.gt.f32.partialorder %v588_v3, 0.0  ;;  %v634_v8 = vmul.f32 0.01, %v588_v3  ;;  %6353 = vmatprep.subr.bf16.mxu1 %v6961_v7  ;;  %v7711_v10 = vsel %vm617_vm8, %v585_v61, %v633_v2  ;;  %v7765_v61 = vmul.f32 0.5, %v7674_v38 }
 0x1a0   : > { %vm616_vm11 = vcmp.gt.f32.partialorder %v580_v6, 0.0  ;;  %v632_v9 = vmul.f32 0.01, %v580_v6  ;;  %v7715_v12 = vsel %vm615_vm9, %v577_v63, %v631_v5  ;;  %6398 = vmatpush3.bf16.msra.mxu0 %v6983_v52  ;;  %v7775_v38 = vmul.f32 0.5, %v7691_v54 }
 0x1a1   : > { %v7713_v11 = vsel %vm618_vm10, %v588_v3, %v634_v8  ;;  %v7784_v8 = vmul.f32 0.5, %v7699_v58 }
 0x1a2   : > { %v5652_v13 = vpack.c.bf16 %v7713_v11, %v7711_v10  ;;  %v7719_v14 = vsel %vm616_vm11, %v580_v6, %v632_v9  ;;  %v6349_v15 = vpop.f32.mrb[12].mxu0  ;;  %6354 = vmatpush3.bf16.msra.mxu1 %v6961_v7  ;;  %v7781_v7 = vmul.f32 0.5, %v7695_v56  ;;  %v7791_v56 = vmul.f32 0.5, %v7711_v10 }
 0x1a3   : > { %v5647_v16 = vpack.c.bf16 %v7719_v14, %v7715_v12  ;;  %v601_v17 = vadd.f32 %v6349_v15, %v7664_v23  ;;  %v592_v18 = vpop.f32.mrb[13].mxu0  ;;  %v6963_v28 = vld [vmem:[%s7684_s10 + $0x18] sm:$0xff]   ;;  %v7794_v58 = vmul.f32 0.5, %v7713_v11 }
 0x1a4   : > { %5988 = vst [vmem:[%s7684_s10 + $0x28] sm:$0xff] %v5652_v13   ;;  %v593_v19 = vadd.f32 %v7664_v23, %v592_v18  ;;  %v6350_v20 = vpop.f32.mrb[14].mxu0  ;;  %v6962_v21 = vld [vmem:[%s7684_s10 + $0x10] sm:$0xff]  }
 0x1a5   : > { %5987 = vst [vmem:[%s7684_s10 + $0x20] sm:$0xff] %v5647_v16   ;;  %v637_v22 = vmul.f32 0.01, %v601_v17  ;;  %v604_v24 = vadd.f32 %v6350_v20, %v7664_v23  ;;  %v595_v25 = vpop.f32.mrb[15].mxu0  ;;  %vm621_vm12 = vcmp.gt.f32.partialorder %v601_v17, 0.0  ;;  %6355 = vmatprep.subr.bf16.mxu1 %v6962_v21 }
 0x1a6   : > { %v635_v26 = vmul.f32 0.01, %v593_v19  ;;  %v596_v27 = vadd.f32 %v7664_v23, %v595_v25  ;;  %vm619_vm13 = vcmp.gt.f32.partialorder %v593_v19, 0.0  ;;  %6356 = vmatpush3.bf16.msra.mxu1 %v6962_v21  ;;  %v7797_v21 = vmul.f32 0.5, %v7715_v12 }
 0x1a7   : > { %vm622_vm14 = vcmp.gt.f32.partialorder %v604_v24, 0.0  ;;  %v638_v29 = vmul.f32 0.01, %v604_v24  ;;  %6357 = vmatprep.subr.bf16.mxu1 %v6963_v28  ;;  %v7731_v31 = vsel %vm621_vm12, %v601_v17, %v637_v22  ;;  %v7800_v22 = vmul.f32 0.5, %v7719_v14 }
 0x1a8   : > { %vm620_vm15 = vcmp.gt.f32.partialorder %v596_v27, 0.0  ;;  %v636_v30 = vmul.f32 0.01, %v596_v27  ;;  %v7735_v23 = vsel %vm619_vm13, %v593_v19, %v635_v26  ;;  %v7807_v12 = vmul.f32 0.5, %v7731_v31 }
 0x1a9   : > { %v7733_v32 = vsel %vm622_vm14, %v604_v24, %v638_v29 }
 0x1aa   : > { %v5662_v33 = vpack.c.bf16 %v7733_v32, %v7731_v31  ;;  %v7739_v34 = vsel %vm620_vm15, %v596_v27, %v636_v30  ;;  %6358 = vmatpush3.bf16.msra.mxu1 %v6963_v28  ;;  %v7810_v14 = vmul.f32 0.5, %v7733_v32 }
 0x1ab   : > { %v5657_v35 = vpack.c.bf16 %v7739_v34, %v7735_v23  ;;  %v6965_v41 = vld [vmem:[%s7684_s10 + $0x28] sm:$0xff]  }
 0x1ac   : > { %5990 = vst [vmem:[%s7684_s10 + $0x38] sm:$0xff] %v5662_v33   ;;  %v6964_v39 = vld [vmem:[%s7684_s10 + $0x20] sm:$0xff]  }
 0x1ad   : > { %5989 = vst [vmem:[%s7684_s10 + $0x30] sm:$0xff] %v5657_v35   ;;  %6359 = vmatprep.subr.bf16.mxu1 %v6964_v39  ;;  %v7813_v35 = vmul.f32 0.5, %v7735_v23  ;;  %v6992_v23 = vld [vmem:[%s7629_s17] sm:$0xff]  }
 0x1ae   : > { %6360 = vmatpush3.bf16.msra.mxu1 %v6964_v39  ;;  %v7816_v39 = vmul.f32 0.5, %v7739_v34  ;;  %v7000_v34 = vld [vmem:[%s7638_s20 + $0x40] sm:$0xff]  }
 0x1af   : > { %6361 = vmatprep.subr.bf16.mxu1 %v6965_v41  ;;  %6447 = vmatprep.subr.bf16.mxu0 %v7000_v34 }
 0x1b2   : > { %6362 = vmatpush3.bf16.msra.mxu1 %v6965_v41 }
 0x1b3   : > { %v6967_v43 = vld [vmem:[%s7684_s10 + $0x38] sm:$0xff]  }
 0x1b4   : > { %v6966_v42 = vld [vmem:[%s7684_s10 + $0x30] sm:$0xff]  }
 0x1b5   : > { %6363 = vmatprep.subr.bf16.mxu1 %v6966_v42 }
 0x1b6   : > { %6364 = vmatpush3.bf16.msra.mxu1 %v6966_v42 }
 0x1b7   : > { %6365 = vmatprep.subr.bf16.mxu1 %v6967_v43 }
 0x1ba   : > { %6366 = vmatpush3.bf16.msra.mxu1 %v6967_v43 }
 0x1bd   : > { %6368 = vmatmul.mubr.bf16.vlgmr.msra.gmra.mrb[0].mxu1 %v6969_v44 }
 0x1be   : > { %6371 = vmatprep.mubr.bf16.mxu1 %v6970_v45 }
 0x1c5   : > { %6372 = vmatmul.mubr.bf16.gmra.mrb[4].mxu1 %v6971_v46 }
 0x1c6   : > { %6375 = vmatprep.mubr.bf16.mxu1 %v6972_v47  ;;  %v7001_v47 = vld [vmem:[%s7638_s20 + $0x48] sm:$0xff]  }
 0x1cd   : > { %6376 = vmatmul.mubr.bf16.gmra.mrb[8].mxu1 %v6973_v48  ;;  %v7002_v48 = vld [vmem:[%s7638_s20 + $0x50] sm:$0xff]  }
 0x1ce   : > { %6379 = vmatprep.mubr.bf16.mxu1 %v6974_v49  ;;  %v7003_v49 = vld [vmem:[%s7638_s20 + $0x58] sm:$0xff]  }
 0x1d5   : > { %6380 = vmatmul.mubr.bf16.gmra.mrb[12].mxu1 %v6975_v50  ;;  %v7004_v50 = vld [vmem:[%s7638_s20 + $0x60] sm:$0xff]  }
 0x1d6   : > { %6431 = vmatprep.mubr.bf16.mxu1 %v6992_v23 }
 0x290   : > { %v6369_v53 = vpop.f32.mrb[0].mxu1 }
 0x291   : > { %v945_v60 = vpop.f32.mrb[1].mxu1  ;;  %v954_v0 = vadd.f32 %v6369_v53, %v7759_v57 }
 0x292   : > { %v6370_v63 = vpop.f32.mrb[2].mxu1  ;;  %v946_v3 = vadd.f32 %v945_v60, %v7765_v61 }
 0x293   : > { %v957_v1 = vadd.f32 %v6370_v63, %v7762_v59  ;;  %v948_v2 = vpop.f32.mrb[3].mxu1 }
 0x294   : > { %v949_v36 = vadd.f32 %v948_v2, %v7768_v62 }
 0x295   : > { %v1009_v4 = vpack.c.bf16 %v957_v1, %v954_v0 }
 0x296   : > { %v1008_v37 = vpack.c.bf16 %v949_v36, %v946_v3 }
 0x298   : > { %v6373_v5 = vpop.f32.mrb[4].mxu1  ;;  %6399 = vmatprep.mubr.bf16.mxu0 %v1008_v37 }
 0x299   : > { %v961_v6 = vpop.f32.mrb[5].mxu1  ;;  %6400 = vmatmul.mubr.bf16.vlgmr.msra.gmra.mrb[16].mxu0 %v1009_v4  ;;  %v970_v13 = vadd.f32 %v6373_v5, %v7775_v38 }
 0x29a   : > { %v6374_v9 = vpop.f32.mrb[6].mxu1  ;;  %v962_v54 = vadd.f32 %v961_v6, %v7781_v7  ;;  %6448 = vmatpush3.bf16.msra.mxu0 %v7000_v34 }
 0x29b   : > { %v973_v15 = vadd.f32 %v6374_v9, %v7778_v40  ;;  %v964_v16 = vpop.f32.mrb[7].mxu1  ;;  %6449 = vmatprep.subr.bf16.mxu0 %v7001_v47 }
 0x29c   : > { %v965_v17 = vadd.f32 %v964_v16, %v7784_v8 }
 0x29d   : > { %v1011_v55 = vpack.c.bf16 %v973_v15, %v970_v13 }
 0x29e   : > { %v1010_v18 = vpack.c.bf16 %v965_v17, %v962_v54  ;;  %6450 = vmatpush3.bf16.msra.mxu0 %v7001_v47 }
 0x29f   : > { %6451 = vmatprep.subr.bf16.mxu0 %v7002_v48 }
 0x2a0   : > { %v6377_v19 = vpop.f32.mrb[8].mxu1  ;;  %6403 = vmatprep.mubr.bf16.mxu0 %v1010_v18 }
 0x2a1   : > { %v977_v20 = vpop.f32.mrb[9].mxu1  ;;  %6404 = vmatmul.mubr.bf16.gmra.mrb[20].mxu0 %v1011_v55  ;;  %v986_v25 = vadd.f32 %v6377_v19, %v7791_v56 }
 0x2a2   : > { %v6378_v24 = vpop.f32.mrb[10].mxu1  ;;  %v978_v10 = vadd.f32 %v977_v20, %v7797_v21  ;;  %6452 = vmatpush3.bf16.msra.mxu0 %v7002_v48 }
 0x2a3   : > { %v989_v26 = vadd.f32 %v6378_v24, %v7794_v58  ;;  %v980_v27 = vpop.f32.mrb[11].mxu1  ;;  %6453 = vmatprep.subr.bf16.mxu0 %v7003_v49 }
 0x2a4   : > { %v981_v28 = vadd.f32 %v980_v27, %v7800_v22 }
 0x2a5   : > { %v1013_v11 = vpack.c.bf16 %v989_v26, %v986_v25 }
 0x2a6   : > { %v1012_v29 = vpack.c.bf16 %v981_v28, %v978_v10  ;;  %6454 = vmatpush3.bf16.msra.mxu0 %v7003_v49 }
 0x2a7   : > { %6455 = vmatprep.subr.bf16.mxu0 %v7004_v50 }
 0x2a8   : > { %v6381_v30 = vpop.f32.mrb[12].mxu1  ;;  %6407 = vmatprep.mubr.bf16.mxu0 %v1012_v29 }
 0x2a9   : > { %v993_v33 = vpop.f32.mrb[13].mxu1  ;;  %6408 = vmatmul.mubr.bf16.gmra.mrb[24].mxu0 %v1013_v11  ;;  %v1002_v42 = vadd.f32 %v6381_v30, %v7807_v12 }
 0x2aa   : > { %v6382_v41 = vpop.f32.mrb[14].mxu1  ;;  %v994_v32 = vadd.f32 %v993_v33, %v7813_v35  ;;  %6456 = vmatpush3.bf16.msra.mxu0 %v7004_v50 }
 0x2ab   : > { %v1005_v31 = vadd.f32 %v6382_v41, %v7810_v14  ;;  %v996_v43 = vpop.f32.mrb[15].mxu1  ;;  %6457 = vmatprep.subr.bf16.mxu0 %v7005_v51 }
 0x2ac   : > { %v997_v44 = vadd.f32 %v996_v43, %v7816_v39 }
 0x2ad   : > { %v1015_v45 = vpack.c.bf16 %v1005_v31, %v1002_v42 }
 0x2ae   : > { %v1014_v46 = vpack.c.bf16 %v997_v44, %v994_v32  ;;  %6458 = vmatpush3.bf16.msra.mxu0 %v7005_v51 }
 0x2b0   : > { %6411 = vmatprep.mubr.bf16.mxu0 %v1014_v46 }
 0x2b1   : > { %6412 = vmatmul.mubr.bf16.gmra.mrb[28].mxu0 %v1015_v45 }
 0x36c   : > { %v6401_v52 = vpop.f32.mrb[16].mxu0 }
 0x36d   : > { %v1114_v53 = vpop.f32.mrb[17].mxu0  ;;  %v1179_v63 = vmax.f32 %v6401_v52, 0.0  ;;  %v6993_v52 = vld [vmem:[%s7629_s17 + $0x8] sm:$0xff]  }
 0x36e   : > { %v6402_v60 = vpop.f32.mrb[18].mxu0  ;;  %v1177_v2 = vmax.f32 %v1114_v53, 0.0  ;;  %v6994_v53 = vld [vmem:[%s7629_s17 + $0x10] sm:$0xff]  }
 0x36f   : > { %v1180_v0 = vmax.f32 %v6402_v60, 0.0  ;;  %v1117_v1 = vpop.f32.mrb[19].mxu0  ;;  %v6995_v60 = vld [vmem:[%s7629_s17 + $0x18] sm:$0xff]  }
 0x370   : > { %v1178_v3 = vmax.f32 %v1117_v1, 0.0  ;;  %v6998_v1 = vld [vmem:[%s7629_s17 + $0x30] sm:$0xff]  }
 0x371   : > { %v5672_v36 = vpack.c.bf16 %v1180_v0, %v1179_v63  ;;  %v6996_v63 = vld [vmem:[%s7629_s17 + $0x20] sm:$0xff]   ;;  %v6997_v0 = vld [vmem:[%s7629_s17 + $0x28] sm:$0xff]  }
 0x372   : > { %v5667_v4 = vpack.c.bf16 %v1178_v3, %v1177_v2  ;;  %v6999_v2 = vld [vmem:[%s7629_s17 + $0x38] sm:$0xff]   ;;  %v7006_v3 = vld [vmem:[%s7638_s20 + $0x70] sm:$0xff]  }
 0x373   : > { %5991 = vst [vmem:[%s7684_s10 + $0x8] sm:$0xff] %v5672_v36   ;;  %6459 = vmatprep.subr.bf16.mxu0 %v7006_v3  ;;  %v7007_v36 = vld [vmem:[%s7638_s20 + $0x78] sm:$0xff]  }
 0x374   : > { %5668 = vst [vmem:[%s7684_s10] sm:$0xff] %v5667_v4   ;;  %v6405_v37 = vpop.f32.mrb[20].mxu0  ;;  %6460 = vmatpush3.bf16.msra.mxu0 %v7006_v3  ;;  %v7029_v3 = vld [vmem:[%s7638_s20 + $0xa8] sm:$0xff]  }
 0x375   : > { %v1130_v5 = vpop.f32.mrb[21].mxu0  ;;  %v1183_v9 = vmax.f32 %v6405_v37, 0.0  ;;  %6461 = vmatprep.subr.bf16.mxu0 %v7007_v36 }
 0x376   : > { %v6406_v6 = vpop.f32.mrb[22].mxu0  ;;  %v1181_v16 = vmax.f32 %v1130_v5, 0.0 }
 0x377   : > { %v1184_v13 = vmax.f32 %v6406_v6, 0.0  ;;  %v1133_v15 = vpop.f32.mrb[23].mxu0 }
 0x378   : > { %v1182_v54 = vmax.f32 %v1133_v15, 0.0  ;;  %6462 = vmatpush3.bf16.msra.mxu0 %v7007_v36 }
 0x379   : > { %v5682_v17 = vpack.c.bf16 %v1184_v13, %v1183_v9 }
 0x37a   : > { %v5677_v55 = vpack.c.bf16 %v1182_v54, %v1181_v16  ;;  %v6985_v24 = vld [vmem:[%s7684_s10 + $0x8] sm:$0xff]  }
 0x37b   : > { %5993 = vst [vmem:[%s7684_s10 + $0x18] sm:$0xff] %v5682_v17   ;;  %v6984_v18 = vld [vmem:[%s7684_s10] sm:$0xff]  }
 0x37c   : > { %5992 = vst [vmem:[%s7684_s10 + $0x10] sm:$0xff] %v5677_v55   ;;  %v6409_v19 = vpop.f32.mrb[24].mxu0  ;;  %6415 = vmatprep.subr.bf16.mxu1 %v6984_v18 }
 0x37d   : > { %v1146_v20 = vpop.f32.mrb[25].mxu0  ;;  %6416 = vmatpush3.bf16.msra.mxu1 %v6984_v18  ;;  %v1187_v26 = vmax.f32 %v6409_v19, 0.0 }
 0x37e   : > { %v6410_v25 = vpop.f32.mrb[26].mxu0  ;;  %6417 = vmatprep.subr.bf16.mxu1 %v6985_v24  ;;  %v1185_v28 = vmax.f32 %v1146_v20, 0.0 }
 0x37f   : > { %v1188_v27 = vmax.f32 %v6410_v25, 0.0  ;;  %v1149_v10 = vpop.f32.mrb[27].mxu0 }
 0x380   : > { %v1186_v11 = vmax.f32 %v1149_v10, 0.0 }
 0x381   : > { %v5692_v29 = vpack.c.bf16 %v1188_v27, %v1187_v26  ;;  %6418 = vmatpush3.bf16.msra.mxu1 %v6985_v24 }
 0x382   : > { %v5687_v30 = vpack.c.bf16 %v1186_v11, %v1185_v28  ;;  %v6987_v31 = vld [vmem:[%s7684_s10 + $0x18] sm:$0xff]  }
 0x383   : > { %5995 = vst [vmem:[%s7684_s10 + $0x28] sm:$0xff] %v5692_v29   ;;  %v6986_v33 = vld [vmem:[%s7684_s10 + $0x10] sm:$0xff]  }
 0x384   : > { %5994 = vst [vmem:[%s7684_s10 + $0x20] sm:$0xff] %v5687_v30   ;;  %v6413_v41 = vpop.f32.mrb[28].mxu0  ;;  %6419 = vmatprep.subr.bf16.mxu1 %v6986_v33 }
 0x385   : > { %v1162_v42 = vpop.f32.mrb[29].mxu0  ;;  %6420 = vmatpush3.bf16.msra.mxu1 %v6986_v33  ;;  %v1191_v32 = vmax.f32 %v6413_v41, 0.0 }
 0x386   : > { %v6414_v43 = vpop.f32.mrb[30].mxu0  ;;  %6421 = vmatprep.subr.bf16.mxu1 %v6987_v31  ;;  %v1189_v46 = vmax.f32 %v1162_v42, 0.0 }
 0x387   : > { %v1192_v44 = vmax.f32 %v6414_v43, 0.0  ;;  %v1165_v45 = vpop.f32.mrb[31].mxu0 }
 0x388   : > { %v1190_v23 = vmax.f32 %v1165_v45, 0.0 }
 0x389   : > { %v5702_v34 = vpack.c.bf16 %v1192_v44, %v1191_v32  ;;  %6422 = vmatpush3.bf16.msra.mxu1 %v6987_v31 }
 0x38a   : > { %v5697_v47 = vpack.c.bf16 %v1190_v23, %v1189_v46  ;;  %v6989_v49 = vld [vmem:[%s7684_s10 + $0x28] sm:$0xff]  }
 0x38b   : > { %5997 = vst [vmem:[%s7684_s10 + $0x38] sm:$0xff] %v5702_v34   ;;  %v6988_v48 = vld [vmem:[%s7684_s10 + $0x20] sm:$0xff]  }
 0x38c   : > { %5996 = vst [vmem:[%s7684_s10 + $0x30] sm:$0xff] %v5697_v47   ;;  %6423 = vmatprep.subr.bf16.mxu1 %v6988_v48 }
 0x38d   : > { %6424 = vmatpush3.bf16.msra.mxu1 %v6988_v48 }
 0x38e   : > { %6425 = vmatprep.subr.bf16.mxu1 %v6989_v49 }
 0x391   : > { %6426 = vmatpush3.bf16.msra.mxu1 %v6989_v49 }
 0x392   : > { %v6991_v51 = vld [vmem:[%s7684_s10 + $0x38] sm:$0xff]  }
 0x393   : > { %v6990_v50 = vld [vmem:[%s7684_s10 + $0x30] sm:$0xff]  }
 0x394   : > { %6427 = vmatprep.subr.bf16.mxu1 %v6990_v50 }
 0x395   : > { %6428 = vmatpush3.bf16.msra.mxu1 %v6990_v50 }
 0x396   : > { %6429 = vmatprep.subr.bf16.mxu1 %v6991_v51 }
 0x399   : > { %6430 = vmatpush3.bf16.msra.mxu1 %v6991_v51 }
 0x39c   : > { %6432 = vmatmul.mubr.bf16.vlgmr.msra.gmra.mrb[16].mxu1 %v6993_v52 }
 0x39d   : > { %6435 = vmatprep.mubr.bf16.mxu1 %v6994_v53  ;;  %v7016_v53 = vld [vmem:[%s7629_s17] sm:$0xff]  }
 0x3a4   : > { %6436 = vmatmul.mubr.bf16.gmra.mrb[20].mxu1 %v6995_v60  ;;  %v7024_v60 = vld [vmem:[%s7638_s20 + $0x80] sm:$0xff]  }
 0x3a5   : > { %6439 = vmatprep.mubr.bf16.mxu1 %v6996_v63  ;;  %v7025_v63 = vld [vmem:[%s7638_s20 + $0x88] sm:$0xff]   ;;  %6511 = vmatprep.subr.bf16.mxu0 %v7024_v60 }
 0x3ac   : > { %6440 = vmatmul.mubr.bf16.gmra.mrb[24].mxu1 %v6997_v0  ;;  %v7026_v0 = vld [vmem:[%s7638_s20 + $0x90] sm:$0xff]  }
 0x3ad   : > { %6443 = vmatprep.mubr.bf16.mxu1 %v6998_v1  ;;  %v7027_v1 = vld [vmem:[%s7638_s20 + $0x98] sm:$0xff]  }
 0x3b4   : > { %6444 = vmatmul.mubr.bf16.gmra.mrb[28].mxu1 %v6999_v2  ;;  %v7028_v2 = vld [vmem:[%s7638_s20 + $0xa0] sm:$0xff]  }
 0x3b5   : > { %6495 = vmatprep.mubr.bf16.mxu1 %v7016_v53 }
 0x46f   : > { %v6433_v4 = vpop.f32.mrb[16].mxu1 }
 0x470   : > { %v1451_v37 = vpop.f32.mrb[17].mxu1  ;;  %v1460_v6 = vadd.f32 %v6433_v4, %v7759_v57 }
 0x471   : > { %v6434_v5 = vpop.f32.mrb[18].mxu1  ;;  %v1452_v15 = vadd.f32 %v1451_v37, %v7765_v61 }
 0x472   : > { %v1463_v9 = vadd.f32 %v6434_v5, %v7762_v59  ;;  %v1454_v13 = vpop.f32.mrb[19].mxu1 }
 0x473   : > { %v1455_v16 = vadd.f32 %v1454_v13, %v7768_v62 }
 0x474   : > { %v1515_v54 = vpack.c.bf16 %v1463_v9, %v1460_v6 }
 0x475   : > { %v1514_v17 = vpack.c.bf16 %v1455_v16, %v1452_v15 }
 0x477   : > { %v6437_v55 = vpop.f32.mrb[20].mxu1  ;;  %6463 = vmatprep.mubr.bf16.mxu0 %v1514_v17 }
 0x478   : > { %v1467_v18 = vpop.f32.mrb[21].mxu1  ;;  %6464 = vmatmul.mubr.bf16.vlgmr.msra.gmra.mrb[32].mxu0 %v1515_v54  ;;  %v1476_v20 = vadd.f32 %v6437_v55, %v7775_v38 }
 0x479   : > { %v6438_v19 = vpop.f32.mrb[22].mxu1  ;;  %v1468_v26 = vadd.f32 %v1467_v18, %v7781_v7  ;;  %6512 = vmatpush3.bf16.msra.mxu0 %v7024_v60 }
 0x47a   : > { %v1479_v24 = vadd.f32 %v6438_v19, %v7778_v40  ;;  %v1470_v25 = vpop.f32.mrb[23].mxu1  ;;  %6513 = vmatprep.subr.bf16.mxu0 %v7025_v63 }
 0x47b   : > { %v1471_v27 = vadd.f32 %v1470_v25, %v7784_v8 }
 0x47c   : > { %v1517_v10 = vpack.c.bf16 %v1479_v24, %v1476_v20 }
 0x47d   : > { %v1516_v28 = vpack.c.bf16 %v1471_v27, %v1468_v26  ;;  %6514 = vmatpush3.bf16.msra.mxu0 %v7025_v63 }
 0x47e   : > { %6515 = vmatprep.subr.bf16.mxu0 %v7026_v0 }
 0x47f   : > { %v6441_v11 = vpop.f32.mrb[24].mxu1  ;;  %6467 = vmatprep.mubr.bf16.mxu0 %v1516_v28 }
 0x480   : > { %v1483_v29 = vpop.f32.mrb[25].mxu1  ;;  %6468 = vmatmul.mubr.bf16.gmra.mrb[36].mxu0 %v1517_v10  ;;  %v1492_v33 = vadd.f32 %v6441_v11, %v7791_v56 }
 0x481   : > { %v6442_v30 = vpop.f32.mrb[26].mxu1  ;;  %v1484_v31 = vadd.f32 %v1483_v29, %v7797_v21  ;;  %6516 = vmatpush3.bf16.msra.mxu0 %v7026_v0 }
 0x482   : > { %v1495_v41 = vadd.f32 %v6442_v30, %v7794_v58  ;;  %v1486_v42 = vpop.f32.mrb[27].mxu1  ;;  %6517 = vmatprep.subr.bf16.mxu0 %v7027_v1 }
 0x483   : > { %v1487_v43 = vadd.f32 %v1486_v42, %v7800_v22 }
 0x484   : > { %v1519_v32 = vpack.c.bf16 %v1495_v41, %v1492_v33 }
 0x485   : > { %v1518_v44 = vpack.c.bf16 %v1487_v43, %v1484_v31  ;;  %6518 = vmatpush3.bf16.msra.mxu0 %v7027_v1 }
 0x486   : > { %6519 = vmatprep.subr.bf16.mxu0 %v7028_v2 }
 0x487   : > { %v6445_v45 = vpop.f32.mrb[28].mxu1  ;;  %6471 = vmatprep.mubr.bf16.mxu0 %v1518_v44 }
 0x488   : > { %v1499_v46 = vpop.f32.mrb[29].mxu1  ;;  %6472 = vmatmul.mubr.bf16.gmra.mrb[40].mxu0 %v1519_v32  ;;  %v1508_v34 = vadd.f32 %v6445_v45, %v7807_v12 }
 0x489   : > { %v6446_v23 = vpop.f32.mrb[30].mxu1  ;;  %v1500_v49 = vadd.f32 %v1499_v46, %v7813_v35  ;;  %6520 = vmatpush3.bf16.msra.mxu0 %v7028_v2 }
 0x48a   : > { %v1511_v47 = vadd.f32 %v6446_v23, %v7810_v14  ;;  %v1502_v48 = vpop.f32.mrb[31].mxu1  ;;  %6521 = vmatprep.subr.bf16.mxu0 %v7029_v3 }
 0x48b   : > { %v1503_v50 = vadd.f32 %v1502_v48, %v7816_v39 }
 0x48c   : > { %v1521_v51 = vpack.c.bf16 %v1511_v47, %v1508_v34 }
 0x48d   : > { %v1520_v52 = vpack.c.bf16 %v1503_v50, %v1500_v49  ;;  %6522 = vmatpush3.bf16.msra.mxu0 %v7029_v3 }
 0x48f   : > { %6475 = vmatprep.mubr.bf16.mxu0 %v1520_v52 }
 0x490   : > { %6476 = vmatmul.mubr.bf16.gmra.mrb[44].mxu0 %v1521_v51 }
 0x54b   : > { %v6465_v36 = vpop.f32.mrb[32].mxu0 }
 0x54c   : > { %v1621_v4 = vpop.f32.mrb[33].mxu0  ;;  %v1686_v5 = vmax.f32 %v6465_v36, 0.0  ;;  %v7017_v36 = vld [vmem:[%s7629_s17 + $0x8] sm:$0xff]  }
 0x54d   : > { %v6466_v37 = vpop.f32.mrb[34].mxu0  ;;  %v1684_v13 = vmax.f32 %v1621_v4, 0.0  ;;  %v7018_v4 = vld [vmem:[%s7629_s17 + $0x10] sm:$0xff]  }
 0x54e   : > { %v1687_v6 = vmax.f32 %v6466_v37, 0.0  ;;  %v1624_v9 = vpop.f32.mrb[35].mxu0  ;;  %v7019_v37 = vld [vmem:[%s7629_s17 + $0x18] sm:$0xff]  }
 0x54f   : > { %v1685_v15 = vmax.f32 %v1624_v9, 0.0  ;;  %v7022_v9 = vld [vmem:[%s7629_s17 + $0x30] sm:$0xff]  }
 0x550   : > { %v5712_v16 = vpack.c.bf16 %v1687_v6, %v1686_v5  ;;  %v7020_v5 = vld [vmem:[%s7629_s17 + $0x20] sm:$0xff]   ;;  %v7021_v6 = vld [vmem:[%s7629_s17 + $0x28] sm:$0xff]  }
 0x551   : > { %v5707_v54 = vpack.c.bf16 %v1685_v15, %v1684_v13  ;;  %v7023_v13 = vld [vmem:[%s7629_s17 + $0x38] sm:$0xff]   ;;  %v7030_v15 = vld [vmem:[%s7638_s20 + $0xb0] sm:$0xff]  }
 0x552   : > { %5998 = vst [vmem:[%s7684_s10 + $0x8] sm:$0xff] %v5712_v16   ;;  %6523 = vmatprep.subr.bf16.mxu0 %v7030_v15  ;;  %v7031_v16 = vld [vmem:[%s7638_s20 + $0xb8] sm:$0xff]  }
 0x553   : > { %5708 = vst [vmem:[%s7684_s10] sm:$0xff] %v5707_v54   ;;  %v6469_v17 = vpop.f32.mrb[36].mxu0  ;;  %6524 = vmatpush3.bf16.msra.mxu0 %v7030_v15  ;;  %v7053_v15 = vld [vmem:[%s7638_s20 + $0xe8] sm:$0xff]  }
 0x554   : > { %v1637_v55 = vpop.f32.mrb[37].mxu0  ;;  %v1690_v19 = vmax.f32 %v6469_v17, 0.0  ;;  %6525 = vmatprep.subr.bf16.mxu0 %v7031_v16 }
 0x555   : > { %v6470_v18 = vpop.f32.mrb[38].mxu0  ;;  %v1688_v25 = vmax.f32 %v1637_v55, 0.0 }
 0x556   : > { %v1691_v20 = vmax.f32 %v6470_v18, 0.0  ;;  %v1640_v24 = vpop.f32.mrb[39].mxu0 }
 0x557   : > { %v1689_v26 = vmax.f32 %v1640_v24, 0.0  ;;  %6526 = vmatpush3.bf16.msra.mxu0 %v7031_v16 }
 0x558   : > { %v5722_v27 = vpack.c.bf16 %v1691_v20, %v1690_v19 }
 0x559   : > { %v5717_v10 = vpack.c.bf16 %v1689_v26, %v1688_v25  ;;  %v7009_v30 = vld [vmem:[%s7684_s10 + $0x8] sm:$0xff]  }
 0x55a   : > { %6000 = vst [vmem:[%s7684_s10 + $0x18] sm:$0xff] %v5722_v27   ;;  %v7008_v28 = vld [vmem:[%s7684_s10] sm:$0xff]  }
 0x55b   : > { %5999 = vst [vmem:[%s7684_s10 + $0x10] sm:$0xff] %v5717_v10   ;;  %v6473_v11 = vpop.f32.mrb[40].mxu0  ;;  %6479 = vmatprep.subr.bf16.mxu1 %v7008_v28 }
 0x55c   : > { %v1653_v29 = vpop.f32.mrb[41].mxu0  ;;  %6480 = vmatpush3.bf16.msra.mxu1 %v7008_v28  ;;  %v1694_v41 = vmax.f32 %v6473_v11, 0.0 }
 0x55d   : > { %v6474_v33 = vpop.f32.mrb[42].mxu0  ;;  %6481 = vmatprep.subr.bf16.mxu1 %v7009_v30  ;;  %v1692_v43 = vmax.f32 %v1653_v29, 0.0 }
 0x55e   : > { %v1695_v42 = vmax.f32 %v6474_v33, 0.0  ;;  %v1656_v31 = vpop.f32.mrb[43].mxu0 }
 0x55f   : > { %v1693_v32 = vmax.f32 %v1656_v31, 0.0 }
 0x560   : > { %v5732_v44 = vpack.c.bf16 %v1695_v42, %v1694_v41  ;;  %6482 = vmatpush3.bf16.msra.mxu1 %v7009_v30 }
 0x561   : > { %v5727_v45 = vpack.c.bf16 %v1693_v32, %v1692_v43  ;;  %v7011_v47 = vld [vmem:[%s7684_s10 + $0x18] sm:$0xff]  }
 0x562   : > { %6002 = vst [vmem:[%s7684_s10 + $0x28] sm:$0xff] %v5732_v44   ;;  %v7010_v46 = vld [vmem:[%s7684_s10 + $0x10] sm:$0xff]  }
 0x563   : > { %6001 = vst [vmem:[%s7684_s10 + $0x20] sm:$0xff] %v5727_v45   ;;  %v6477_v23 = vpop.f32.mrb[44].mxu0  ;;  %6483 = vmatprep.subr.bf16.mxu1 %v7010_v46 }
 0x564   : > { %v1669_v34 = vpop.f32.mrb[45].mxu0  ;;  %6484 = vmatpush3.bf16.msra.mxu1 %v7010_v46  ;;  %v1698_v49 = vmax.f32 %v6477_v23, 0.0 }
 0x565   : > { %v6478_v48 = vpop.f32.mrb[46].mxu0  ;;  %6485 = vmatprep.subr.bf16.mxu1 %v7011_v47  ;;  %v1696_v52 = vmax.f32 %v1669_v34, 0.0 }
 0x566   : > { %v1699_v50 = vmax.f32 %v6478_v48, 0.0  ;;  %v1672_v51 = vpop.f32.mrb[47].mxu0 }
 0x567   : > { %v1697_v53 = vmax.f32 %v1672_v51, 0.0 }
 0x568   : > { %v5742_v60 = vpack.c.bf16 %v1699_v50, %v1698_v49  ;;  %6486 = vmatpush3.bf16.msra.mxu1 %v7011_v47 }
 0x569   : > { %v5737_v63 = vpack.c.bf16 %v1697_v53, %v1696_v52  ;;  %v7013_v1 = vld [vmem:[%s7684_s10 + $0x28] sm:$0xff]  }
 0x56a   : > { %6004 = vst [vmem:[%s7684_s10 + $0x38] sm:$0xff] %v5742_v60   ;;  %v7012_v0 = vld [vmem:[%s7684_s10 + $0x20] sm:$0xff]  }
 0x56b   : > { %6003 = vst [vmem:[%s7684_s10 + $0x30] sm:$0xff] %v5737_v63   ;;  %6487 = vmatprep.subr.bf16.mxu1 %v7012_v0 }
 0x56c   : > { %6488 = vmatpush3.bf16.msra.mxu1 %v7012_v0 }
 0x56d   : > { %6489 = vmatprep.subr.bf16.mxu1 %v7013_v1 }
 0x570   : > { %6490 = vmatpush3.bf16.msra.mxu1 %v7013_v1 }
 0x571   : > { %v7015_v3 = vld [vmem:[%s7684_s10 + $0x38] sm:$0xff]  }
 0x572   : > { %v7014_v2 = vld [vmem:[%s7684_s10 + $0x30] sm:$0xff]  }
 0x573   : > { %6491 = vmatprep.subr.bf16.mxu1 %v7014_v2 }
 0x574   : > { %6492 = vmatpush3.bf16.msra.mxu1 %v7014_v2 }
 0x575   : > { %6493 = vmatprep.subr.bf16.mxu1 %v7015_v3 }
 0x578   : > { %6494 = vmatpush3.bf16.msra.mxu1 %v7015_v3 }
 0x57b   : > { %6496 = vmatmul.mubr.bf16.vlgmr.msra.gmra.mrb[32].mxu1 %v7017_v36 }
 0x57c   : > { %6499 = vmatprep.mubr.bf16.mxu1 %v7018_v4  ;;  %v7040_v4 = vld [vmem:[%s7629_s17] sm:$0xff]  }
 0x583   : > { %6500 = vmatmul.mubr.bf16.gmra.mrb[36].mxu1 %v7019_v37  ;;  %v7048_v37 = vld [vmem:[%s7638_s20 + $0xc0] sm:$0xff]  }
 0x584   : > { %6503 = vmatprep.mubr.bf16.mxu1 %v7020_v5  ;;  %v7049_v5 = vld [vmem:[%s7638_s20 + $0xc8] sm:$0xff]   ;;  %6575 = vmatprep.subr.bf16.mxu0 %v7048_v37 }
 0x58b   : > { %6504 = vmatmul.mubr.bf16.gmra.mrb[40].mxu1 %v7021_v6  ;;  %v7050_v6 = vld [vmem:[%s7638_s20 + $0xd0] sm:$0xff]  }
 0x58c   : > { %6507 = vmatprep.mubr.bf16.mxu1 %v7022_v9  ;;  %v7051_v9 = vld [vmem:[%s7638_s20 + $0xd8] sm:$0xff]  }
 0x593   : > { %6508 = vmatmul.mubr.bf16.gmra.mrb[44].mxu1 %v7023_v13  ;;  %v7052_v13 = vld [vmem:[%s7638_s20 + $0xe0] sm:$0xff]  }
 0x594   : > { %6559 = vmatprep.mubr.bf16.mxu1 %v7040_v4 }
 0x64e   : > { %v6497_v54 = vpop.f32.mrb[32].mxu1 }
 0x64f   : > { %v1958_v17 = vpop.f32.mrb[33].mxu1  ;;  %v1967_v18 = vadd.f32 %v6497_v54, %v7759_v57 }
 0x650   : > { %v6498_v55 = vpop.f32.mrb[34].mxu1  ;;  %v1959_v24 = vadd.f32 %v1958_v17, %v7765_v61 }
 0x651   : > { %v1970_v19 = vadd.f32 %v6498_v55, %v7762_v59  ;;  %v1961_v20 = vpop.f32.mrb[35].mxu1 }
 0x652   : > { %v1962_v25 = vadd.f32 %v1961_v20, %v7768_v62 }
 0x653   : > { %v2022_v26 = vpack.c.bf16 %v1970_v19, %v1967_v18 }
 0x654   : > { %v2021_v27 = vpack.c.bf16 %v1962_v25, %v1959_v24 }
 0x656   : > { %v6501_v10 = vpop.f32.mrb[36].mxu1  ;;  %6527 = vmatprep.mubr.bf16.mxu0 %v2021_v27 }
 0x657   : > { %v1974_v28 = vpop.f32.mrb[37].mxu1  ;;  %6528 = vmatmul.mubr.bf16.vlgmr.msra.gmra.mrb[48].mxu0 %v2022_v26  ;;  %v1983_v29 = vadd.f32 %v6501_v10, %v7775_v38 }
 0x658   : > { %v6502_v11 = vpop.f32.mrb[38].mxu1  ;;  %v1975_v41 = vadd.f32 %v1974_v28, %v7781_v7  ;;  %6576 = vmatpush3.bf16.msra.mxu0 %v7048_v37 }
 0x659   : > { %v1986_v30 = vadd.f32 %v6502_v11, %v7778_v40  ;;  %v1977_v33 = vpop.f32.mrb[39].mxu1  ;;  %6577 = vmatprep.subr.bf16.mxu0 %v7049_v5 }
 0x65a   : > { %v1978_v42 = vadd.f32 %v1977_v33, %v7784_v8 }
 0x65b   : > { %v2024_v31 = vpack.c.bf16 %v1986_v30, %v1983_v29 }
 0x65c   : > { %v2023_v43 = vpack.c.bf16 %v1978_v42, %v1975_v41  ;;  %6578 = vmatpush3.bf16.msra.mxu0 %v7049_v5 }
 0x65d   : > { %6579 = vmatprep.subr.bf16.mxu0 %v7050_v6 }
 0x65e   : > { %v6505_v32 = vpop.f32.mrb[40].mxu1  ;;  %6531 = vmatprep.mubr.bf16.mxu0 %v2023_v43 }
 0x65f   : > { %v1990_v44 = vpop.f32.mrb[41].mxu1  ;;  %6532 = vmatmul.mubr.bf16.gmra.mrb[52].mxu0 %v2024_v31  ;;  %v1999_v46 = vadd.f32 %v6505_v32, %v7791_v56 }
 0x660   : > { %v6506_v45 = vpop.f32.mrb[42].mxu1  ;;  %v1991_v47 = vadd.f32 %v1990_v44, %v7797_v21  ;;  %6580 = vmatpush3.bf16.msra.mxu0 %v7050_v6 }
 0x661   : > { %v2002_v23 = vadd.f32 %v6506_v45, %v7794_v58  ;;  %v1993_v34 = vpop.f32.mrb[43].mxu1  ;;  %6581 = vmatprep.subr.bf16.mxu0 %v7051_v9 }
 0x662   : > { %v1994_v48 = vadd.f32 %v1993_v34, %v7800_v22 }
 0x663   : > { %v2026_v49 = vpack.c.bf16 %v2002_v23, %v1999_v46 }
 0x664   : > { %v2025_v50 = vpack.c.bf16 %v1994_v48, %v1991_v47  ;;  %6582 = vmatpush3.bf16.msra.mxu0 %v7051_v9 }
 0x665   : > { %6583 = vmatprep.subr.bf16.mxu0 %v7052_v13 }
 0x666   : > { %v6509_v51 = vpop.f32.mrb[44].mxu1  ;;  %6535 = vmatprep.mubr.bf16.mxu0 %v2025_v50 }
 0x667   : > { %v2006_v52 = vpop.f32.mrb[45].mxu1  ;;  %6536 = vmatmul.mubr.bf16.gmra.mrb[56].mxu0 %v2026_v49  ;;  %v2015_v60 = vadd.f32 %v6509_v51, %v7807_v12 }
 0x668   : > { %v6510_v53 = vpop.f32.mrb[46].mxu1  ;;  %v2007_v1 = vadd.f32 %v2006_v52, %v7813_v35  ;;  %6584 = vmatpush3.bf16.msra.mxu0 %v7052_v13 }
 0x669   : > { %v2018_v63 = vadd.f32 %v6510_v53, %v7810_v14  ;;  %v2009_v0 = vpop.f32.mrb[47].mxu1  ;;  %6585 = vmatprep.subr.bf16.mxu0 %v7053_v15 }
 0x66a   : > { %v2010_v2 = vadd.f32 %v2009_v0, %v7816_v39 }
 0x66b   : > { %v2028_v3 = vpack.c.bf16 %v2018_v63, %v2015_v60 }
 0x66c   : > { %v2027_v36 = vpack.c.bf16 %v2010_v2, %v2007_v1  ;;  %6586 = vmatpush3.bf16.msra.mxu0 %v7053_v15 }
 0x66e   : > { %6539 = vmatprep.mubr.bf16.mxu0 %v2027_v36 }
 0x66f   : > { %6540 = vmatmul.mubr.bf16.gmra.mrb[60].mxu0 %v2028_v3 }
 0x72a   : > { %v6529_v16 = vpop.f32.mrb[48].mxu0 }
 0x72b   : > { %v2128_v54 = vpop.f32.mrb[49].mxu0  ;;  %v2193_v55 = vmax.f32 %v6529_v16, 0.0  ;;  %v7041_v16 = vld [vmem:[%s7629_s17 + $0x8] sm:$0xff]  }
 0x72c   : > { %v6530_v17 = vpop.f32.mrb[50].mxu0  ;;  %v2191_v20 = vmax.f32 %v2128_v54, 0.0  ;;  %v7042_v54 = vld [vmem:[%s7629_s17 + $0x10] sm:$0xff]  }
 0x72d   : > { %v2194_v18 = vmax.f32 %v6530_v17, 0.0  ;;  %v2131_v19 = vpop.f32.mrb[51].mxu0  ;;  %v7043_v17 = vld [vmem:[%s7629_s17 + $0x18] sm:$0xff]  }
 0x72e   : > { %v2192_v24 = vmax.f32 %v2131_v19, 0.0  ;;  %v7046_v19 = vld [vmem:[%s7629_s17 + $0x30] sm:$0xff]  }
 0x72f   : > { %v5752_v25 = vpack.c.bf16 %v2194_v18, %v2193_v55  ;;  %v7044_v55 = vld [vmem:[%s7629_s17 + $0x20] sm:$0xff]   ;;  %v7045_v18 = vld [vmem:[%s7629_s17 + $0x28] sm:$0xff]  }
 0x730   : > { %v5747_v26 = vpack.c.bf16 %v2192_v24, %v2191_v20  ;;  %v7047_v20 = vld [vmem:[%s7629_s17 + $0x38] sm:$0xff]   ;;  %v7054_v24 = vld [vmem:[%s7638_s20 + $0xf0] sm:$0xff]  }
 0x731   : > { %6005 = vst [vmem:[%s7684_s10 + $0x8] sm:$0xff] %v5752_v25   ;;  %6587 = vmatprep.subr.bf16.mxu0 %v7054_v24  ;;  %v7055_v25 = vld [vmem:[%s7638_s20 + $0xf8] sm:$0xff]  }
 0x732   : > { %5748 = vst [vmem:[%s7684_s10] sm:$0xff] %v5747_v26   ;;  %v6533_v27 = vpop.f32.mrb[52].mxu0  ;;  %6588 = vmatpush3.bf16.msra.mxu0 %v7054_v24  ;;  %v7077_v24 = vld [vmem:[%s7638_s20 + $0x128] sm:$0xff]  }
 0x733   : > { %v2144_v10 = vpop.f32.mrb[53].mxu0  ;;  %v2197_v11 = vmax.f32 %v6533_v27, 0.0  ;;  %6589 = vmatprep.subr.bf16.mxu0 %v7055_v25 }
 0x734   : > { %v6534_v28 = vpop.f32.mrb[54].mxu0  ;;  %v2195_v33 = vmax.f32 %v2144_v10, 0.0 }
 0x735   : > { %v2198_v29 = vmax.f32 %v6534_v28, 0.0  ;;  %v2147_v30 = vpop.f32.mrb[55].mxu0 }
 0x736   : > { %v2196_v41 = vmax.f32 %v2147_v30, 0.0  ;;  %6590 = vmatpush3.bf16.msra.mxu0 %v7055_v25 }
 0x737   : > { %v5762_v42 = vpack.c.bf16 %v2198_v29, %v2197_v11 }
 0x738   : > { %v5757_v31 = vpack.c.bf16 %v2196_v41, %v2195_v33  ;;  %v7033_v45 = vld [vmem:[%s7684_s10 + $0x8] sm:$0xff]  }
 0x739   : > { %6007 = vst [vmem:[%s7684_s10 + $0x18] sm:$0xff] %v5762_v42   ;;  %v7032_v43 = vld [vmem:[%s7684_s10] sm:$0xff]  }
 0x73a   : > { %6006 = vst [vmem:[%s7684_s10 + $0x10] sm:$0xff] %v5757_v31   ;;  %v6537_v32 = vpop.f32.mrb[56].mxu0  ;;  %6543 = vmatprep.subr.bf16.mxu1 %v7032_v43 }
 0x73b   : > { %v2160_v44 = vpop.f32.mrb[57].mxu0  ;;  %6544 = vmatpush3.bf16.msra.mxu1 %v7032_v43  ;;  %v2201_v23 = vmax.f32 %v6537_v32, 0.0 }
 0x73c   : > { %v6538_v46 = vpop.f32.mrb[58].mxu0  ;;  %6545 = vmatprep.subr.bf16.mxu1 %v7033_v45  ;;  %v2199_v48 = vmax.f32 %v2160_v44, 0.0 }
 0x73d   : > { %v2202_v34 = vmax.f32 %v6538_v46, 0.0  ;;  %v2163_v47 = vpop.f32.mrb[59].mxu0 }
 0x73e   : > { %v2200_v49 = vmax.f32 %v2163_v47, 0.0 }
 0x73f   : > { %v5772_v50 = vpack.c.bf16 %v2202_v34, %v2201_v23  ;;  %6546 = vmatpush3.bf16.msra.mxu1 %v7033_v45 }
 0x740   : > { %v5767_v51 = vpack.c.bf16 %v2200_v49, %v2199_v48  ;;  %v7035_v63 = vld [vmem:[%s7684_s10 + $0x18] sm:$0xff]  }
 0x741   : > { %6009 = vst [vmem:[%s7684_s10 + $0x28] sm:$0xff] %v5772_v50   ;;  %v7034_v52 = vld [vmem:[%s7684_s10 + $0x10] sm:$0xff]  }
 0x742   : > { %6008 = vst [vmem:[%s7684_s10 + $0x20] sm:$0xff] %v5767_v51   ;;  %v6541_v53 = vpop.f32.mrb[60].mxu0  ;;  %6547 = vmatprep.subr.bf16.mxu1 %v7034_v52 }
 0x743   : > { %v2176_v60 = vpop.f32.mrb[61].mxu0  ;;  %6548 = vmatpush3.bf16.msra.mxu1 %v7034_v52  ;;  %v2205_v1 = vmax.f32 %v6541_v53, 0.0 }
 0x744   : > { %v6542_v0 = vpop.f32.mrb[62].mxu0  ;;  %6549 = vmatprep.subr.bf16.mxu1 %v7035_v63  ;;  %v2203_v36 = vmax.f32 %v2176_v60, 0.0 }
 0x745   : > { %v2206_v2 = vmax.f32 %v6542_v0, 0.0  ;;  %v2179_v3 = vpop.f32.mrb[63].mxu0 }
 0x746   : > { %v2204_v4 = vmax.f32 %v2179_v3, 0.0 }
 0x747   : > { %v5782_v37 = vpack.c.bf16 %v2206_v2, %v2205_v1  ;;  %6550 = vmatpush3.bf16.msra.mxu1 %v7035_v63 }
 0x748   : > { %v5777_v5 = vpack.c.bf16 %v2204_v4, %v2203_v36  ;;  %v7037_v9 = vld [vmem:[%s7684_s10 + $0x28] sm:$0xff]  }
 0x749   : > { %6011 = vst [vmem:[%s7684_s10 + $0x38] sm:$0xff] %v5782_v37   ;;  %v7036_v6 = vld [vmem:[%s7684_s10 + $0x20] sm:$0xff]  }
 0x74a   : > { %6010 = vst [vmem:[%s7684_s10 + $0x30] sm:$0xff] %v5777_v5   ;;  %6551 = vmatprep.subr.bf16.mxu1 %v7036_v6 }
 0x74b   : > { %6552 = vmatpush3.bf16.msra.mxu1 %v7036_v6 }
 0x74c   : > { %6553 = vmatprep.subr.bf16.mxu1 %v7037_v9 }
 0x74f   : > { %6554 = vmatpush3.bf16.msra.mxu1 %v7037_v9 }
 0x750   : > { %v7039_v15 = vld [vmem:[%s7684_s10 + $0x38] sm:$0xff]  }
 0x751   : > { %v7038_v13 = vld [vmem:[%s7684_s10 + $0x30] sm:$0xff]  }
 0x752   : > { %6555 = vmatprep.subr.bf16.mxu1 %v7038_v13 }
 0x753   : > { %6556 = vmatpush3.bf16.msra.mxu1 %v7038_v13 }
 0x754   : > { %6557 = vmatprep.subr.bf16.mxu1 %v7039_v15 }
 0x757   : > { %6558 = vmatpush3.bf16.msra.mxu1 %v7039_v15 }
 0x75a   : > { %6560 = vmatmul.mubr.bf16.vlgmr.msra.gmra.mrb[48].mxu1 %v7041_v16 }
 0x75b   : > { %6563 = vmatprep.mubr.bf16.mxu1 %v7042_v54  ;;  %v7064_v54 = vld [vmem:[%s7629_s17] sm:$0xff]  }
 0x762   : > { %6564 = vmatmul.mubr.bf16.gmra.mrb[52].mxu1 %v7043_v17  ;;  %v7072_v17 = vld [vmem:[%s7638_s20 + $0x100] sm:$0xff]  }
 0x763   : > { %6567 = vmatprep.mubr.bf16.mxu1 %v7044_v55  ;;  %v7073_v55 = vld [vmem:[%s7638_s20 + $0x108] sm:$0xff]   ;;  %6639 = vmatprep.subr.bf16.mxu0 %v7072_v17 }
 0x76a   : > { %6568 = vmatmul.mubr.bf16.gmra.mrb[56].mxu1 %v7045_v18  ;;  %v7074_v18 = vld [vmem:[%s7638_s20 + $0x110] sm:$0xff]  }
 0x76b   : > { %6571 = vmatprep.mubr.bf16.mxu1 %v7046_v19  ;;  %v7075_v19 = vld [vmem:[%s7638_s20 + $0x118] sm:$0xff]  }
 0x772   : > { %6572 = vmatmul.mubr.bf16.gmra.mrb[60].mxu1 %v7047_v20  ;;  %v7076_v20 = vld [vmem:[%s7638_s20 + $0x120] sm:$0xff]  }
 0x773   : > { %6623 = vmatprep.mubr.bf16.mxu1 %v7064_v54 }
 0x82d   : > { %v6561_v26 = vpop.f32.mrb[48].mxu1 }
 0x82e   : > { %v2465_v27 = vpop.f32.mrb[49].mxu1  ;;  %v2474_v28 = vadd.f32 %v6561_v26, %v7759_v57 }
 0x82f   : > { %v6562_v10 = vpop.f32.mrb[50].mxu1  ;;  %v2466_v30 = vadd.f32 %v2465_v27, %v7765_v61 }
 0x830   : > { %v2477_v11 = vadd.f32 %v6562_v10, %v7762_v59  ;;  %v2468_v29 = vpop.f32.mrb[51].mxu1 }
 0x831   : > { %v2469_v33 = vadd.f32 %v2468_v29, %v7768_v62 }
 0x832   : > { %v2529_v41 = vpack.c.bf16 %v2477_v11, %v2474_v28 }
 0x833   : > { %v2528_v42 = vpack.c.bf16 %v2469_v33, %v2466_v30 }
 0x835   : > { %v6565_v31 = vpop.f32.mrb[52].mxu1  ;;  %6591 = vmatprep.mubr.bf16.mxu0 %v2528_v42 }
 0x836   : > { %v2481_v43 = vpop.f32.mrb[53].mxu1  ;;  %6592 = vmatmul.mubr.bf16.vlgmr.msra.gmra.mrb[64].mxu0 %v2529_v41  ;;  %v2490_v44 = vadd.f32 %v6565_v31, %v7775_v38 }
 0x837   : > { %v6566_v32 = vpop.f32.mrb[54].mxu1  ;;  %v2482_v23 = vadd.f32 %v2481_v43, %v7781_v7  ;;  %6640 = vmatpush3.bf16.msra.mxu0 %v7072_v17 }
 0x838   : > { %v2493_v45 = vadd.f32 %v6566_v32, %v7778_v40  ;;  %v2484_v46 = vpop.f32.mrb[55].mxu1  ;;  %6641 = vmatprep.subr.bf16.mxu0 %v7073_v55 }
 0x839   : > { %v2485_v34 = vadd.f32 %v2484_v46, %v7784_v8 }
 0x83a   : > { %v2531_v47 = vpack.c.bf16 %v2493_v45, %v2490_v44 }
 0x83b   : > { %v2530_v48 = vpack.c.bf16 %v2485_v34, %v2482_v23  ;;  %6642 = vmatpush3.bf16.msra.mxu0 %v7073_v55 }
 0x83c   : > { %6643 = vmatprep.subr.bf16.mxu0 %v7074_v18 }
 0x83d   : > { %v6569_v49 = vpop.f32.mrb[56].mxu1  ;;  %6595 = vmatprep.mubr.bf16.mxu0 %v2530_v48 }
 0x83e   : > { %v2497_v50 = vpop.f32.mrb[57].mxu1  ;;  %6596 = vmatmul.mubr.bf16.gmra.mrb[68].mxu0 %v2531_v47  ;;  %v2506_v52 = vadd.f32 %v6569_v49, %v7791_v56 }
 0x83f   : > { %v6570_v51 = vpop.f32.mrb[58].mxu1  ;;  %v2498_v63 = vadd.f32 %v2497_v50, %v7797_v21  ;;  %6644 = vmatpush3.bf16.msra.mxu0 %v7074_v18 }
 0x840   : > { %v2509_v53 = vadd.f32 %v6570_v51, %v7794_v58  ;;  %v2500_v60 = vpop.f32.mrb[59].mxu1  ;;  %6645 = vmatprep.subr.bf16.mxu0 %v7075_v19 }
 0x841   : > { %v2501_v0 = vadd.f32 %v2500_v60, %v7800_v22 }
 0x842   : > { %v2533_v1 = vpack.c.bf16 %v2509_v53, %v2506_v52 }
 0x843   : > { %v2532_v2 = vpack.c.bf16 %v2501_v0, %v2498_v63  ;;  %6646 = vmatpush3.bf16.msra.mxu0 %v7075_v19 }
 0x844   : > { %6647 = vmatprep.subr.bf16.mxu0 %v7076_v20 }
 0x845   : > { %v6573_v3 = vpop.f32.mrb[60].mxu1  ;;  %6599 = vmatprep.mubr.bf16.mxu0 %v2532_v2 }
 0x846   : > { %v2513_v36 = vpop.f32.mrb[61].mxu1  ;;  %6600 = vmatmul.mubr.bf16.gmra.mrb[72].mxu0 %v2533_v1  ;;  %v2522_v37 = vadd.f32 %v6573_v3, %v7807_v12 }
 0x847   : > { %v6574_v4 = vpop.f32.mrb[62].mxu1  ;;  %v2514_v9 = vadd.f32 %v2513_v36, %v7813_v35  ;;  %6648 = vmatpush3.bf16.msra.mxu0 %v7076_v20 }
 0x848   : > { %v2525_v5 = vadd.f32 %v6574_v4, %v7810_v14  ;;  %v2516_v6 = vpop.f32.mrb[63].mxu1  ;;  %6649 = vmatprep.subr.bf16.mxu0 %v7077_v24 }
 0x849   : > { %v2517_v13 = vadd.f32 %v2516_v6, %v7816_v39 }
 0x84a   : > { %v2535_v15 = vpack.c.bf16 %v2525_v5, %v2522_v37 }
 0x84b   : > { %v2534_v16 = vpack.c.bf16 %v2517_v13, %v2514_v9  ;;  %6650 = vmatpush3.bf16.msra.mxu0 %v7077_v24 }
 0x84d   : > { %6603 = vmatprep.mubr.bf16.mxu0 %v2534_v16 }
 0x84e   : > { %6604 = vmatmul.mubr.bf16.gmra.mrb[76].mxu0 %v2535_v15 }
 0x909   : > { %v6593_v25 = vpop.f32.mrb[64].mxu0 }
 0x90a   : > { %v2635_v26 = vpop.f32.mrb[65].mxu0  ;;  %v2700_v10 = vmax.f32 %v6593_v25, 0.0  ;;  %v7065_v25 = vld [vmem:[%s7629_s17 + $0x8] sm:$0xff]  }
 0x90b   : > { %v6594_v27 = vpop.f32.mrb[66].mxu0  ;;  %v2698_v29 = vmax.f32 %v2635_v26, 0.0  ;;  %v7066_v26 = vld [vmem:[%s7629_s17 + $0x10] sm:$0xff]  }
 0x90c   : > { %v2701_v28 = vmax.f32 %v6594_v27, 0.0  ;;  %v2638_v11 = vpop.f32.mrb[67].mxu0  ;;  %v7067_v27 = vld [vmem:[%s7629_s17 + $0x18] sm:$0xff]  }
 0x90d   : > { %v2699_v30 = vmax.f32 %v2638_v11, 0.0  ;;  %v7070_v11 = vld [vmem:[%s7629_s17 + $0x30] sm:$0xff]  }
 0x90e   : > { %v5792_v33 = vpack.c.bf16 %v2701_v28, %v2700_v10  ;;  %v7068_v10 = vld [vmem:[%s7629_s17 + $0x20] sm:$0xff]   ;;  %v7069_v28 = vld [vmem:[%s7629_s17 + $0x28] sm:$0xff]  }
 0x90f   : > { %v5787_v41 = vpack.c.bf16 %v2699_v30, %v2698_v29  ;;  %v7071_v29 = vld [vmem:[%s7629_s17 + $0x38] sm:$0xff]   ;;  %v7078_v30 = vld [vmem:[%s7638_s20 + $0x130] sm:$0xff]  }
 0x910   : > { %6012 = vst [vmem:[%s7684_s10 + $0x8] sm:$0xff] %v5792_v33   ;;  %6651 = vmatprep.subr.bf16.mxu0 %v7078_v30  ;;  %v7079_v33 = vld [vmem:[%s7638_s20 + $0x138] sm:$0xff]  }
 0x911   : > { %5788 = vst [vmem:[%s7684_s10] sm:$0xff] %v5787_v41   ;;  %v6597_v42 = vpop.f32.mrb[68].mxu0  ;;  %6652 = vmatpush3.bf16.msra.mxu0 %v7078_v30  ;;  %v7101_v30 = vld [vmem:[%s7638_s20 + $0x168] sm:$0xff]  }
 0x912   : > { %v2651_v31 = vpop.f32.mrb[69].mxu0  ;;  %v2704_v32 = vmax.f32 %v6597_v42, 0.0  ;;  %6653 = vmatprep.subr.bf16.mxu0 %v7079_v33 }
 0x913   : > { %v6598_v43 = vpop.f32.mrb[70].mxu0  ;;  %v2702_v46 = vmax.f32 %v2651_v31, 0.0 }
 0x914   : > { %v2705_v44 = vmax.f32 %v6598_v43, 0.0  ;;  %v2654_v45 = vpop.f32.mrb[71].mxu0 }
 0x915   : > { %v2703_v23 = vmax.f32 %v2654_v45, 0.0  ;;  %6654 = vmatpush3.bf16.msra.mxu0 %v7079_v33 }
 0x916   : > { %v5802_v34 = vpack.c.bf16 %v2705_v44, %v2704_v32 }
 0x917   : > { %v5797_v47 = vpack.c.bf16 %v2703_v23, %v2702_v46  ;;  %v7057_v51 = vld [vmem:[%s7684_s10 + $0x8] sm:$0xff]  }
 0x918   : > { %6014 = vst [vmem:[%s7684_s10 + $0x18] sm:$0xff] %v5802_v34   ;;  %v7056_v48 = vld [vmem:[%s7684_s10] sm:$0xff]  }
 0x919   : > { %6013 = vst [vmem:[%s7684_s10 + $0x10] sm:$0xff] %v5797_v47   ;;  %v6601_v49 = vpop.f32.mrb[72].mxu0  ;;  %6607 = vmatprep.subr.bf16.mxu1 %v7056_v48 }
 0x91a   : > { %v2667_v50 = vpop.f32.mrb[73].mxu0  ;;  %6608 = vmatpush3.bf16.msra.mxu1 %v7056_v48  ;;  %v2708_v53 = vmax.f32 %v6601_v49, 0.0 }
 0x91b   : > { %v6602_v52 = vpop.f32.mrb[74].mxu0  ;;  %6609 = vmatprep.subr.bf16.mxu1 %v7057_v51  ;;  %v2706_v0 = vmax.f32 %v2667_v50, 0.0 }
 0x91c   : > { %v2709_v60 = vmax.f32 %v6602_v52, 0.0  ;;  %v2670_v63 = vpop.f32.mrb[75].mxu0 }
 0x91d   : > { %v2707_v1 = vmax.f32 %v2670_v63, 0.0 }
 0x91e   : > { %v5812_v2 = vpack.c.bf16 %v2709_v60, %v2708_v53  ;;  %6610 = vmatpush3.bf16.msra.mxu1 %v7057_v51 }
 0x91f   : > { %v5807_v3 = vpack.c.bf16 %v2707_v1, %v2706_v0  ;;  %v7059_v5 = vld [vmem:[%s7684_s10 + $0x18] sm:$0xff]  }
 0x920   : > { %6016 = vst [vmem:[%s7684_s10 + $0x28] sm:$0xff] %v5812_v2   ;;  %v7058_v36 = vld [vmem:[%s7684_s10 + $0x10] sm:$0xff]  }
 0x921   : > { %6015 = vst [vmem:[%s7684_s10 + $0x20] sm:$0xff] %v5807_v3   ;;  %v6605_v4 = vpop.f32.mrb[76].mxu0  ;;  %6611 = vmatprep.subr.bf16.mxu1 %v7058_v36 }
 0x922   : > { %v2683_v37 = vpop.f32.mrb[77].mxu0  ;;  %6612 = vmatpush3.bf16.msra.mxu1 %v7058_v36  ;;  %v2712_v9 = vmax.f32 %v6605_v4, 0.0 }
 0x923   : > { %v6606_v6 = vpop.f32.mrb[78].mxu0  ;;  %6613 = vmatprep.subr.bf16.mxu1 %v7059_v5  ;;  %v2710_v16 = vmax.f32 %v2683_v37, 0.0 }
 0x924   : > { %v2713_v13 = vmax.f32 %v6606_v6, 0.0  ;;  %v2686_v15 = vpop.f32.mrb[79].mxu0 }
 0x925   : > { %v2711_v54 = vmax.f32 %v2686_v15, 0.0 }
 0x926   : > { %v5822_v17 = vpack.c.bf16 %v2713_v13, %v2712_v9  ;;  %6614 = vmatpush3.bf16.msra.mxu1 %v7059_v5 }
 0x927   : > { %v5817_v55 = vpack.c.bf16 %v2711_v54, %v2710_v16  ;;  %v7061_v19 = vld [vmem:[%s7684_s10 + $0x28] sm:$0xff]  }
 0x928   : > { %6018 = vst [vmem:[%s7684_s10 + $0x38] sm:$0xff] %v5822_v17   ;;  %v7060_v18 = vld [vmem:[%s7684_s10 + $0x20] sm:$0xff]  }
 0x929   : > { %6017 = vst [vmem:[%s7684_s10 + $0x30] sm:$0xff] %v5817_v55   ;;  %6615 = vmatprep.subr.bf16.mxu1 %v7060_v18 }
 0x92a   : > { %6616 = vmatpush3.bf16.msra.mxu1 %v7060_v18 }
 0x92b   : > { %6617 = vmatprep.subr.bf16.mxu1 %v7061_v19 }
 0x92e   : > { %6618 = vmatpush3.bf16.msra.mxu1 %v7061_v19 }
 0x92f   : > { %v7063_v24 = vld [vmem:[%s7684_s10 + $0x38] sm:$0xff]  }
 0x930   : > { %v7062_v20 = vld [vmem:[%s7684_s10 + $0x30] sm:$0xff]  }
 0x931   : > { %6619 = vmatprep.subr.bf16.mxu1 %v7062_v20 }
 0x932   : > { %6620 = vmatpush3.bf16.msra.mxu1 %v7062_v20 }
 0x933   : > { %6621 = vmatprep.subr.bf16.mxu1 %v7063_v24 }
 0x936   : > { %6622 = vmatpush3.bf16.msra.mxu1 %v7063_v24 }
 0x939   : > { %6624 = vmatmul.mubr.bf16.vlgmr.msra.gmra.mrb[64].mxu1 %v7065_v25 }
 0x93a   : > { %6627 = vmatprep.mubr.bf16.mxu1 %v7066_v26  ;;  %v7088_v26 = vld [vmem:[%s7629_s17] sm:$0xff]  }
 0x941   : > { %6628 = vmatmul.mubr.bf16.gmra.mrb[68].mxu1 %v7067_v27  ;;  %v7096_v27 = vld [vmem:[%s7638_s20 + $0x140] sm:$0xff]  }
 0x942   : > { %6631 = vmatprep.mubr.bf16.mxu1 %v7068_v10  ;;  %v7097_v10 = vld [vmem:[%s7638_s20 + $0x148] sm:$0xff]   ;;  %6703 = vmatprep.subr.bf16.mxu0 %v7096_v27 }
 0x949   : > { %6632 = vmatmul.mubr.bf16.gmra.mrb[72].mxu1 %v7069_v28  ;;  %v7098_v28 = vld [vmem:[%s7638_s20 + $0x150] sm:$0xff]  }
 0x94a   : > { %6635 = vmatprep.mubr.bf16.mxu1 %v7070_v11  ;;  %v7099_v11 = vld [vmem:[%s7638_s20 + $0x158] sm:$0xff]  }
 0x951   : > { %6636 = vmatmul.mubr.bf16.gmra.mrb[76].mxu1 %v7071_v29  ;;  %v7100_v29 = vld [vmem:[%s7638_s20 + $0x160] sm:$0xff]  }
 0x952   : > { %6687 = vmatprep.mubr.bf16.mxu1 %v7088_v26 }
 0xa0c   : > { %v6625_v41 = vpop.f32.mrb[64].mxu1 }
 0xa0d   : > { %v2972_v42 = vpop.f32.mrb[65].mxu1  ;;  %v2981_v43 = vadd.f32 %v6625_v41, %v7759_v57 }
 0xa0e   : > { %v6626_v31 = vpop.f32.mrb[66].mxu1  ;;  %v2973_v45 = vadd.f32 %v2972_v42, %v7765_v61 }
 0xa0f   : > { %v2984_v32 = vadd.f32 %v6626_v31, %v7762_v59  ;;  %v2975_v44 = vpop.f32.mrb[67].mxu1 }
 0xa10   : > { %v2976_v46 = vadd.f32 %v2975_v44, %v7768_v62 }
 0xa11   : > { %v3036_v23 = vpack.c.bf16 %v2984_v32, %v2981_v43 }
 0xa12   : > { %v3035_v34 = vpack.c.bf16 %v2976_v46, %v2973_v45 }
 0xa14   : > { %v6629_v47 = vpop.f32.mrb[68].mxu1  ;;  %6655 = vmatprep.mubr.bf16.mxu0 %v3035_v34 }
 0xa15   : > { %v2988_v48 = vpop.f32.mrb[69].mxu1  ;;  %6656 = vmatmul.mubr.bf16.vlgmr.msra.gmra.mrb[80].mxu0 %v3036_v23  ;;  %v2997_v50 = vadd.f32 %v6629_v47, %v7775_v38 }
 0xa16   : > { %v6630_v49 = vpop.f32.mrb[70].mxu1  ;;  %v2989_v53 = vadd.f32 %v2988_v48, %v7781_v7  ;;  %6704 = vmatpush3.bf16.msra.mxu0 %v7096_v27 }
 0xa17   : > { %v3000_v51 = vadd.f32 %v6630_v49, %v7778_v40  ;;  %v2991_v52 = vpop.f32.mrb[71].mxu1  ;;  %6705 = vmatprep.subr.bf16.mxu0 %v7097_v10 }
 0xa18   : > { %v2992_v60 = vadd.f32 %v2991_v52, %v7784_v8 }
 0xa19   : > { %v3038_v63 = vpack.c.bf16 %v3000_v51, %v2997_v50 }
 0xa1a   : > { %v3037_v0 = vpack.c.bf16 %v2992_v60, %v2989_v53  ;;  %6706 = vmatpush3.bf16.msra.mxu0 %v7097_v10 }
 0xa1b   : > { %6707 = vmatprep.subr.bf16.mxu0 %v7098_v28 }
 0xa1c   : > { %v6633_v1 = vpop.f32.mrb[72].mxu1  ;;  %6659 = vmatprep.mubr.bf16.mxu0 %v3037_v0 }
 0xa1d   : > { %v3004_v2 = vpop.f32.mrb[73].mxu1  ;;  %6660 = vmatmul.mubr.bf16.gmra.mrb[84].mxu0 %v3038_v63  ;;  %v3013_v36 = vadd.f32 %v6633_v1, %v7791_v56 }
 0xa1e   : > { %v6634_v3 = vpop.f32.mrb[74].mxu1  ;;  %v3005_v5 = vadd.f32 %v3004_v2, %v7797_v21  ;;  %6708 = vmatpush3.bf16.msra.mxu0 %v7098_v28 }
 0xa1f   : > { %v3016_v4 = vadd.f32 %v6634_v3, %v7794_v58  ;;  %v3007_v37 = vpop.f32.mrb[75].mxu1  ;;  %6709 = vmatprep.subr.bf16.mxu0 %v7099_v11 }
 0xa20   : > { %v3008_v6 = vadd.f32 %v3007_v37, %v7800_v22 }
 0xa21   : > { %v3040_v9 = vpack.c.bf16 %v3016_v4, %v3013_v36 }
 0xa22   : > { %v3039_v13 = vpack.c.bf16 %v3008_v6, %v3005_v5  ;;  %6710 = vmatpush3.bf16.msra.mxu0 %v7099_v11 }
 0xa23   : > { %6711 = vmatprep.subr.bf16.mxu0 %v7100_v29 }
 0xa24   : > { %v6637_v15 = vpop.f32.mrb[76].mxu1  ;;  %6663 = vmatprep.mubr.bf16.mxu0 %v3039_v13 }
 0xa25   : > { %v3020_v16 = vpop.f32.mrb[77].mxu1  ;;  %6664 = vmatmul.mubr.bf16.gmra.mrb[88].mxu0 %v3040_v9  ;;  %v3029_v17 = vadd.f32 %v6637_v15, %v7807_v12 }
 0xa26   : > { %v6638_v54 = vpop.f32.mrb[78].mxu1  ;;  %v3021_v19 = vadd.f32 %v3020_v16, %v7813_v35  ;;  %6712 = vmatpush3.bf16.msra.mxu0 %v7100_v29 }
 0xa27   : > { %v3032_v55 = vadd.f32 %v6638_v54, %v7810_v14  ;;  %v3023_v18 = vpop.f32.mrb[79].mxu1  ;;  %6713 = vmatprep.subr.bf16.mxu0 %v7101_v30 }
 0xa28   : > { %v3024_v20 = vadd.f32 %v3023_v18, %v7816_v39 }
 0xa29   : > { %v3042_v24 = vpack.c.bf16 %v3032_v55, %v3029_v17 }
 0xa2a   : > { %v3041_v25 = vpack.c.bf16 %v3024_v20, %v3021_v19  ;;  %6714 = vmatpush3.bf16.msra.mxu0 %v7101_v30 }
 0xa2c   : > { %6667 = vmatprep.mubr.bf16.mxu0 %v3041_v25 }
 0xa2d   : > { %6668 = vmatmul.mubr.bf16.gmra.mrb[92].mxu0 %v3042_v24 }
 0xae8   : > { %v6657_v33 = vpop.f32.mrb[80].mxu0 }
 0xae9   : > { %v3142_v41 = vpop.f32.mrb[81].mxu0  ;;  %v3207_v31 = vmax.f32 %v6657_v33, 0.0  ;;  %v7089_v33 = vld [vmem:[%s7629_s17 + $0x8] sm:$0xff]  }
 0xaea   : > { %v6658_v42 = vpop.f32.mrb[82].mxu0  ;;  %v3205_v44 = vmax.f32 %v3142_v41, 0.0  ;;  %v7090_v41 = vld [vmem:[%s7629_s17 + $0x10] sm:$0xff]  }
 0xaeb   : > { %v3208_v43 = vmax.f32 %v6658_v42, 0.0  ;;  %v3145_v32 = vpop.f32.mrb[83].mxu0  ;;  %v7091_v42 = vld [vmem:[%s7629_s17 + $0x18] sm:$0xff]  }
 0xaec   : > { %v3206_v45 = vmax.f32 %v3145_v32, 0.0  ;;  %v7094_v32 = vld [vmem:[%s7629_s17 + $0x30] sm:$0xff]  }
 0xaed   : > { %v5832_v46 = vpack.c.bf16 %v3208_v43, %v3207_v31  ;;  %v7092_v31 = vld [vmem:[%s7629_s17 + $0x20] sm:$0xff]   ;;  %v7093_v43 = vld [vmem:[%s7629_s17 + $0x28] sm:$0xff]  }
 0xaee   : > { %v5827_v23 = vpack.c.bf16 %v3206_v45, %v3205_v44  ;;  %v7095_v44 = vld [vmem:[%s7629_s17 + $0x38] sm:$0xff]   ;;  %v7102_v45 = vld [vmem:[%s7638_s20 + $0x170] sm:$0xff]  }
 0xaef   : > { %6019 = vst [vmem:[%s7684_s10 + $0x8] sm:$0xff] %v5832_v46   ;;  %6715 = vmatprep.subr.bf16.mxu0 %v7102_v45  ;;  %v7103_v46 = vld [vmem:[%s7638_s20 + $0x178] sm:$0xff]  }
 0xaf0   : > { %5828 = vst [vmem:[%s7684_s10] sm:$0xff] %v5827_v23   ;;  %v6661_v34 = vpop.f32.mrb[84].mxu0  ;;  %6716 = vmatpush3.bf16.msra.mxu0 %v7102_v45  ;;  %v7125_v45 = vld [vmem:[%s7638_s20 + $0x1a8] sm:$0xff]  }
 0xaf1   : > { %v3158_v47 = vpop.f32.mrb[85].mxu0  ;;  %v3211_v49 = vmax.f32 %v6661_v34, 0.0  ;;  %6717 = vmatprep.subr.bf16.mxu0 %v7103_v46 }
 0xaf2   : > { %v6662_v48 = vpop.f32.mrb[86].mxu0  ;;  %v3209_v52 = vmax.f32 %v3158_v47, 0.0 }
 0xaf3   : > { %v3212_v50 = vmax.f32 %v6662_v48, 0.0  ;;  %v3161_v51 = vpop.f32.mrb[87].mxu0 }
 0xaf4   : > { %v3210_v53 = vmax.f32 %v3161_v51, 0.0  ;;  %6718 = vmatpush3.bf16.msra.mxu0 %v7103_v46 }
 0xaf5   : > { %v5842_v60 = vpack.c.bf16 %v3212_v50, %v3211_v49 }
 0xaf6   : > { %v5837_v63 = vpack.c.bf16 %v3210_v53, %v3209_v52  ;;  %v7081_v3 = vld [vmem:[%s7684_s10 + $0x8] sm:$0xff]  }
 0xaf7   : > { %6021 = vst [vmem:[%s7684_s10 + $0x18] sm:$0xff] %v5842_v60   ;;  %v7080_v0 = vld [vmem:[%s7684_s10] sm:$0xff]  }
 0xaf8   : > { %6020 = vst [vmem:[%s7684_s10 + $0x10] sm:$0xff] %v5837_v63   ;;  %v6665_v1 = vpop.f32.mrb[88].mxu0  ;;  %6671 = vmatprep.subr.bf16.mxu1 %v7080_v0 }
 0xaf9   : > { %v3174_v2 = vpop.f32.mrb[89].mxu0  ;;  %6672 = vmatpush3.bf16.msra.mxu1 %v7080_v0  ;;  %v3215_v4 = vmax.f32 %v6665_v1, 0.0 }
 0xafa   : > { %v6666_v36 = vpop.f32.mrb[90].mxu0  ;;  %6673 = vmatprep.subr.bf16.mxu1 %v7081_v3  ;;  %v3213_v6 = vmax.f32 %v3174_v2, 0.0 }
 0xafb   : > { %v3216_v37 = vmax.f32 %v6666_v36, 0.0  ;;  %v3177_v5 = vpop.f32.mrb[91].mxu0 }
 0xafc   : > { %v3214_v9 = vmax.f32 %v3177_v5, 0.0 }
 0xafd   : > { %v5852_v13 = vpack.c.bf16 %v3216_v37, %v3215_v4  ;;  %6674 = vmatpush3.bf16.msra.mxu1 %v7081_v3 }
 0xafe   : > { %v5847_v15 = vpack.c.bf16 %v3214_v9, %v3213_v6  ;;  %v7083_v55 = vld [vmem:[%s7684_s10 + $0x18] sm:$0xff]  }
 0xaff   : > { %6023 = vst [vmem:[%s7684_s10 + $0x28] sm:$0xff] %v5852_v13   ;;  %v7082_v16 = vld [vmem:[%s7684_s10 + $0x10] sm:$0xff]  }
 0xb00   : > { %6022 = vst [vmem:[%s7684_s10 + $0x20] sm:$0xff] %v5847_v15   ;;  %v6669_v54 = vpop.f32.mrb[92].mxu0  ;;  %6675 = vmatprep.subr.bf16.mxu1 %v7082_v16 }
 0xb01   : > { %v3190_v17 = vpop.f32.mrb[93].mxu0  ;;  %6676 = vmatpush3.bf16.msra.mxu1 %v7082_v16  ;;  %v3219_v19 = vmax.f32 %v6669_v54, 0.0 }
 0xb02   : > { %v6670_v18 = vpop.f32.mrb[94].mxu0  ;;  %6677 = vmatprep.subr.bf16.mxu1 %v7083_v55  ;;  %v3217_v25 = vmax.f32 %v3190_v17, 0.0 }
 0xb03   : > { %v3220_v20 = vmax.f32 %v6670_v18, 0.0  ;;  %v3193_v24 = vpop.f32.mrb[95].mxu0 }
 0xb04   : > { %v3218_v26 = vmax.f32 %v3193_v24, 0.0 }
 0xb05   : > { %v5862_v27 = vpack.c.bf16 %v3220_v20, %v3219_v19  ;;  %6678 = vmatpush3.bf16.msra.mxu1 %v7083_v55 }
 0xb06   : > { %v5857_v10 = vpack.c.bf16 %v3218_v26, %v3217_v25  ;;  %v7085_v11 = vld [vmem:[%s7684_s10 + $0x28] sm:$0xff]  }
 0xb07   : > { %6025 = vst [vmem:[%s7684_s10 + $0x38] sm:$0xff] %v5862_v27   ;;  %v7084_v28 = vld [vmem:[%s7684_s10 + $0x20] sm:$0xff]  }
 0xb08   : > { %6024 = vst [vmem:[%s7684_s10 + $0x30] sm:$0xff] %v5857_v10   ;;  %6679 = vmatprep.subr.bf16.mxu1 %v7084_v28 }
 0xb09   : > { %6680 = vmatpush3.bf16.msra.mxu1 %v7084_v28 }
 0xb0a   : > { %6681 = vmatprep.subr.bf16.mxu1 %v7085_v11 }
 0xb0d   : > { %6682 = vmatpush3.bf16.msra.mxu1 %v7085_v11 }
 0xb0e   : > { %v7087_v30 = vld [vmem:[%s7684_s10 + $0x38] sm:$0xff]  }
 0xb0f   : > { %v7086_v29 = vld [vmem:[%s7684_s10 + $0x30] sm:$0xff]  }
 0xb10   : > { %6683 = vmatprep.subr.bf16.mxu1 %v7086_v29 }
 0xb11   : > { %6684 = vmatpush3.bf16.msra.mxu1 %v7086_v29 }
 0xb12   : > { %6685 = vmatprep.subr.bf16.mxu1 %v7087_v30 }
 0xb15   : > { %6686 = vmatpush3.bf16.msra.mxu1 %v7087_v30 }
 0xb18   : > { %6688 = vmatmul.mubr.bf16.vlgmr.msra.gmra.mrb[80].mxu1 %v7089_v33 }
 0xb19   : > { %6691 = vmatprep.mubr.bf16.mxu1 %v7090_v41  ;;  %v7112_v41 = vld [vmem:[%s7629_s17] sm:$0xff]  }
 0xb20   : > { %6692 = vmatmul.mubr.bf16.gmra.mrb[84].mxu1 %v7091_v42  ;;  %v7120_v42 = vld [vmem:[%s7638_s20 + $0x180] sm:$0xff]  }
 0xb21   : > { %6695 = vmatprep.mubr.bf16.mxu1 %v7092_v31  ;;  %v7121_v31 = vld [vmem:[%s7638_s20 + $0x188] sm:$0xff]   ;;  %6767 = vmatprep.subr.bf16.mxu0 %v7120_v42 }
 0xb28   : > { %6696 = vmatmul.mubr.bf16.gmra.mrb[88].mxu1 %v7093_v43  ;;  %v7122_v43 = vld [vmem:[%s7638_s20 + $0x190] sm:$0xff]  }
 0xb29   : > { %6699 = vmatprep.mubr.bf16.mxu1 %v7094_v32  ;;  %v7123_v32 = vld [vmem:[%s7638_s20 + $0x198] sm:$0xff]  }
 0xb30   : > { %6700 = vmatmul.mubr.bf16.gmra.mrb[92].mxu1 %v7095_v44  ;;  %v7124_v44 = vld [vmem:[%s7638_s20 + $0x1a0] sm:$0xff]  }
 0xb31   : > { %6751 = vmatprep.mubr.bf16.mxu1 %v7112_v41 }
 0xbeb   : > { %v6689_v23 = vpop.f32.mrb[80].mxu1 }
 0xbec   : > { %v3479_v34 = vpop.f32.mrb[81].mxu1  ;;  %v3488_v48 = vadd.f32 %v6689_v23, %v7759_v57 }
 0xbed   : > { %v6690_v47 = vpop.f32.mrb[82].mxu1  ;;  %v3480_v51 = vadd.f32 %v3479_v34, %v7765_v61 }
 0xbee   : > { %v3491_v49 = vadd.f32 %v6690_v47, %v7762_v59  ;;  %v3482_v50 = vpop.f32.mrb[83].mxu1 }
 0xbef   : > { %v3483_v52 = vadd.f32 %v3482_v50, %v7768_v62 }
 0xbf0   : > { %v3543_v53 = vpack.c.bf16 %v3491_v49, %v3488_v48 }
 0xbf1   : > { %v3542_v60 = vpack.c.bf16 %v3483_v52, %v3480_v51 }
 0xbf3   : > { %v6693_v63 = vpop.f32.mrb[84].mxu1  ;;  %6719 = vmatprep.mubr.bf16.mxu0 %v3542_v60 }
 0xbf4   : > { %v3495_v0 = vpop.f32.mrb[85].mxu1  ;;  %6720 = vmatmul.mubr.bf16.vlgmr.msra.gmra.mrb[96].mxu0 %v3543_v53  ;;  %v3504_v2 = vadd.f32 %v6693_v63, %v7775_v38 }
 0xbf5   : > { %v6694_v1 = vpop.f32.mrb[86].mxu1  ;;  %v3496_v4 = vadd.f32 %v3495_v0, %v7781_v7  ;;  %6768 = vmatpush3.bf16.msra.mxu0 %v7120_v42 }
 0xbf6   : > { %v3507_v3 = vadd.f32 %v6694_v1, %v7778_v40  ;;  %v3498_v36 = vpop.f32.mrb[87].mxu1  ;;  %6769 = vmatprep.subr.bf16.mxu0 %v7121_v31 }
 0xbf7   : > { %v3499_v37 = vadd.f32 %v3498_v36, %v7784_v8 }
 0xbf8   : > { %v3545_v5 = vpack.c.bf16 %v3507_v3, %v3504_v2 }
 0xbf9   : > { %v3544_v6 = vpack.c.bf16 %v3499_v37, %v3496_v4  ;;  %6770 = vmatpush3.bf16.msra.mxu0 %v7121_v31 }
 0xbfa   : > { %6771 = vmatprep.subr.bf16.mxu0 %v7122_v43 }
 0xbfb   : > { %v6697_v9 = vpop.f32.mrb[88].mxu1  ;;  %6723 = vmatprep.mubr.bf16.mxu0 %v3544_v6 }
 0xbfc   : > { %v3511_v13 = vpop.f32.mrb[89].mxu1  ;;  %6724 = vmatmul.mubr.bf16.gmra.mrb[100].mxu0 %v3545_v5  ;;  %v3520_v16 = vadd.f32 %v6697_v9, %v7791_v56 }
 0xbfd   : > { %v6698_v15 = vpop.f32.mrb[90].mxu1  ;;  %v3512_v55 = vadd.f32 %v3511_v13, %v7797_v21  ;;  %6772 = vmatpush3.bf16.msra.mxu0 %v7122_v43 }
 0xbfe   : > { %v3523_v54 = vadd.f32 %v6698_v15, %v7794_v58  ;;  %v3514_v17 = vpop.f32.mrb[91].mxu1  ;;  %6773 = vmatprep.subr.bf16.mxu0 %v7123_v32 }
 0xbff   : > { %v3515_v18 = vadd.f32 %v3514_v17, %v7800_v22 }
 0xc00   : > { %v3547_v19 = vpack.c.bf16 %v3523_v54, %v3520_v16 }
 0xc01   : > { %v3546_v20 = vpack.c.bf16 %v3515_v18, %v3512_v55  ;;  %6774 = vmatpush3.bf16.msra.mxu0 %v7123_v32 }
 0xc02   : > { %6775 = vmatprep.subr.bf16.mxu0 %v7124_v44 }
 0xc03   : > { %v6701_v24 = vpop.f32.mrb[92].mxu1  ;;  %6727 = vmatprep.mubr.bf16.mxu0 %v3546_v20 }
 0xc04   : > { %v3527_v25 = vpop.f32.mrb[93].mxu1  ;;  %6728 = vmatmul.mubr.bf16.gmra.mrb[104].mxu0 %v3547_v19  ;;  %v3536_v27 = vadd.f32 %v6701_v24, %v7807_v12 }
 0xc05   : > { %v6702_v26 = vpop.f32.mrb[94].mxu1  ;;  %v3528_v11 = vadd.f32 %v3527_v25, %v7813_v35  ;;  %6776 = vmatpush3.bf16.msra.mxu0 %v7124_v44 }
 0xc06   : > { %v3539_v10 = vadd.f32 %v6702_v26, %v7810_v14  ;;  %v3530_v28 = vpop.f32.mrb[95].mxu1  ;;  %6777 = vmatprep.subr.bf16.mxu0 %v7125_v45 }
 0xc07   : > { %v3531_v29 = vadd.f32 %v3530_v28, %v7816_v39 }
 0xc08   : > { %v3549_v30 = vpack.c.bf16 %v3539_v10, %v3536_v27 }
 0xc09   : > { %v3548_v33 = vpack.c.bf16 %v3531_v29, %v3528_v11  ;;  %6778 = vmatpush3.bf16.msra.mxu0 %v7125_v45 }
 0xc0b   : > { %6731 = vmatprep.mubr.bf16.mxu0 %v3548_v33 }
 0xc0c   : > { %6732 = vmatmul.mubr.bf16.gmra.mrb[108].mxu0 %v3549_v30 }
 0xcc7   : > { %v6721_v46 = vpop.f32.mrb[96].mxu0 }
 0xcc8   : > { %v3649_v23 = vpop.f32.mrb[97].mxu0  ;;  %v3714_v47 = vmax.f32 %v6721_v46, 0.0  ;;  %v7113_v46 = vld [vmem:[%s7629_s17 + $0x8] sm:$0xff]  }
 0xcc9   : > { %v6722_v34 = vpop.f32.mrb[98].mxu0  ;;  %v3712_v50 = vmax.f32 %v3649_v23, 0.0  ;;  %v7114_v23 = vld [vmem:[%s7629_s17 + $0x10] sm:$0xff]  }
 0xcca   : > { %v3715_v48 = vmax.f32 %v6722_v34, 0.0  ;;  %v3652_v49 = vpop.f32.mrb[99].mxu0  ;;  %v7115_v34 = vld [vmem:[%s7629_s17 + $0x18] sm:$0xff]  }
 0xccb   : > { %v3713_v51 = vmax.f32 %v3652_v49, 0.0  ;;  %v7118_v49 = vld [vmem:[%s7629_s17 + $0x30] sm:$0xff]  }
 0xccc   : > { %v5872_v52 = vpack.c.bf16 %v3715_v48, %v3714_v47  ;;  %v7116_v47 = vld [vmem:[%s7629_s17 + $0x20] sm:$0xff]   ;;  %v7117_v48 = vld [vmem:[%s7629_s17 + $0x28] sm:$0xff]  }
 0xccd   : > { %v5867_v53 = vpack.c.bf16 %v3713_v51, %v3712_v50  ;;  %v7119_v50 = vld [vmem:[%s7629_s17 + $0x38] sm:$0xff]   ;;  %v7126_v51 = vld [vmem:[%s7638_s20 + $0x1b0] sm:$0xff]  }
 0xcce   : > { %6026 = vst [vmem:[%s7684_s10 + $0x8] sm:$0xff] %v5872_v52   ;;  %6779 = vmatprep.subr.bf16.mxu0 %v7126_v51  ;;  %v7127_v52 = vld [vmem:[%s7638_s20 + $0x1b8] sm:$0xff]  }
 0xccf   : > { %5868 = vst [vmem:[%s7684_s10] sm:$0xff] %v5867_v53   ;;  %v6725_v60 = vpop.f32.mrb[100].mxu0  ;;  %6780 = vmatpush3.bf16.msra.mxu0 %v7126_v51  ;;  %v8136_v51 = vld [vmem:[%s7638_s20 + $0x1e8] sm:$0xff]  }
 0xcd0   : > { %v3665_v63 = vpop.f32.mrb[101].mxu0  ;;  %v3718_v1 = vmax.f32 %v6725_v60, 0.0  ;;  %6781 = vmatprep.subr.bf16.mxu0 %v7127_v52 }
 0xcd1   : > { %v6726_v0 = vpop.f32.mrb[102].mxu0  ;;  %v3716_v36 = vmax.f32 %v3665_v63, 0.0 }
 0xcd2   : > { %v3719_v2 = vmax.f32 %v6726_v0, 0.0  ;;  %v3668_v3 = vpop.f32.mrb[103].mxu0 }
 0xcd3   : > { %v3717_v4 = vmax.f32 %v3668_v3, 0.0  ;;  %6782 = vmatpush3.bf16.msra.mxu0 %v7127_v52 }
 0xcd4   : > { %v5882_v37 = vpack.c.bf16 %v3719_v2, %v3718_v1 }
 0xcd5   : > { %v5877_v5 = vpack.c.bf16 %v3717_v4, %v3716_v36  ;;  %v7105_v15 = vld [vmem:[%s7684_s10 + $0x8] sm:$0xff]  }
 0xcd6   : > { %6028 = vst [vmem:[%s7684_s10 + $0x18] sm:$0xff] %v5882_v37   ;;  %v7104_v6 = vld [vmem:[%s7684_s10] sm:$0xff]  }
 0xcd7   : > { %6027 = vst [vmem:[%s7684_s10 + $0x10] sm:$0xff] %v5877_v5   ;;  %v6729_v9 = vpop.f32.mrb[104].mxu0  ;;  %6735 = vmatprep.subr.bf16.mxu1 %v7104_v6 }
 0xcd8   : > { %v3681_v13 = vpop.f32.mrb[105].mxu0  ;;  %6736 = vmatpush3.bf16.msra.mxu1 %v7104_v6  ;;  %v3722_v54 = vmax.f32 %v6729_v9, 0.0 }
 0xcd9   : > { %v6730_v16 = vpop.f32.mrb[106].mxu0  ;;  %6737 = vmatprep.subr.bf16.mxu1 %v7105_v15  ;;  %v3720_v18 = vmax.f32 %v3681_v13, 0.0 }
 0xcda   : > { %v3723_v17 = vmax.f32 %v6730_v16, 0.0  ;;  %v3684_v55 = vpop.f32.mrb[107].mxu0 }
 0xcdb   : > { %v3721_v19 = vmax.f32 %v3684_v55, 0.0 }
 0xcdc   : > { %v5892_v20 = vpack.c.bf16 %v3723_v17, %v3722_v54  ;;  %6738 = vmatpush3.bf16.msra.mxu1 %v7105_v15 }
 0xcdd   : > { %v5887_v24 = vpack.c.bf16 %v3721_v19, %v3720_v18  ;;  %v7107_v10 = vld [vmem:[%s7684_s10 + $0x18] sm:$0xff]  }
 0xcde   : > { %6030 = vst [vmem:[%s7684_s10 + $0x28] sm:$0xff] %v5892_v20   ;;  %v7106_v25 = vld [vmem:[%s7684_s10 + $0x10] sm:$0xff]  }
 0xcdf   : > { %6029 = vst [vmem:[%s7684_s10 + $0x20] sm:$0xff] %v5887_v24   ;;  %v6733_v26 = vpop.f32.mrb[108].mxu0  ;;  %6739 = vmatprep.subr.bf16.mxu1 %v7106_v25 }
 0xce0   : > { %v3697_v27 = vpop.f32.mrb[109].mxu0  ;;  %6740 = vmatpush3.bf16.msra.mxu1 %v7106_v25  ;;  %v3726_v11 = vmax.f32 %v6733_v26, 0.0 }
 0xce1   : > { %v6734_v28 = vpop.f32.mrb[110].mxu0  ;;  %6741 = vmatprep.subr.bf16.mxu1 %v7107_v10  ;;  %v3724_v33 = vmax.f32 %v3697_v27, 0.0 }
 0xce2   : > { %v3727_v29 = vmax.f32 %v6734_v28, 0.0  ;;  %v3700_v30 = vpop.f32.mrb[111].mxu0 }
 0xce3   : > { %v3725_v41 = vmax.f32 %v3700_v30, 0.0 }
 0xce4   : > { %v5902_v42 = vpack.c.bf16 %v3727_v29, %v3726_v11  ;;  %6742 = vmatpush3.bf16.msra.mxu1 %v7107_v10 }
 0xce5   : > { %v5897_v31 = vpack.c.bf16 %v3725_v41, %v3724_v33  ;;  %v7109_v32 = vld [vmem:[%s7684_s10 + $0x28] sm:$0xff]  }
 0xce6   : > { %6032 = vst [vmem:[%s7684_s10 + $0x38] sm:$0xff] %v5902_v42   ;;  %v7108_v43 = vld [vmem:[%s7684_s10 + $0x20] sm:$0xff]  }
 0xce7   : > { %6031 = vst [vmem:[%s7684_s10 + $0x30] sm:$0xff] %v5897_v31   ;;  %6743 = vmatprep.subr.bf16.mxu1 %v7108_v43 }
 0xce8   : > { %6744 = vmatpush3.bf16.msra.mxu1 %v7108_v43 }
 0xce9   : > { %6745 = vmatprep.subr.bf16.mxu1 %v7109_v32 }
 0xcec   : > { %6746 = vmatpush3.bf16.msra.mxu1 %v7109_v32 }
 0xced   : > { %v7111_v45 = vld [vmem:[%s7684_s10 + $0x38] sm:$0xff]  }
 0xcee   : > { %v7110_v44 = vld [vmem:[%s7684_s10 + $0x30] sm:$0xff]  }
 0xcef   : > { %6747 = vmatprep.subr.bf16.mxu1 %v7110_v44 }
 0xcf0   : > { %6748 = vmatpush3.bf16.msra.mxu1 %v7110_v44 }
 0xcf1   : > { %6749 = vmatprep.subr.bf16.mxu1 %v7111_v45 }
 0xcf4   : > { %6750 = vmatpush3.bf16.msra.mxu1 %v7111_v45 }
 0xcf7   : > { %6752 = vmatmul.mubr.bf16.vlgmr.msra.gmra.mrb[96].mxu1 %v7113_v46 }
 0xcf8   : > { %6755 = vmatprep.mubr.bf16.mxu1 %v7114_v23  ;;  %v7136_v23 = vld [vmem:[%s7629_s17] sm:$0xff]  }
 0xcff   : > { %6756 = vmatmul.mubr.bf16.gmra.mrb[100].mxu1 %v7115_v34  ;;  %v8112_v34 = vld [vmem:[%s7638_s20 + $0x1c0] sm:$0xff]  }
 0xd00   : > { %6759 = vmatprep.mubr.bf16.mxu1 %v7116_v47  ;;  %v8115_v47 = vld [vmem:[%s7638_s20 + $0x1c8] sm:$0xff]   ;;  %6831 = vmatprep.subr.bf16.mxu0 %v8112_v34 }
 0xd07   : > { %6760 = vmatmul.mubr.bf16.gmra.mrb[104].mxu1 %v7117_v48  ;;  %v8121_v48 = vld [vmem:[%s7638_s20 + $0x1d0] sm:$0xff]  }
 0xd08   : > { %6763 = vmatprep.mubr.bf16.mxu1 %v7118_v49  ;;  %v8126_v49 = vld [vmem:[%s7638_s20 + $0x1d8] sm:$0xff]  }
 0xd0f   : > { %6764 = vmatmul.mubr.bf16.gmra.mrb[108].mxu1 %v7119_v50  ;;  %v8131_v50 = vld [vmem:[%s7638_s20 + $0x1e0] sm:$0xff]  }
 0xd10   : > { %6815 = vmatprep.mubr.bf16.mxu1 %v7136_v23 }
 0xdca   : > { %v6753_v53 = vpop.f32.mrb[96].mxu1 }
 0xdcb   : > { %v3986_v60 = vpop.f32.mrb[97].mxu1  ;;  %v3995_v0 = vadd.f32 %v6753_v53, %v7759_v57 }
 0xdcc   : > { %v6754_v63 = vpop.f32.mrb[98].mxu1  ;;  %v3987_v3 = vadd.f32 %v3986_v60, %v7765_v61 }
 0xdcd   : > { %v3998_v1 = vadd.f32 %v6754_v63, %v7762_v59  ;;  %v3989_v2 = vpop.f32.mrb[99].mxu1 }
 0xdce   : > { %v3990_v36 = vadd.f32 %v3989_v2, %v7768_v62 }
 0xdcf   : > { %v4050_v4 = vpack.c.bf16 %v3998_v1, %v3995_v0 }
 0xdd0   : > { %v4049_v37 = vpack.c.bf16 %v3990_v36, %v3987_v3 }
 0xdd2   : > { %v6757_v5 = vpop.f32.mrb[100].mxu1  ;;  %6783 = vmatprep.mubr.bf16.mxu0 %v4049_v37 }
 0xdd3   : > { %v4002_v6 = vpop.f32.mrb[101].mxu1  ;;  %6784 = vmatmul.mubr.bf16.vlgmr.msra.gmra.mrb[112].mxu0 %v4050_v4  ;;  %v4011_v13 = vadd.f32 %v6757_v5, %v7775_v38 }
 0xdd4   : > { %v6758_v9 = vpop.f32.mrb[102].mxu1  ;;  %v4003_v54 = vadd.f32 %v4002_v6, %v7781_v7  ;;  %6832 = vmatpush3.bf16.msra.mxu0 %v8112_v34 }
 0xdd5   : > { %v4014_v15 = vadd.f32 %v6758_v9, %v7778_v40  ;;  %v4005_v16 = vpop.f32.mrb[103].mxu1  ;;  %6833 = vmatprep.subr.bf16.mxu0 %v8115_v47 }
 0xdd6   : > { %v4006_v17 = vadd.f32 %v4005_v16, %v7784_v8 }
 0xdd7   : > { %v4052_v55 = vpack.c.bf16 %v4014_v15, %v4011_v13 }
 0xdd8   : > { %v4051_v18 = vpack.c.bf16 %v4006_v17, %v4003_v54  ;;  %6834 = vmatpush3.bf16.msra.mxu0 %v8115_v47 }
 0xdd9   : > { %6835 = vmatprep.subr.bf16.mxu0 %v8121_v48 }
 0xdda   : > { %v6761_v19 = vpop.f32.mrb[104].mxu1  ;;  %6787 = vmatprep.mubr.bf16.mxu0 %v4051_v18 }
 0xddb   : > { %v4018_v20 = vpop.f32.mrb[105].mxu1  ;;  %6788 = vmatmul.mubr.bf16.gmra.mrb[116].mxu0 %v4052_v55  ;;  %v4027_v25 = vadd.f32 %v6761_v19, %v7791_v56 }
 0xddc   : > { %v6762_v24 = vpop.f32.mrb[106].mxu1  ;;  %v4019_v10 = vadd.f32 %v4018_v20, %v7797_v21  ;;  %6836 = vmatpush3.bf16.msra.mxu0 %v8121_v48 }
 0xddd   : > { %v4030_v26 = vadd.f32 %v6762_v24, %v7794_v58  ;;  %v4021_v27 = vpop.f32.mrb[107].mxu1  ;;  %6837 = vmatprep.subr.bf16.mxu0 %v8126_v49 }
 0xdde   : > { %v4022_v28 = vadd.f32 %v4021_v27, %v7800_v22 }
 0xddf   : > { %v4054_v11 = vpack.c.bf16 %v4030_v26, %v4027_v25 }
 0xde0   : > { %v4053_v29 = vpack.c.bf16 %v4022_v28, %v4019_v10  ;;  %6838 = vmatpush3.bf16.msra.mxu0 %v8126_v49 }
 0xde1   : > { %6839 = vmatprep.subr.bf16.mxu0 %v8131_v50 }
 0xde2   : > { %v6765_v30 = vpop.f32.mrb[108].mxu1  ;;  %6791 = vmatprep.mubr.bf16.mxu0 %v4053_v29 }
 0xde3   : > { %v4034_v33 = vpop.f32.mrb[109].mxu1  ;;  %6792 = vmatmul.mubr.bf16.gmra.mrb[120].mxu0 %v4054_v11  ;;  %v4043_v42 = vadd.f32 %v6765_v30, %v7807_v12 }
 0xde4   : > { %v6766_v41 = vpop.f32.mrb[110].mxu1  ;;  %v4035_v32 = vadd.f32 %v4034_v33, %v7813_v35  ;;  %6840 = vmatpush3.bf16.msra.mxu0 %v8131_v50 }
 0xde5   : > { %v4046_v31 = vadd.f32 %v6766_v41, %v7810_v14  ;;  %v4037_v43 = vpop.f32.mrb[111].mxu1  ;;  %6841 = vmatprep.subr.bf16.mxu0 %v8136_v51 }
 0xde6   : > { %v4038_v44 = vadd.f32 %v4037_v43, %v7816_v39 }
 0xde7   : > { %v4056_v45 = vpack.c.bf16 %v4046_v31, %v4043_v42 }
 0xde8   : > { %v4055_v46 = vpack.c.bf16 %v4038_v44, %v4035_v32  ;;  %6842 = vmatpush3.bf16.msra.mxu0 %v8136_v51 }
 0xdea   : > { %6795 = vmatprep.mubr.bf16.mxu0 %v4055_v46 }
 0xdeb   : > { %6796 = vmatmul.mubr.bf16.gmra.mrb[124].mxu0 %v4056_v45 }
 0xea6   : > { %v6785_v52 = vpop.f32.mrb[112].mxu0 }
 0xea7   : > { %v4156_v53 = vpop.f32.mrb[113].mxu0  ;;  %v4221_v63 = vmax.f32 %v6785_v52, 0.0 }
 0xea8   : > { %v6786_v60 = vpop.f32.mrb[114].mxu0  ;;  %v4219_v2 = vmax.f32 %v4156_v53, 0.0 }
 0xea9   : > { %v4222_v0 = vmax.f32 %v6786_v60, 0.0  ;;  %v4159_v1 = vpop.f32.mrb[115].mxu0 }
 0xeaa   : > { %v4220_v3 = vmax.f32 %v4159_v1, 0.0 }
 0xeab   : > { %v5912_v36 = vpack.c.bf16 %v4222_v0, %v4221_v63 }
 0xeac   : > { %v5907_v4 = vpack.c.bf16 %v4220_v3, %v4219_v2  ;;  %v7137_v2 = vld [vmem:[%s7629_s17 + $0x8] sm:$0xff]   ;;  %v7138_v3 = vld [vmem:[%s7629_s17 + $0x10] sm:$0xff]  }
 0xead   : > { %6033 = vst [vmem:[%s7684_s10 + $0x8] sm:$0xff] %v5912_v36   ;;  %v7139_v36 = vld [vmem:[%s7629_s17 + $0x18] sm:$0xff]  }
 0xeae   : > { %5908 = vst [vmem:[%s7684_s10] sm:$0xff] %v5907_v4   ;;  %v6789_v37 = vpop.f32.mrb[116].mxu0  ;;  %v7140_v4 = vld [vmem:[%s7629_s17 + $0x20] sm:$0xff]  }
 0xeaf   : > { %v4172_v5 = vpop.f32.mrb[117].mxu0  ;;  %v4225_v9 = vmax.f32 %v6789_v37, 0.0  ;;  %v7141_v37 = vld [vmem:[%s7629_s17 + $0x28] sm:$0xff]  }
 0xeb0   : > { %v6790_v6 = vpop.f32.mrb[118].mxu0  ;;  %v4223_v16 = vmax.f32 %v4172_v5, 0.0  ;;  %v7142_v5 = vld [vmem:[%s7629_s17 + $0x30] sm:$0xff]  }
 0xeb1   : > { %v4226_v13 = vmax.f32 %v6790_v6, 0.0  ;;  %v4175_v15 = vpop.f32.mrb[119].mxu0 }
 0xeb2   : > { %v4224_v54 = vmax.f32 %v4175_v15, 0.0 }
 0xeb3   : > { %v5922_v17 = vpack.c.bf16 %v4226_v13, %v4225_v9 }
 0xeb4   : > { %v5917_v55 = vpack.c.bf16 %v4224_v54, %v4223_v16  ;;  %v7129_v24 = vld [vmem:[%s7684_s10 + $0x8] sm:$0xff]  }
 0xeb5   : > { %6035 = vst [vmem:[%s7684_s10 + $0x18] sm:$0xff] %v5922_v17   ;;  %v7128_v18 = vld [vmem:[%s7684_s10] sm:$0xff]  }
 0xeb6   : > { %6034 = vst [vmem:[%s7684_s10 + $0x10] sm:$0xff] %v5917_v55   ;;  %v6793_v19 = vpop.f32.mrb[120].mxu0  ;;  %6799 = vmatprep.subr.bf16.mxu1 %v7128_v18 }
 0xeb7   : > { %v4188_v20 = vpop.f32.mrb[121].mxu0  ;;  %6800 = vmatpush3.bf16.msra.mxu1 %v7128_v18  ;;  %v4229_v26 = vmax.f32 %v6793_v19, 0.0 }
 0xeb8   : > { %v6794_v25 = vpop.f32.mrb[122].mxu0  ;;  %6801 = vmatprep.subr.bf16.mxu1 %v7129_v24  ;;  %v4227_v28 = vmax.f32 %v4188_v20, 0.0 }
 0xeb9   : > { %v4230_v27 = vmax.f32 %v6794_v25, 0.0  ;;  %v4191_v10 = vpop.f32.mrb[123].mxu0 }
 0xeba   : > { %v4228_v11 = vmax.f32 %v4191_v10, 0.0 }
 0xebb   : > { %v5932_v29 = vpack.c.bf16 %v4230_v27, %v4229_v26  ;;  %6802 = vmatpush3.bf16.msra.mxu1 %v7129_v24 }
 0xebc   : > { %v5927_v30 = vpack.c.bf16 %v4228_v11, %v4227_v28  ;;  %v7131_v31 = vld [vmem:[%s7684_s10 + $0x18] sm:$0xff]  }
 0xebd   : > { %6037 = vst [vmem:[%s7684_s10 + $0x28] sm:$0xff] %v5932_v29   ;;  %v7130_v33 = vld [vmem:[%s7684_s10 + $0x10] sm:$0xff]  }
 0xebe   : > { %6036 = vst [vmem:[%s7684_s10 + $0x20] sm:$0xff] %v5927_v30   ;;  %v6797_v41 = vpop.f32.mrb[124].mxu0  ;;  %6803 = vmatprep.subr.bf16.mxu1 %v7130_v33 }
 0xebf   : > { %v4204_v42 = vpop.f32.mrb[125].mxu0  ;;  %6804 = vmatpush3.bf16.msra.mxu1 %v7130_v33  ;;  %v4233_v32 = vmax.f32 %v6797_v41, 0.0 }
 0xec0   : > { %v6798_v43 = vpop.f32.mrb[126].mxu0  ;;  %6805 = vmatprep.subr.bf16.mxu1 %v7131_v31  ;;  %v4231_v46 = vmax.f32 %v4204_v42, 0.0 }
 0xec1   : > { %v4234_v44 = vmax.f32 %v6798_v43, 0.0  ;;  %v4207_v45 = vpop.f32.mrb[127].mxu0 }
 0xec2   : > { %v4232_v23 = vmax.f32 %v4207_v45, 0.0 }
 0xec3   : > { %v5942_v52 = vpack.c.bf16 %v4234_v44, %v4233_v32  ;;  %6806 = vmatpush3.bf16.msra.mxu1 %v7131_v31 }
 0xec4   : > { %v5937_v53 = vpack.c.bf16 %v4232_v23, %v4231_v46  ;;  %v7133_v63 = vld [vmem:[%s7684_s10 + $0x28] sm:$0xff]  }
 0xec5   : > { %6039 = vst [vmem:[%s7684_s10 + $0x38] sm:$0xff] %v5942_v52   ;;  %v7132_v60 = vld [vmem:[%s7684_s10 + $0x20] sm:$0xff]  }
 0xec6   : > { %6038 = vst [vmem:[%s7684_s10 + $0x30] sm:$0xff] %v5937_v53   ;;  %6807 = vmatprep.subr.bf16.mxu1 %v7132_v60 }
 0xec7   : > { %6808 = vmatpush3.bf16.msra.mxu1 %v7132_v60 }
 0xec8   : > { %6809 = vmatprep.subr.bf16.mxu1 %v7133_v63 }
 0xecb   : > { %6810 = vmatpush3.bf16.msra.mxu1 %v7133_v63 }
 0xecc   : > { %v7135_v1 = vld [vmem:[%s7684_s10 + $0x38] sm:$0xff]  }
 0xecd   : > { %v7134_v0 = vld [vmem:[%s7684_s10 + $0x30] sm:$0xff]  }
 0xece   : > { %6811 = vmatprep.subr.bf16.mxu1 %v7134_v0 }
 0xecf   : > { %6812 = vmatpush3.bf16.msra.mxu1 %v7134_v0 }
 0xed0   : > { %6813 = vmatprep.subr.bf16.mxu1 %v7135_v1 }
 0xed3   : > { %6814 = vmatpush3.bf16.msra.mxu1 %v7135_v1 }
 0xed4   : > { %6863 = vmatprep.subr.bf16.mxu1 %v8112_v34 }
 0xed6   : > { %6816 = vmatmul.mubr.bf16.vlgmr.msra.gmra.mrb[112].mxu1 %v7137_v2 }
 0xed7   : > { %6819 = vmatprep.mubr.bf16.mxu1 %v7138_v3  ;;  %6871 = vmatpush3.bf16.msra.mxu1 %v8112_v34  ;;  %v7143_v34 = vld [vmem:[%s7629_s17 + $0x38] sm:$0xff]  }
 0xed8   : > { %6864 = vmatprep.subr.bf16.mxu1 %v8115_v47 }
 0xedb   : > { %6872 = vmatpush3.bf16.msra.mxu1 %v8115_v47  ;;  %v7150_v47 = vld [vmem:[%s7638_s20 + $0x1f0] sm:$0xff]  }
 0xedc   : > { %6865 = vmatprep.subr.bf16.mxu1 %v8121_v48  ;;  %6843 = vmatprep.subr.bf16.mxu0 %v7150_v47 }
 0xedd   : > { %6844 = vmatpush3.bf16.msra.mxu0 %v7150_v47 }
 0xede   : > { %6820 = vmatmul.mubr.bf16.gmra.mrb[116].mxu1 %v7139_v36 }
 0xedf   : > { %6823 = vmatprep.mubr.bf16.mxu1 %v7140_v4  ;;  %6873 = vmatpush3.bf16.msra.mxu1 %v8121_v48  ;;  %v7151_v48 = vld [vmem:[%s7638_s20 + $0x1f8] sm:$0xff]  }
 0xee0   : > { %6866 = vmatprep.subr.bf16.mxu1 %v8126_v49  ;;  %6845 = vmatprep.subr.bf16.mxu0 %v7151_v48 }
 0xee1   : > { %6846 = vmatpush3.bf16.msra.mxu0 %v7151_v48 }
 0xee3   : > { %6874 = vmatpush3.bf16.msra.mxu1 %v8126_v49 }
 0xee4   : > { %6867 = vmatprep.subr.bf16.mxu1 %v8131_v50 }
 0xee6   : > { %6824 = vmatmul.mubr.bf16.gmra.mrb[120].mxu1 %v7141_v37 }
 0xee7   : > { %6827 = vmatprep.mubr.bf16.mxu1 %v7142_v5  ;;  %6875 = vmatpush3.bf16.msra.mxu1 %v8131_v50 }
 0xee8   : > { %6868 = vmatprep.subr.bf16.mxu1 %v8136_v51 }
 0xeeb   : > { %6876 = vmatpush3.bf16.msra.mxu1 %v8136_v51 }
 0xeec   : > { %6869 = vmatprep.subr.bf16.mxu1 %v7150_v47 }
 0xeee   : > { %6828 = vmatmul.mubr.bf16.gmra.mrb[124].mxu1 %v7143_v34 }
 0xeef   : > { %6877 = vmatpush3.bf16.msra.mxu1 %v7150_v47 }
 0xef0   : > { %6870 = vmatprep.subr.bf16.mxu1 %v7151_v48 }
 0xef3   : > { %6878 = vmatpush3.bf16.msra.mxu1 %v7151_v48 }
 0xfa9   : > { %v6817_v49 = vpop.f32.mrb[112].mxu1 }
 0xfaa   : > { %v4493_v6 = vpop.f32.mrb[113].mxu1  ;;  %v4502_v50 = vadd.f32 %v6817_v49, %v7759_v57 }
 0xfab   : > { %v6818_v9 = vpop.f32.mrb[114].mxu1  ;;  %v4494_v51 = vadd.f32 %v4493_v6, %v7765_v61 }
 0xfac   : > { %v4505_v13 = vadd.f32 %v6818_v9, %v7762_v59  ;;  %v4496_v15 = vpop.f32.mrb[115].mxu1 }
 0xfad   : > { %v4497_v16 = vadd.f32 %v4496_v15, %v7768_v62 }
 0xfae   : > { %v4557_v54 = vpack.c.bf16 %v4505_v13, %v4502_v50 }
 0xfaf   : > { %v4556_v17 = vpack.c.bf16 %v4497_v16, %v4494_v51 }
 0xfb1   : > { %v6821_v55 = vpop.f32.mrb[116].mxu1  ;;  %6847 = vmatprep.mubr.bf16.mxu0 %v4556_v17 }
 0xfb2   : > { %v4509_v18 = vpop.f32.mrb[117].mxu1  ;;  %6848 = vmatmul.mubr.bf16.vlgmr.msra.gmra.mrb[128].mxu0 %v4557_v54  ;;  %v4518_v20 = vadd.f32 %v6821_v55, %v7775_v38 }
 0xfb3   : > { %v6822_v19 = vpop.f32.mrb[118].mxu1  ;;  %v4510_v57 = vadd.f32 %v4509_v18, %v7781_v7 }
 0xfb4   : > { %v4521_v24 = vadd.f32 %v6822_v19, %v7778_v40  ;;  %v4512_v25 = vpop.f32.mrb[119].mxu1 }
 0xfb5   : > { %v4513_v59 = vadd.f32 %v4512_v25, %v7784_v8 }
 0xfb6   : > { %v4559_v26 = vpack.c.bf16 %v4521_v24, %v4518_v20 }
 0xfb7   : > { %v4558_v61 = vpack.c.bf16 %v4513_v59, %v4510_v57 }
 0xfb9   : > { %v6825_v27 = vpop.f32.mrb[120].mxu1  ;;  %6851 = vmatprep.mubr.bf16.mxu0 %v4558_v61 }
 0xfba   : > { %v4525_v62 = vpop.f32.mrb[121].mxu1  ;;  %6852 = vmatmul.mubr.bf16.gmra.mrb[132].mxu0 %v4559_v26  ;;  %v4534_v28 = vadd.f32 %v6825_v27, %v7791_v56 }
 0xfbb   : > { %v6826_v10 = vpop.f32.mrb[122].mxu1  ;;  %v4526_v38 = vadd.f32 %v4525_v62, %v7797_v21 }
 0xfbc   : > { %v4537_v11 = vadd.f32 %v6826_v10, %v7794_v58  ;;  %v4528_v29 = vpop.f32.mrb[123].mxu1 }
 0xfbd   : > { %v4529_v40 = vadd.f32 %v4528_v29, %v7800_v22 }
 0xfbe   : > { %v4561_v30 = vpack.c.bf16 %v4537_v11, %v4534_v28 }
 0xfbf   : > { %v4560_v7 = vpack.c.bf16 %v4529_v40, %v4526_v38 }
 0xfc1   : > { %v6829_v33 = vpop.f32.mrb[124].mxu1  ;;  %6855 = vmatprep.mubr.bf16.mxu1 %v4560_v7 }
 0xfc2   : > { %v4541_v8 = vpop.f32.mrb[125].mxu1  ;;  %6856 = vmatmul.mubr.bf16.vlgmr.msra.gmra.mrb[128].mxu1 %v4561_v30  ;;  %v4550_v42 = vadd.f32 %v6829_v33, %v7807_v12 }
 0xfc3   : > { %v6830_v41 = vpop.f32.mrb[126].mxu1  ;;  %v4542_v56 = vadd.f32 %v4541_v8, %v7813_v35 }
 0xfc4   : > { %v4553_v31 = vadd.f32 %v6830_v41, %v7810_v14  ;;  %v4544_v43 = vpop.f32.mrb[127].mxu1 }
 0xfc5   : > { %v4545_v58 = vadd.f32 %v4544_v43, %v7816_v39 }
 0xfc6   : > { %v4563_v21 = vpack.c.bf16 %v4553_v31, %v4550_v42 }
 0xfc7   : > { %v4562_v22 = vpack.c.bf16 %v4545_v58, %v4542_v56 }
 0xfc9   : > { %6859 = vmatprep.mubr.bf16.mxu1 %v4562_v22 }
 0xfca   : > { %6860 = vmatmul.mubr.bf16.gmra.mrb[132].mxu1 %v4563_v21 }
0x1085   : > { %v6849_v32 = vpop.f32.mrb[128].mxu0 }
0x1086   : > { %v4663_v44 = vpop.f32.mrb[129].mxu0  ;;  %v4728_v46 = vmax.f32 %v6849_v32, 0.0 }
0x1087   : > { %v6850_v45 = vpop.f32.mrb[130].mxu0  ;;  %v4726_v12 = vmax.f32 %v4663_v44, 0.0 }
0x1088   : > { %v4729_v23 = vmax.f32 %v6850_v45, 0.0  ;;  %v4666_v52 = vpop.f32.mrb[131].mxu0 }
0x1089   : > { %v4727_v14 = vmax.f32 %v4666_v52, 0.0 }
0x108a   : > { %v5952_v53 = vpack.c.bf16 %v4729_v23, %v4728_v46 }
0x108b   : > { %v5947_v35 = vpack.c.bf16 %v4727_v14, %v4726_v12 }
0x108c   : > { %6040 = vst [vmem:[%s7684_s10 + $0x8] sm:$0xff] %v5952_v53  }
0x108d   : > { %5948 = vst [vmem:[%s7684_s10] sm:$0xff] %v5947_v35   ;;  %v6853_v39 = vpop.f32.mrb[132].mxu0 }
0x108e   : > { %v4679_v60 = vpop.f32.mrb[133].mxu0  ;;  %v4732_v0 = vmax.f32 %v6853_v39, 0.0 }
0x108f   : > { %v6854_v63 = vpop.f32.mrb[134].mxu0  ;;  %v4730_v3 = vmax.f32 %v4679_v60, 0.0 }
0x1090   : > { %v4733_v1 = vmax.f32 %v6854_v63, 0.0  ;;  %v4682_v2 = vpop.f32.mrb[135].mxu0 }
0x1091   : > { %v4731_v36 = vmax.f32 %v4682_v2, 0.0 }
0x1092   : > { %v5962_v4 = vpack.c.bf16 %v4733_v1, %v4732_v0 }
0x1093   : > { %v5957_v37 = vpack.c.bf16 %v4731_v36, %v4730_v3 }
0x1094   : > { %6042 = vst [vmem:[%s7684_s10 + $0x18] sm:$0xff] %v5962_v4  }
0x1095   : > { %6041 = vst [vmem:[%s7684_s10 + $0x10] sm:$0xff] %v5957_v37   ;;  %v6857_v5 = vpop.f32.mrb[128].mxu1 }
0x1096   : > { %v4695_v34 = vpop.f32.mrb[129].mxu1  ;;  %v4736_v48 = vmax.f32 %v6857_v5, 0.0 }
0x1097   : > { %v6858_v47 = vpop.f32.mrb[130].mxu1  ;;  %v4734_v9 = vmax.f32 %v4695_v34, 0.0 }
0x1098   : > { %v4737_v49 = vmax.f32 %v6858_v47, 0.0  ;;  %v4698_v6 = vpop.f32.mrb[131].mxu1 }
0x1099   : > { %v4735_v50 = vmax.f32 %v4698_v6, 0.0 }
0x109a   : > { %v5972_v13 = vpack.c.bf16 %v4737_v49, %v4736_v48 }
0x109b   : > { %v5967_v15 = vpack.c.bf16 %v4735_v50, %v4734_v9 }
0x109c   : > { %6044 = vst [vmem:[%s7684_s10 + $0x28] sm:$0xff] %v5972_v13  }
0x109d   : > { %6043 = vst [vmem:[%s7684_s10 + $0x20] sm:$0xff] %v5967_v15   ;;  %v6861_v51 = vpop.f32.mrb[132].mxu1 }
0x109e   : > { %v4711_v16 = vpop.f32.mrb[133].mxu1  ;;  %v4740_v17 = vmax.f32 %v6861_v51, 0.0 }
0x109f   : > { %v6862_v54 = vpop.f32.mrb[134].mxu1  ;;  %v4738_v19 = vmax.f32 %v4711_v16, 0.0 }
0x10a0   : > { %v4741_v55 = vmax.f32 %v6862_v54, 0.0  ;;  %v4714_v18 = vpop.f32.mrb[135].mxu1 }
0x10a1   : > { %v4739_v20 = vmax.f32 %v4714_v18, 0.0 }
0x10a2   : > { %v5982_v24 = vpack.c.bf16 %v4741_v55, %v4740_v17 }
0x10a3   : > { %v5977_v25 = vpack.c.bf16 %v4739_v20, %v4738_v19 }
0x10a4   : > { %6046 = vst [vmem:[%s7684_s10 + $0x38] sm:$0xff] %v5982_v24  }
0x10a5   : > { %6045 = vst [vmem:[%s7684_s10 + $0x30] sm:$0xff] %v5977_v25  }
0x10a6   : > { %7285 = shalt.err (!%p7282_p1)
}
0x10a7   : > { %s7286_s17 = scalar_lea.hbm %s8205_s15, 1024  ;;  %s7290_s8 = scalar_lea.hbm %s8258_s5, 2048 }
0x10a8   : > { %p7287_p7 = scmp.ne.s32.totalorder %s8205_s15, %s7286_s17  ;;  %p7291_p2 = scmp.lt.u32.totalorder %s8205_s15, %s8258_s5 }
0x10a9   : > { %p7292_p6 = scmp.lt.u32.totalorder %s7290_s8, %s7286_s17  ;;  %p7294_p0 = scmp.lt.u32.totalorder %s7286_s17, %s8205_s15 }
0x10aa   : > { %p7288_p9 = pnand %p7287_p7, %p8283_p8 }
0x10ab   : > { %p7293_p13 = por %p7292_p6, %p7291_p2 }
0x10ac   : > { %p7289_p12 = pneg %p7288_p9 }
0x10ad   : > { %p7295_p10 = por %p7294_p0, %p7293_p13 }
0x10af   : > { %p7296_p11 = pnand %p7295_p10, %p7289_p12 }
0x10b1   : > { %7299 = shalt.err (!%p7296_p11)
}
0x10b2   : > { %s7355_s12 = smov 64   ;;  %s7356_s27 = smov 4  }
0x10b3   : > { %6887 = dma.vmem_to_hbm [thread:$0]  (%p8283_p8), %s8207_s1, 1024, %s8205_s15, %s4823_s22, %s7355_s12, %s7355_s12, %s7356_s27  }
0x10b4 PF: > { %s4851_s14 = sand.u32 1, %s7334_s18   ;;  %p8284_p4 = scmp.ne.s32.totalorder %s8272_s30, 0 }
0x10b5   : > { %p8285_p3 = scmp.ge.s32.totalorder %s7346_s21, 2  ;;  %s4852_s10 = scalar_lea.sflag [#allocation5], %s4851_s14 }
0x10b7   : > { %p6903_p5 = pnand %p8285_p3, %p8284_p4 }
0x10b9   : > { %7329 = dma.done.wait (!%p6903_p5), %s4852_s10, 1024  }
0x10ba   : > { %7331 = vsyncadd (!%p6903_p5), %s4852_s10, 4294966272  ;;  %s8286_s0 = sld [smem:[#allocation16_spill]]  ;;  %s8287_s20 = sld [smem:[#allocation17_spill]] }
0x10bb   : > { %p24_p1 = scmp.ge.s32.totalorder %s7412_s24, 4   ;;  %s8288_s18 = smov %s7338_s19 }
0x10bc   : > { %s8290_s21 = smov %s7412_s24 }
0x10bd   :  { %26 = sbr.rel (!%p24_p1) target bundleno = 12 (0xc), region = 132 }
0x10c0   : > { %s8289_s19 = smov %s8286_s0 }
0x10c4   :  { %4857 = vsyncpa [#allocation4], 1 }
0x10c5   :  { %4859 = vsyncpa [#allocation4 + $0x1], 1 }
0x10c6   :  { %4860 = vsyncpa [#allocation7], 1 }
0x10c7   :  { %4862 = vsyncpa [#allocation7 + $0x1], 1 }
0x10c8   :  { %4863 = vsyncpa [#allocation10], 1 }
0x10c9   :  { %4865 = vsyncpa [#allocation10 + $0x1], 1 }
0x10ca   :  { %4866 = vsyncpa [#allocation5], 1 }
0x10cb   :  { %4868 = vsyncpa [#allocation5 + $0x1], 1 }

</bundles_post_ra>
